<compile_context>
chip_gen: v7x
topology: tpu7x:2x2x1
jax: 0.10.0
libtpu: 0.0.40
codegen_flags: <defaults>
</compile_context>

<pallas_src>
import functools
import math

import numpy as np
import jax
import jax.numpy as jnp
from jax import lax
from jax.experimental import pallas as pl
from jax.experimental.pallas import tpu as pltpu

VMEM_SPEC = pl.BlockSpec(memory_space=pltpu.MemorySpace.VMEM)
BN_EPS = 1e-5
NEG_SLOPE = 0.3


def _round_up(x, m):
    return ((x + m - 1) // m) * m


def _bn_scale_shift(bn, eps=BN_EPS):
    scale = bn['gamma'] / jnp.sqrt(bn['var'] + eps)
    shift = bn['beta'] - bn['mean'] * scale
    return scale.astype(jnp.float32), shift.astype(jnp.float32)


# ----------------------------- generic tiled matmul -----------------------------

def _matmul_bias_kernel(a_ref, b_ref, bias_ref, o_ref):
    o_ref[...] = jnp.dot(a_ref[...], b_ref[...],
                         preferred_element_type=jnp.float32) + bias_ref[...]


def pallas_matmul(a, b, bias=None, tile_m=256, tile_n=512):
    """(M, K) @ (K, N) + bias.  bf16 operands, f32 accumulation, tiled over (M, N)."""
    M, K = a.shape
    N = b.shape[1]
    if bias is None:
        bias = jnp.zeros((N,), jnp.float32)
    tm = min(tile_m, _round_up(M, 8))
    tn = min(tile_n, _round_up(N, 128))
    Mp = _round_up(M, tm)
    Np = _round_up(N, tn)
    a_p = a if Mp == M else jnp.pad(a, ((0, Mp - M), (0, 0)))
    b_p = b if Np == N else jnp.pad(b, ((0, 0), (0, Np - N)))
    a_p = a_p.astype(jnp.bfloat16)
    b_p = b_p.astype(jnp.bfloat16)
    bias_p = jnp.pad(bias, (0, Np - N)).reshape(1, Np).astype(jnp.float32)
    out = pl.pallas_call(
        _matmul_bias_kernel,
        grid=(Mp // tm, Np // tn),
        out_shape=jax.ShapeDtypeStruct((Mp, Np), jnp.float32),
        in_specs=[pl.BlockSpec((tm, K), lambda i, j: (i, 0)),
                  pl.BlockSpec((K, tn), lambda i, j: (0, j)),
                  pl.BlockSpec((1, tn), lambda i, j: (0, j))],
        out_specs=pl.BlockSpec((tm, tn), lambda i, j: (i, j)),
        compiler_params=pltpu.CompilerParams(
            dimension_semantics=("parallel", "parallel")),
    )(a_p, b_p, bias_p)
    return out[:M, :N]


# --------------- fused [BN+act] -> Conv1d -> [MaxPool3] -> [BN+act(+abs)] ---------------

def _conv_block_kernel(x_ref, w_ref, b_ref, s_ref, sh_ref, ps_ref, psh_ref, o_ref, *,
                       K, CC, P, T_in, Cin, fuse_bn, pool, post_bn, post_abs, neg):
    j = pl.program_id(1)
    start = pl.multiple_of(j * CC, 128)
    W = CC + K - 1
    region = x_ref[:, pl.ds(start, W)]                       # (Cin, W) f32
    if fuse_bn:
        region = region * s_ref[...] + sh_ref[...]           # eval BatchNorm1d
        region = jnp.where(region >= 0, region, neg * region)  # LeakyReLU(0.3)
        # Re-zero the conv's zero-padding (it must stay zero AFTER BN/act).
        g = start + lax.broadcasted_iota(jnp.int32, (Cin, W), 1)
        valid = (g >= P) & (g < P + T_in)
        region = jnp.where(valid, region, 0.0)
    region = region.astype(jnp.bfloat16)
    # Fold the K taps into the MXU contraction: window (K*Cin, CC).
    win = jnp.concatenate([region[:, k:k + CC] for k in range(K)], axis=0)
    y = jnp.dot(w_ref[...], win, preferred_element_type=jnp.float32)  # (Cout, CC)
    y = y + b_ref[...]
    if pool:
        Cout = y.shape[0]
        y = y.reshape(Cout, CC // 3, 3).max(axis=2)          # MaxPool1d(3), lane groups
    if post_bn:
        y = y * ps_ref[...] + psh_ref[...]                   # post-pool BN (sinc path)
        y = jnp.where(y >= 0, y, neg * y)
    if post_abs:
        y = jnp.abs(y)
    o_ref[...] = y


def conv_block(x, w, b=None, padding=0, bn=None, pool=False, post_bn=None,
               post_abs=False, tile_out=512, neg=NEG_SLOPE):
    """Conv1d (stride 1) on (B, Cin, T) with optional fused eval-BN+LeakyReLU prologue
    (RawNet2 order: BN -> act -> conv), optional fused MaxPool1d(3) epilogue, and an
    optional post-pool eval-BN+LeakyReLU(+abs) epilogue (sinc path)."""
    B, Cin, T_in = x.shape
    Cout, _, K = w.shape
    T_conv = T_in + 2 * padding - K + 1
    T_res = T_conv // 3 if pool else T_conv
    tile = min(tile_out, _round_up(max(T_res, 1), 128))      # lane-dense output tile
    nt = pl.cdiv(T_res, tile)
    CC = 3 * tile if pool else tile                          # conv columns per grid step
    L_pad = max(nt * CC + K - 1, T_in + 2 * padding)
    x_pad = jnp.pad(x.astype(jnp.float32),
                    ((0, 0), (0, 0), (padding, L_pad - padding - T_in)))
    w2 = jnp.transpose(w, (0, 2, 1)).reshape(Cout, K * Cin).astype(jnp.bfloat16)
    bias = (b if b is not None else jnp.zeros((Cout,), jnp.float32))
    bias = bias.reshape(Cout, 1).astype(jnp.float32)
    if bn is not None:
        s, sh = _bn_scale_shift(bn)
    else:
        s, sh = jnp.ones((Cin,), jnp.float32), jnp.zeros((Cin,), jnp.float32)
    if post_bn is not None:
        ps, psh = _bn_scale_shift(post_bn)
    else:
        ps, psh = jnp.ones((Cout,), jnp.float32), jnp.zeros((Cout,), jnp.float32)

    kernel = functools.partial(
        _conv_block_kernel, K=K, CC=CC, P=padding, T_in=T_in, Cin=Cin,
        fuse_bn=bn is not None, pool=pool, post_bn=post_bn is not None,
        post_abs=post_abs, neg=neg)
    y = pl.pallas_call(
        kernel,
        grid=(B, nt),
        out_shape=jax.ShapeDtypeStruct((B, Cout, nt * tile), jnp.float32),
        in_specs=[pl.BlockSpec((None, Cin, L_pad), lambda bb, j: (bb, 0, 0)),
                  pl.BlockSpec((Cout, K * Cin), lambda bb, j: (0, 0)),
                  pl.BlockSpec((Cout, 1), lambda bb, j: (0, 0)),
                  pl.BlockSpec((Cin, 1), lambda bb, j: (0, 0)),
                  pl.BlockSpec((Cin, 1), lambda bb, j: (0, 0)),
                  pl.BlockSpec((Cout, 1), lambda bb, j: (0, 0)),
                  pl.BlockSpec((Cout, 1), lambda bb, j: (0, 0))],
        out_specs=pl.BlockSpec((None, Cout, tile), lambda bb, j: (bb, 0, j)),
        compiler_params=pltpu.CompilerParams(
            dimension_semantics=("parallel", "parallel")),
    )(x_pad, w2, bias, s.reshape(Cin, 1), sh.reshape(Cin, 1),
      ps.reshape(Cout, 1), psh.reshape(Cout, 1))
    return y[:, :, :T_res]


# ----------------------------- ResBlock FMS tail -----------------------------

def _res_tail_kernel(x_ref, w_ref, b_ref, ps_ref, psh_ref, o_ref, *, post_bn, neg):
    x = x_ref[...]                                           # (C, T) pooled activations
    mean = jnp.mean(x, axis=1, keepdims=True)                # adaptive_avg_pool1d(., 1)
    s = jax.nn.sigmoid(jnp.dot(w_ref[...], mean,
                               preferred_element_type=jnp.float32) + b_ref[...])
    y = x * (1.0 + s)                                        # x*sigmoid(fms) + x
    if post_bn:                                              # optional pre-GRU BN + act
        y = y * ps_ref[...] + psh_ref[...]
        y = jnp.where(y >= 0, y, neg * y)
    o_ref[...] = y


def resblock_tail(x, fms_w, fms_b, post_bn=None, neg=NEG_SLOPE):
    """Fused adaptive-avg + FMS Linear + sigmoid + x*(1+s) (+ optional eval-BN+act)."""
    # TODO(synk): tile the time axis here for very long sequences (multi-MiB rows).
    B, C, T = x.shape
    if post_bn is not None:
        ps, psh = _bn_scale_shift(post_bn)
    else:
        ps, psh = jnp.ones((C,), jnp.float32), jnp.zeros((C,), jnp.float32)
    return pl.pallas_call(
        functools.partial(_res_tail_kernel, post_bn=post_bn is not None, neg=neg),
        grid=(B,),
        out_shape=jax.ShapeDtypeStruct((B, C, T), jnp.float32),
        in_specs=[pl.BlockSpec((None, C, T), lambda bb: (bb, 0, 0)),
                  pl.BlockSpec((C, C), lambda bb: (0, 0)),
                  pl.BlockSpec((C, 1), lambda bb: (0, 0)),
                  pl.BlockSpec((C, 1), lambda bb: (0, 0)),
                  pl.BlockSpec((C, 1), lambda bb: (0, 0))],
        out_specs=pl.BlockSpec((None, C, T), lambda bb: (bb, 0, 0)),
        compiler_params=pltpu.CompilerParams(dimension_semantics=("parallel",)),
    )(x, fms_w.astype(jnp.float32), fms_b.reshape(C, 1).astype(jnp.float32),
      ps.reshape(C, 1), psh.reshape(C, 1))


# ----------------------------- GRU -----------------------------

def _gru_kernel(xr_ref, xz_ref, xn_ref, wr_ref, wz_ref, wn_ref, bhn_ref, o_ref, *,
                last_only):
    T, Bp, H = xr_ref.shape

    def step(t, h):
        hb = h.astype(jnp.bfloat16)
        r = jax.nn.sigmoid(xr_ref[t] + jnp.dot(hb, wr_ref[...],
                                               preferred_element_type=jnp.float32))
        z = jax.nn.sigmoid(xz_ref[t] + jnp.dot(hb, wz_ref[...],
                                               preferred_element_type=jnp.float32))
        gn = jnp.dot(hb, wn_ref[...], preferred_element_type=jnp.float32) + bhn_ref[...]
        n = jnp.tanh(xn_ref[t] + r * gn)
        h_new = (1.0 - z) * n + z * h
        if not last_only:
            o_ref[t] = h_new
        return h_new

    h_last = lax.fori_loop(0, T, step, jnp.zeros((Bp, H), jnp.float32))
    if last_only:
        o_ref[...] = h_last


def gru_layer(x_seq, w_ih, w_hh, b_ih, b_hh, hidden, last_only=False):
    """PyTorch-semantics GRU layer (gate order r, z, n) on a (T, Bp, I) sequence.
    The input projection for the whole sequence is one tiled bf16 Pallas matmul with
    b_hr/b_hz folded in; gates are kept as separate (T, Bp, H) streams so the serial
    recurrence never slices sub-128-lane vregs.  The last layer returns only h_T."""
    T, Bp, I = x_seq.shape
    H = hidden
    bias = b_ih + jnp.concatenate([b_hh[:2 * H], jnp.zeros((H,), b_hh.dtype)])
    xp = pallas_matmul(x_seq.reshape(T * Bp, I), w_ih.T, bias)        # (T*Bp, 3H) f32
    xp = xp.reshape(T, Bp, 3 * H)
    xr, xz, xn = xp[..., 0:H], xp[..., H:2 * H], xp[..., 2 * H:3 * H]
    whh_t = w_hh.T.astype(jnp.bfloat16)                               # (H, 3H)
    wr, wz, wn = whh_t[:, 0:H], whh_t[:, H:2 * H], whh_t[:, 2 * H:3 * H]
    bhn = b_hh[2 * H:].reshape(1, H).astype(jnp.float32)
    out_shape = (Bp, H) if last_only else (T, Bp, H)
    y = pl.pallas_call(
        functools.partial(_gru_kernel, last_only=last_only),
        out_shape=jax.ShapeDtypeStruct(out_shape, jnp.float32),
        in_specs=[VMEM_SPEC] * 7,
        out_specs=VMEM_SPEC,
    )(xr, xz, xn, wr, wz, wn, bhn)
    return y


# ----------------------------- fused fc + out head -----------------------------

def _head_kernel(x_ref, w1_ref, b1_ref, w2_ref, b2_ref, o_ref):
    h = jnp.dot(x_ref[...], w1_ref[...],
                preferred_element_type=jnp.float32) + b1_ref[...]
    o_ref[...] = jnp.dot(h.astype(jnp.bfloat16), w2_ref[...],
                         preferred_element_type=jnp.float32) + b2_ref[...]


def head(last_h, fc_w, fc_b, out_w, out_b, n_out_pad=128):
    """fc + out linears fused into one kernel; output lanes padded to 128."""
    B, H = last_h.shape
    Bp = _round_up(B, 8)
    x = last_h if Bp == B else jnp.pad(last_h, ((0, Bp - B), (0, 0)))
    x = x.astype(jnp.bfloat16)
    n_out = out_w.shape[0]
    w1 = fc_w.T.astype(jnp.bfloat16)
    b1 = fc_b.reshape(1, H).astype(jnp.float32)
    w2 = jnp.pad(out_w.T, ((0, 0), (0, n_out_pad - n_out))).astype(jnp.bfloat16)
    b2 = jnp.pad(out_b, (0, n_out_pad - n_out)).reshape(1, n_out_pad).astype(jnp.float32)
    y = pl.pallas_call(
        _head_kernel,
        out_shape=jax.ShapeDtypeStruct((Bp, n_out_pad), jnp.float32),
        in_specs=[VMEM_SPEC] * 5,
        out_specs=VMEM_SPEC,
    )(x, w1, b1, w2, b2)
    return y[:B, :n_out]


# ----------------------------- SincConv filter construction (glue) -----------------------------

def make_sinc_filters(out_channels, kernel_size, sample_rate=16000,
                      min_low_hz=0, min_band_hz=0, filter_type='s1'):
    """Replicates SincConv filter construction (parameter setup, host-side glue)."""
    if kernel_size % 2 == 0:
        kernel_size += 1
    to_mel = lambda hz: 2595 * np.log10(1 + hz / 700)
    to_hz = lambda mel: 700 * (10 ** (mel / 2595) - 1)
    low_hz0 = 30
    high_hz0 = sample_rate / 2 - (min_low_hz + min_band_hz)
    if filter_type == 's1':
        mel = np.linspace(to_mel(low_hz0), to_mel(high_hz0), out_channels + 1)
    else:
        mel = np.linspace(to_mel(high_hz0), to_mel(low_hz0), out_channels + 1)
    hz = to_hz(mel)
    low_hz_ = jnp.asarray(hz[:-1], jnp.float32).reshape(-1, 1)
    band_hz_ = jnp.asarray(np.diff(hz), jnp.float32).reshape(-1, 1)

    n_lin = jnp.linspace(0.0, kernel_size / 2 - 1, kernel_size // 2)
    window = 0.54 - 0.46 * jnp.cos(2 * math.pi * n_lin / kernel_size)
    n = (kernel_size - 1) / 2.0
    n_ = 2 * math.pi * jnp.arange(-n, 0, dtype=jnp.float32).reshape(1, -1) / sample_rate

    low = min_low_hz + jnp.abs(low_hz_)
    high = jnp.clip(low + min_band_hz + jnp.abs(band_hz_), min_low_hz, sample_rate / 2)
    band = (high - low)[:, 0]
    f_low = low @ n_
    f_high = high @ n_
    bp_left = (jnp.sin(f_high) - jnp.sin(f_low)) / (n_ / 2) * window
    bp_center = 2 * band.reshape(-1, 1)
    bp_right = jnp.flip(bp_left, axis=1)
    bp = jnp.concatenate([bp_left, bp_center, bp_right], axis=1)
    bp = bp / (2 * band[:, None])
    return bp.reshape(out_channels, 1, kernel_size).astype(jnp.float32), kernel_size


# ----------------------------- parameter init -----------------------------

def _uniform(key, shape, bound):
    return jax.random.uniform(key, shape, jnp.float32, minval=-bound, maxval=bound)


def init_bn(key, c):
    k1, k2 = jax.random.split(key)
    return dict(gamma=1.0 + 0.1 * jax.random.normal(k1, (c,), jnp.float32),
                beta=0.1 * jax.random.normal(k2, (c,), jnp.float32),
                mean=jnp.zeros((c,), jnp.float32),
                var=jnp.ones((c,), jnp.float32))


def init_resblock(key, cin, cout):
    ks = jax.random.split(key, 8)
    b1 = 1.0 / math.sqrt(cin * 3)
    b2 = 1.0 / math.sqrt(cout * 3)
    bl = 1.0 / math.sqrt(cout)
    return dict(
        bn1=init_bn(ks[0], cin),
        conv1_w=_uniform(ks[1], (cout, cin, 3), b1),
        conv1_b=_uniform(ks[2], (cout,), b1),
        bn2=init_bn(ks[3], cout),
        conv2_w=_uniform(ks[4], (cout, cout, 3), b2),
        conv2_b=_uniform(ks[5], (cout,), b2),
        fms_w=_uniform(ks[6], (cout, cout), bl),
        fms_b=_uniform(ks[7], (cout,), bl),
    )


def init_rawnet2(key, cfg):
    keys = jax.random.split(key, 12)
    sinc_filters, _ = make_sinc_filters(cfg['sinc_out'], cfg['sinc_filter'],
                                        filter_type=cfg['sinc_filter_type'])
    f0, f1 = cfg['filters']
    rb_first = [init_resblock(keys[1], cfg['sinc_out'], f0)]
    for i in range(cfg['n_res_blocks_first'] - 1):
        rb_first.append(init_resblock(jax.random.fold_in(keys[2], i), f0, f0))
    rb_second = [init_resblock(keys[3], f0, f1)]
    for i in range(cfg['n_res_blocks_second'] - 1):
        rb_second.append(init_resblock(jax.random.fold_in(keys[4], i), f1, f1))
    H = cfg['gru_hidden']
    bnd = 1.0 / math.sqrt(H)
    gru = []
    in_size = f1
    for l in range(cfg['gru_layers']):
        k1, k2, k3, k4 = jax.random.split(jax.random.fold_in(keys[5], l), 4)
        gru.append(dict(w_ih=_uniform(k1, (3 * H, in_size), bnd),
                        w_hh=_uniform(k2, (3 * H, H), bnd),
                        b_ih=_uniform(k3, (3 * H,), bnd),
                        b_hh=_uniform(k4, (3 * H,), bnd)))
        in_size = H
    return dict(
        sinc_filters=sinc_filters,
        bn_sinc=init_bn(keys[6], cfg['sinc_out']),
        resblocks_first=rb_first,
        resblocks_second=rb_second,
        bn=init_bn(keys[7], f1),
        gru_layers=gru,
        fc_w=_uniform(keys[8], (H, H), bnd),
        fc_b=_uniform(keys[9], (H,), bnd),
        out_w=_uniform(keys[10], (2, H), bnd),
        out_b=_uniform(keys[11], (2,), bnd),
    )


# ----------------------------- forward pass -----------------------------

def rawnet2_forward(params, x, cfg):
    # x: (B, 1, L) raw waveform; internal layout is (B, C, T) (time on lanes).
    x = x.astype(jnp.float32)

    # SincConv + MaxPool1d(3) + BN + LeakyReLU (+abs), all fused in one kernel.
    x = conv_block(x, params['sinc_filters'], b=None, padding=0, bn=None,
                   pool=True, post_bn=params['bn_sinc'],
                   post_abs=cfg['use_abs_after_sinc'])

    blocks = params['resblocks_first'] + params['resblocks_second']
    for bi, p in enumerate(blocks):
        is_last = bi == len(blocks) - 1
        # BN1+act fused into conv1 prologue; BN2+act fused into conv2 prologue,
        # MaxPool1d(3) fused into conv2 epilogue; FMS (and the pre-GRU BN+act on
        # the last block) fused into the tail kernel.
        x = conv_block(x, p['conv1_w'], p['conv1_b'], padding=1, bn=p['bn1'])
        x = conv_block(x, p['conv2_w'], p['conv2_b'], padding=1, bn=p['bn2'], pool=True)
        post = params['bn'] if (is_last and cfg['use_bn_before_gru']) else None
        x = resblock_tail(x, p['fms_w'], p['fms_b'], post_bn=post)

    B, C, T = x.shape
    # Matches torch's x.view(B, -1, C): a raw row-major reshape of the contiguous
    # (B, C, T) tensor, NOT a permute.
    seq = x.reshape(B, T, C)
    # GRU stays in (T, Bp, .) layout across all layers (one transpose at entry).
    seq = jnp.transpose(seq, (1, 0, 2))                      # (T, B, C)
    Bp = _round_up(B, 8)
    if Bp != B:
        seq = jnp.pad(seq, ((0, 0), (0, Bp - B), (0, 0)))
    h = seq
    n_layers = len(params['gru_layers'])
    for li, lp in enumerate(params['gru_layers']):
        h = gru_layer(h, lp['w_ih'], lp['w_hh'], lp['b_ih'], lp['b_hh'],
                      cfg['gru_hidden'], last_only=(li == n_layers - 1))
    logits = head(h[:B], params['fc_w'], params['fc_b'],
                  params['out_w'], params['out_b'])
    return {'bonafide_scores': logits[:, 1],
            'other_scores': logits[:, 0],
            'logits': logits}


# ----------------------------- main -----------------------------

if __name__ == "__main__":
    cfg = dict(use_abs_after_sinc=True, use_bn_before_gru=True,
               filters=[8, 16], sinc_out=8, sinc_filter=16, sinc_filter_type='s1',
               n_res_blocks_first=1, n_res_blocks_second=1,
               gru_hidden=32, gru_layers=2)

    params = init_rawnet2(jax.random.PRNGKey(0), cfg)

    B, L = 2, 124                     # (124 - 17 + 1)=108 -> /3 -> /3 -> /3 = seq len 4
    x = jax.random.normal(jax.random.PRNGKey(0), (B, 1, L), jnp.float32)

    out = rawnet2_forward(params, x, cfg)
    jax.block_until_ready(out['logits'])
    assert out['logits'].shape == (B, 2)
    assert out['bonafide_scores'].shape == (B,)
    assert bool(jnp.all(jnp.isfinite(out['logits'])))
    print("KERNEL_OK")
</pallas_src>

<mosaic_0001>
module attributes {stable_mosaic.version = 11 : i64} {
  func.func @_conv_block_kernel(%arg0: i32, %arg1: i32, %arg2: memref<1x1x400xf32, #tpu.memory_space<vmem>>, %arg3: memref<8x17xbf16, #tpu.memory_space<vmem>>, %arg4: memref<8x1xf32, #tpu.memory_space<vmem>>, %arg5: memref<1x1xf32, #tpu.memory_space<vmem>>, %arg6: memref<1x1xf32, #tpu.memory_space<vmem>>, %arg7: memref<8x1xf32, #tpu.memory_space<vmem>>, %arg8: memref<8x1xf32, #tpu.memory_space<vmem>>, %arg9: memref<1x8x128xf32, #tpu.memory_space<vmem>>) attributes {dimension_semantics = [#tpu.dimension_semantics<parallel>, #tpu.dimension_semantics<parallel>], iteration_bounds = array<i64: 2, 1>, scalar_prefetch = 0 : i64, scratch_operands = 0 : i64, tpu.core_type = #tpu.core_type<tc>, window_params = [{transform_indices = @transform_0, window_bounds = array<i64: 1, 1, 400>}, {pipeline_mode = #tpu.pipeline_mode<synchronous>, transform_indices = @transform_1, window_bounds = array<i64: 8, 17>}, {pipeline_mode = #tpu.pipeline_mode<synchronous>, transform_indices = @transform_2, window_bounds = array<i64: 8, 1>}, {pipeline_mode = #tpu.pipeline_mode<synchronous>, transform_indices = @transform_3, window_bounds = array<i64: 1, 1>}, {pipeline_mode = #tpu.pipeline_mode<synchronous>, transform_indices = @transform_4, window_bounds = array<i64: 1, 1>}, {pipeline_mode = #tpu.pipeline_mode<synchronous>, transform_indices = @transform_5, window_bounds = array<i64: 8, 1>}, {pipeline_mode = #tpu.pipeline_mode<synchronous>, transform_indices = @transform_6, window_bounds = array<i64: 8, 1>}, {transform_indices = @transform_7, window_bounds = array<i64: 1, 8, 128>}]} {
    %c384_i32 = arith.constant 384 : i32
    %0 = arith.muli %arg1, %c384_i32 : i32
    %1 = tpu.assume_multiple %0, 128 : i32
    %c0 = arith.constant 0 : index
    %c0_0 = arith.constant 0 : index
    %2 = arith.index_cast %1 : i32 to index
    %3 = vector.load %arg2[%c0, %c0_0, %2] : memref<1x1x400xf32, #tpu.memory_space<vmem>>, vector<1x1x400xf32>
    %4 = vector.shape_cast %3 : vector<1x1x400xf32> to vector<1x400xf32>
    %5 = arith.truncf %4 : vector<1x400xf32> to vector<1x400xbf16>
    %6 = vector.extract_strided_slice %5 {offsets = [0, 0], sizes = [1, 384], strides = [1, 1]} : vector<1x400xbf16> to vector<1x384xbf16>
    %7 = vector.extract_strided_slice %5 {offsets = [0, 1], sizes = [1, 384], strides = [1, 1]} : vector<1x400xbf16> to vector<1x384xbf16>
    %8 = vector.extract_strided_slice %5 {offsets = [0, 2], sizes = [1, 384], strides = [1, 1]} : vector<1x400xbf16> to vector<1x384xbf16>
    %9 = vector.extract_strided_slice %5 {offsets = [0, 3], sizes = [1, 384], strides = [1, 1]} : vector<1x400xbf16> to vector<1x384xbf16>
    %10 = vector.extract_strided_slice %5 {offsets = [0, 4], sizes = [1, 384], strides = [1, 1]} : vector<1x400xbf16> to vector<1x384xbf16>
    %11 = vector.extract_strided_slice %5 {offsets = [0, 5], sizes = [1, 384], strides = [1, 1]} : vector<1x400xbf16> to vector<1x384xbf16>
    %12 = vector.extract_strided_slice %5 {offsets = [0, 6], sizes = [1, 384], strides = [1, 1]} : vector<1x400xbf16> to vector<1x384xbf16>
    %13 = vector.extract_strided_slice %5 {offsets = [0, 7], sizes = [1, 384], strides = [1, 1]} : vector<1x400xbf16> to vector<1x384xbf16>
    %14 = vector.extract_strided_slice %5 {offsets = [0, 8], sizes = [1, 384], strides = [1, 1]} : vector<1x400xbf16> to vector<1x384xbf16>
    %15 = vector.extract_strided_slice %5 {offsets = [0, 9], sizes = [1, 384], strides = [1, 1]} : vector<1x400xbf16> to vector<1x384xbf16>
    %16 = vector.extract_strided_slice %5 {offsets = [0, 10], sizes = [1, 384], strides = [1, 1]} : vector<1x400xbf16> to vector<1x384xbf16>
    %17 = vector.extract_strided_slice %5 {offsets = [0, 11], sizes = [1, 384], strides = [1, 1]} : vector<1x400xbf16> to vector<1x384xbf16>
    %18 = vector.extract_strided_slice %5 {offsets = [0, 12], sizes = [1, 384], strides = [1, 1]} : vector<1x400xbf16> to vector<1x384xbf16>
    %19 = vector.extract_strided_slice %5 {offsets = [0, 13], sizes = [1, 384], strides = [1, 1]} : vector<1x400xbf16> to vector<1x384xbf16>
    %20 = vector.extract_strided_slice %5 {offsets = [0, 14], sizes = [1, 384], strides = [1, 1]} : vector<1x400xbf16> to vector<1x384xbf16>
    %21 = vector.extract_strided_slice %5 {offsets = [0, 15], sizes = [1, 384], strides = [1, 1]} : vector<1x400xbf16> to vector<1x384xbf16>
    %22 = vector.extract_strided_slice %5 {offsets = [0, 16], sizes = [1, 384], strides = [1, 1]} : vector<1x400xbf16> to vector<1x384xbf16>
    %23 = tpu.concatenate %6, %7, %8, %9, %10, %11, %12, %13, %14, %15, %16, %17, %18, %19, %20, %21 in 0 : vector<1x384xbf16>, vector<1x384xbf16>, vector<1x384xbf16>, vector<1x384xbf16>, vector<1x384xbf16>, vector<1x384xbf16>, vector<1x384xbf16>, vector<1x384xbf16>, vector<1x384xbf16>, vector<1x384xbf16>, vector<1x384xbf16>, vector<1x384xbf16>, vector<1x384xbf16>, vector<1x384xbf16>, vector<1x384xbf16>, vector<1x384xbf16> -> vector<16x384xbf16>
    %24 = tpu.concatenate %23, %22 in 0 : vector<16x384xbf16>, vector<1x384xbf16> -> vector<17x384xbf16>
    %c0_1 = arith.constant 0 : index
    %c0_2 = arith.constant 0 : index
    %25 = vector.load %arg3[%c0_1, %c0_2] : memref<8x17xbf16, #tpu.memory_space<vmem>>, vector<8x17xbf16>
    %cst = arith.constant dense<0.000000e+00> : vector<8x384xf32>
    %26 = tpu.matmul %25, %24, %cst {dimension_numbers = #tpu.dot_dimension_numbers<[1], [0], [0], [1], [0, 0, 1, 1], [], []>} : vector<8x17xbf16>, vector<17x384xbf16>, vector<8x384xf32> -> vector<8x384xf32>
    %c0_3 = arith.constant 0 : index
    %c0_4 = arith.constant 0 : index
    %27 = vector.load %arg4[%c0_3, %c0_4] : memref<8x1xf32, #tpu.memory_space<vmem>>, vector<8x1xf32>
    %28 = vector.broadcast %27 : vector<8x1xf32> to vector<8x384xf32>
    %29 = arith.addf %26, %28 : vector<8x384xf32>
    %30 = vector.shape_cast %29 : vector<8x384xf32> to vector<8x128x3xf32>
    %cst_5 = arith.constant dense<0xFF800000> : vector<8x128xf32>
    %31 = vector.multi_reduction <maximumf>, %30, %cst_5 [2] : vector<8x128x3xf32> to vector<8x128xf32>
    %c0_6 = arith.constant 0 : index
    %c0_7 = arith.constant 0 : index
    %32 = vector.load %arg7[%c0_6, %c0_7] : memref<8x1xf32, #tpu.memory_space<vmem>>, vector<8x1xf32>
    %33 = vector.broadcast %32 : vector<8x1xf32> to vector<8x128xf32>
    %34 = arith.mulf %31, %33 : vector<8x128xf32>
    %c0_8 = arith.constant 0 : index
    %c0_9 = arith.constant 0 : index
    %35 = vector.load %arg8[%c0_8, %c0_9] : memref<8x1xf32, #tpu.memory_space<vmem>>, vector<8x1xf32>
    %36 = vector.broadcast %35 : vector<8x1xf32> to vector<8x128xf32>
    %37 = arith.addf %34, %36 : vector<8x128xf32>
    %cst_10 = arith.constant 0.000000e+00 : f32
    %38 = vector.broadcast %cst_10 : f32 to vector<8x128xf32>
    %39 = arith.cmpf oge, %37, %38 : vector<8x128xf32>
    %cst_11 = arith.constant 3.000000e-01 : f32
    %40 = vector.broadcast %cst_11 : f32 to vector<8x128xf32>
    %41 = arith.mulf %40, %37 : vector<8x128xf32>
    %42 = arith.select %39, %37, %41 : vector<8x128xi1>, vector<8x128xf32>
    %43 = math.absf %42 : vector<8x128xf32>
    %c0_12 = arith.constant 0 : index
    %c0_13 = arith.constant 0 : index
    %c0_14 = arith.constant 0 : index
    %44 = vector.load %arg9[%c0_12, %c0_13, %c0_14] : memref<1x8x128xf32, #tpu.memory_space<vmem>>, vector<1x8x128xf32>
    %45 = vector.shape_cast %44 : vector<1x8x128xf32> to vector<8x128xf32>
    %46 = vector.shape_cast %43 : vector<8x128xf32> to vector<1x8x128xf32>
    tpu.vector_store %arg9[%c0_12, %c0_13, %c0_14], %46 {strides = array<i32>} : memref<1x8x128xf32, #tpu.memory_space<vmem>>, vector<1x8x128xf32>,
    return
  }
  func.func @transform_0(%arg0: i32, %arg1: i32) -> (i32, i32, i32) {
    %c0_i32 = arith.constant 0 : i32
    %c0_i32_0 = arith.constant 0 : i32
    %c0_i32_1 = arith.constant 0 : i32
    return %arg0, %c0_i32, %c0_i32_0 : i32, i32, i32
  }
  func.func @transform_1(%arg0: i32, %arg1: i32) -> (i32, i32) {
    %c0_i32 = arith.constant 0 : i32
    %c0_i32_0 = arith.constant 0 : i32
    %c0_i32_1 = arith.constant 0 : i32
    return %c0_i32, %c0_i32_0 : i32, i32
  }
  func.func @transform_2(%arg0: i32, %arg1: i32) -> (i32, i32) {
    %c0_i32 = arith.constant 0 : i32
    %c0_i32_0 = arith.constant 0 : i32
    %c0_i32_1 = arith.constant 0 : i32
    return %c0_i32, %c0_i32_0 : i32, i32
  }
  func.func @transform_3(%arg0: i32, %arg1: i32) -> (i32, i32) {
    %c0_i32 = arith.constant 0 : i32
    %c0_i32_0 = arith.constant 0 : i32
    %c0_i32_1 = arith.constant 0 : i32
    return %c0_i32, %c0_i32_0 : i32, i32
  }
  func.func @transform_4(%arg0: i32, %arg1: i32) -> (i32, i32) {
    %c0_i32 = arith.constant 0 : i32
    %c0_i32_0 = arith.constant 0 : i32
    %c0_i32_1 = arith.constant 0 : i32
    return %c0_i32, %c0_i32_0 : i32, i32
  }
  func.func @transform_5(%arg0: i32, %arg1: i32) -> (i32, i32) {
    %c0_i32 = arith.constant 0 : i32
    %c0_i32_0 = arith.constant 0 : i32
    %c0_i32_1 = arith.constant 0 : i32
    return %c0_i32, %c0_i32_0 : i32, i32
  }
  func.func @transform_6(%arg0: i32, %arg1: i32) -> (i32, i32) {
    %c0_i32 = arith.constant 0 : i32
    %c0_i32_0 = arith.constant 0 : i32
    %c0_i32_1 = arith.constant 0 : i32
    return %c0_i32, %c0_i32_0 : i32, i32
  }
  func.func @transform_7(%arg0: i32, %arg1: i32) -> (i32, i32, i32) {
    %c0_i32 = arith.constant 0 : i32
    %c0_i32_0 = arith.constant 0 : i32
    return %arg0, %c0_i32, %arg1 : i32, i32, i32
  }
}

</mosaic_0001>

<bundles_post_ra>
// kernel: tpu_custom_call.1
= control target key start
LH: loop header
LB: loop body
LE: loop exit
PB: predicated region body
PF: predicated region fallthrough
CT: control target
= control target key end

     0   :  { %16 = vsyncpa [#allocation5], 0  ;;  %s10125_s0 = inlined_call_operand.vmem [shape: f32[2,1,400], index: 0, kind: input, shape index: {}]   ;;  %s10126_s1 = inlined_call_operand.vmem [shape: bf16[8,17], index: 1, kind: input, shape index: {}]   ;;  %s10127_s2 = inlined_call_operand.vmem [shape: f32[8,1], index: 2, kind: input, shape index: {}]   ;;  %s10128_s3 = inlined_call_operand.<no memory space> [shape: f32[1,1], index: 3, kind: input, shape index: {}]   ;;  %s10129_s5 = inlined_call_operand.vmem [shape: f32[8,1], index: 5, kind: input, shape index: {}]   ;;  %s10130_s6 = inlined_call_operand.vmem [shape: f32[8,1], index: 6, kind: input, shape index: {}]   ;;  %s10131_s7 = inlined_call_operand.hbm [shape: f32[2,8,128], index: 7, kind: output, shape index: {}]   ;;  %s10132_s4 = inlined_call_operand.<no memory space> [shape: f32[1,1], index: 4, kind: input, shape index: {}]  }
   0x1   :  { %18 = vsyncpa [#allocation5 + $0x1], 0  ;;  %s6486_s24 = smov 0   ;;  %s6488_s25 = smov 0  }
   0x2   :  { %s6490_s26 = smov 0   ;;  %s6492_s3 = smov 0  }
   0x3   :  { %s6494_s27 = smov 0   ;;  %s6496_s28 = smov 0  }
   0x4 LB: > { %s5940_s4 = sadd.s32 4294967295, %s6311_s28   ;;  %s5941_s29 = sadd.s32 4294967294, %s6311_s28   ;;  %s6311_s28 = sphi %s6496_s28, %s24_s28   ;;  %s6307_s27 = sphi %s6494_s27, %s10742_s27   ;;  %s6303_s3 = sphi %s6492_s3, %s10741_s3   ;;  %s6299_s26 = sphi %s6490_s26, %s10740_s26   ;;  %s6295_s25 = sphi %s6488_s25, %s10739_s25   ;;  %s6291_s24 = sphi %s6486_s24, %s10738_s24  }
   0x5   : > { %s36_s30 = sadd.s32 1, %s6307_s27  ;;  %s197_s8 = sadd.s32 1, %s6299_s26 }
   0x6   : > { %p38_p0 = scmp.ge.s32.totalorder %s36_s30, 2  ;;  %p207_p1 = scmp.ne.s32.totalorder %s6299_s26, %s6295_s25 }
   0x7   : > { %p208_p2 = scmp.eq.s32.totalorder %s5940_s4, 1  ;;  %p213_p3 = scmp.ne.s32.totalorder %s6295_s25, %s6291_s24 }
   0x8   : > { %s10744_s30 = smov (%p38_p0, %s36_s30), 0  ;;  %p214_p5 = scmp.eq.s32.totalorder %s5941_s29, 1 }
   0x9   : > { %p6526_p4 = por %p208_p2, %p207_p1  ;;  %s192_s10 = ssub.s32 %s6307_s27, %s10744_s30 }
   0xa   : > { %p5944_p6 = scmp.ge.s32.totalorder %s6311_s28, 1  ;;  %p195_p7 = scmp.eq.s32.totalorder %s192_s10, 0 }
   0xb   : > { %p6533_p8 = por %p214_p5, %p213_p3  ;;  %p257_p9 = scmp.lt.s32.totalorder %s6311_s28, 3 }
   0xc   : > { %s6539_s12 = scalar_select %p195_p7, %s6299_s26, %s197_s8  }
   0xd   : > { %p258_p10 = pnand %p5944_p6, %p257_p9 }
   0xf   : > { %261 = sbr.rel (%p258_p10) target bundleno = 1569 (0x621), region = 48 }
  0x16   : > { %p288_p11 = scmp.lt.s32.totalorder %s6303_s3, 1  ;;  %v10139_v0 = vlaneseq  ;;  %s6313_s18 = smov 126   ;;  %vm6330_vm0 = vmmov 0   ;;  %vm343_vm1 = vcmask 1039360   ;;  %vm10136_vm2 = vcmask 1040384  }
  0x17   : > { %s6314_s19 = smov 127   ;;  %s6315_s20 = smov 125   ;;  %vm600_vm3 = vsmask.f32 256  ;;  %vm366_vm4 = vcmask 1031168   ;;  %vm382_vm6 = vcmask 1022976  }
  0x18   : > { %s289_s13 = scalar_select %p288_p11, %s6303_s3, 1  ;;  %v6544_v1 = vshrl.u32 %v10139_v0, 7  ;;  %vm6765_vm5 = vmand %vm10136_vm2, %vm600_vm3  ;;  %vm401_vm7 = vcmask 1014784   ;;  %vm618_vm8 = vcmask 1041408   ;;  %vm619_vm9 = vsmask.f32 1280 }
  0x19   : > { %s6316_s21 = smov 124   ;;  %s6317_s22 = smov 123   ;;  %vm417_vm10 = vcmask 1006592   ;;  %vm436_vm11 = vcmask 998400   ;;  %vm637_vm12 = vcmask 1042432   ;;  %vm452_vm14 = vcmask 990208  }
  0x1a   : > { %10278 = vst [vmem:[#allocation7_spill] sm:$0xff] %v6544_v1  ;;  %s5946_s14 = sshll.u32 %s289_s13, 2  ;;  %v6547_v2 = vsub.s32 0, %v6544_v1  ;;  %v6550_v3 = vsub.s32 1, %v6544_v1  ;;  %v6553_v4 = vsub.s32 2, %v6544_v1  ;;  %v6556_v5 = vsub.s32 3, %v6544_v1 }
  0x1b   : > { %s291_s17 = scalar_lea.vmem %s10125_s0, %s5946_s14  ;;  %s6318_s23 = smov 122   ;;  %vm638_vm13 = vsmask.f32 2304  ;;  %vm656_vm15 = vcmask 1043456   ;;  %vm657_vm3 = vsmask.f32 3328 }
  0x1c   : > { %10279 = vst [vmem:[#allocation8_spill] sm:$0xff] %v6547_v2  ;;  %10280 = vst [vmem:[#allocation9_spill] sm:$0xff] %v6550_v3  ;;  %v297_v6 = vld [vmem:[%s291_s17] sm:$0xf]  ;;  %s10134_s4 = smov 121   ;;  %s6320_s29 = smov 120  }
  0x1d   : > { %10281 = vst [vmem:[#allocation10_spill] sm:$0xff] %v6553_v4  ;;  %10282 = vst [vmem:[#allocation11_spill] sm:$0xff] %v6556_v5  ;;  %v302_v7 = vrot.slane %v297_v6, %v6547_v2  ;;  %v306_v8 = vrot.slane %v297_v6, %v6550_v3  ;;  %v310_v9 = vrot.slane %v297_v6, %v6553_v4  ;;  %s6321_s8 = smov 119   ;;  %s10135_s10 = smov 118  }
  0x1e   : > { %v314_v10 = vrot.slane %v297_v6, %v6556_v5  ;;  %s6323_s13 = smov 117   ;;  %s6324_s14 = smov 116  }
  0x1f   : > { %v6565_v11 = vpack.c.bf16 %v302_v7, %v302_v7  ;;  %v6567_v12 = vpack.c.bf16 %v306_v8, %v306_v8  ;;  %v6569_v13 = vpack.c.bf16 %v310_v9, %v310_v9  ;;  %s10133_s15 = smov 115   ;;  %s6327_s16 = smov 114  }
  0x20   : > { %v6571_v14 = vpack.c.bf16 %v314_v10, %v314_v10  ;;  %s6329_s17 = smov 113  }
  0x21   : > { %v354_v15 = vrot.slane %v6565_v11, 7  ;;  %v6575_v16 = vshll.u32 %v6565_v11, 16  ;;  %v6578_v17 = vshll.u32 %v6567_v12, 16  ;;  %v6581_v18 = vshll.u32 %v6569_v13, 16 }
  0x22   : > { %v6584_v19 = vshll.u32 %v6571_v14, 16  ;;  %v355_v21 = vrot.slane %v6567_v12, 7  ;;  %v357_v23 = vrot.slane %v6571_v14, 7  ;;  %v356_v26 = vrot.slane %v6569_v13, 7 }
  0x23   : > { %358 = vrot.lane.b32.xlu1 %v354_v15, %s6313_s18  ;;  %v6151_v20 = vpack.i.bf16 %v6578_v17, %v6575_v16  ;;  %v372_v24 = vrot.slane %v6581_v18, 7  ;;  %v370_v27 = vrot.slane %v6575_v16, 7  ;;  %v371_v28 = vrot.slane %v6578_v17, 7 }
  0x24   : > { %v6156_v22 = vpack.i.bf16 %v6584_v19, %v6581_v18  ;;  %v373_v25 = vrot.slane %v6584_v19, 7  ;;  %v390_v31 = vrot.slane %v6567_v12, 6  ;;  %v547_v32 = vrot.slane %v6581_v18, 2 }
  0x25   : > { %6152 = vrot.lane.b32.xlu0 %v6151_v20, %s6314_s19  ;;  %v6161_v30 = vpack.i.bf16 %v371_v28, %v370_v27  ;;  %v548_v33 = vrot.slane %v6584_v19, 2  ;;  %v545_v34 = vrot.slane %v6575_v16, 2  ;;  %v546_v35 = vrot.slane %v6578_v17, 2 }
  0x26   : > { %v6166_v29 = vpack.i.bf16 %v373_v25, %v372_v24  ;;  %v389_v36 = vrot.slane %v6565_v11, 6  ;;  %v392_v37 = vrot.slane %v6571_v14, 6  ;;  %v582_v40 = vrot.slane %v6581_v18, 1 }
  0x27   : > { %360 = vrot.lane.b32.xlu1 %v355_v21, %s6313_s18  ;;  %v6612_v38 = vpack.i.bf16 %v548_v33, %v547_v32  ;;  %v6614_v39 = vpack.i.bf16 %v546_v35, %v545_v34  ;;  %v583_v41 = vrot.slane %v6584_v19, 1  ;;  %v407_v42 = vrot.slane %v6581_v18, 6 }
  0x28   : > { %v408_v43 = vrot.slane %v6584_v19, 6  ;;  %v580_v44 = vrot.slane %v6575_v16, 1  ;;  %v581_v45 = vrot.slane %v6578_v17, 1  ;;  %v391_v47 = vrot.slane %v6569_v13, 6 }
  0x29   : > { %6157 = vrot.lane.b32.xlu0 %v6156_v22, %s6314_s19  ;;  %v6623_v46 = vpack.i.bf16 %v583_v41, %v582_v40  ;;  %v405_v48 = vrot.slane %v6575_v16, 6  ;;  %v406_v49 = vrot.slane %v6578_v17, 6  ;;  %v425_v53 = vrot.slane %v6567_v12, 5 }
  0x2a   : > { %v6629_v50 = vpack.i.bf16 %v581_v45, %v580_v44  ;;  %v6176_v51 = vpack.i.bf16 %v408_v43, %v407_v42  ;;  %v424_v54 = vrot.slane %v6565_v11, 5  ;;  %v427_v55 = vrot.slane %v6571_v14, 5 }
  0x2b   : > { %364 = vrot.lane.b32.xlu1 %v357_v23, %s6313_s18  ;;  %v6171_v52 = vpack.i.bf16 %v406_v49, %v405_v48  ;;  %v442_v56 = vrot.slane %v6581_v18, 5  ;;  %v443_v57 = vrot.slane %v6584_v19, 5  ;;  %v426_v58 = vrot.slane %v6569_v13, 5 }
  0x2c   : > { %v440_v59 = vrot.slane %v6575_v16, 5  ;;  %v441_v60 = vrot.slane %v6578_v17, 5  ;;  %v460_v63 = vrot.slane %v6567_v12, 4  ;;  %v459_v6 = vrot.slane %v6565_v11, 4 }
  0x2d   : > { %362 = vrot.lane.b32.xlu0 %v356_v26, %s6313_s18  ;;  %v6186_v61 = vpack.i.bf16 %v443_v57, %v442_v56  ;;  %v462_v7 = vrot.slane %v6571_v14, 4  ;;  %v477_v8 = vrot.slane %v6581_v18, 4  ;;  %v478_v9 = vrot.slane %v6584_v19, 4 }
  0x2e   : > { %v6181_v62 = vpack.i.bf16 %v441_v60, %v440_v59  ;;  %v461_v10 = vrot.slane %v6569_v13, 4  ;;  %v475_v15 = vrot.slane %v6575_v16, 4  ;;  %v476_v20 = vrot.slane %v6578_v17, 4 }
  0x2f   : > { %6167 = vrot.lane.b32.xlu1 %v6166_v29, %s6315_s20  ;;  %v6196_v21 = vpack.i.bf16 %v478_v9, %v477_v8  ;;  %v495_v23 = vrot.slane %v6567_v12, 3  ;;  %v494_v24 = vrot.slane %v6565_v11, 3  ;;  %v497_v25 = vrot.slane %v6571_v14, 3 }
  0x30   : > { %v6191_v22 = vpack.i.bf16 %v476_v20, %v475_v15  ;;  %v512_v26 = vrot.slane %v6581_v18, 3  ;;  %v513_v27 = vrot.slane %v6584_v19, 3  ;;  %v496_v28 = vrot.slane %v6569_v13, 3 }
  0x31   : > { %6162 = vrot.lane.b32.xlu0 %v6161_v30, %s6315_s20  ;;  %v510_v29 = vrot.slane %v6575_v16, 3  ;;  %v511_v30 = vrot.slane %v6578_v17, 3  ;;  %v530_v18 = vrot.slane %v6567_v12, 2  ;;  %v529_v19 = vrot.slane %v6565_v11, 2 }
  0x32   : > { %v532_v16 = vrot.slane %v6571_v14, 2  ;;  %v531_v17 = vrot.slane %v6569_v13, 2  ;;  %v565_v33 = vrot.slane %v6567_v12, 1  ;;  %v564_v34 = vrot.slane %v6565_v11, 1 }
  0x33   : > { %395 = vrot.lane.b32.xlu1 %v390_v31, %s6316_s21  ;;  %v6206_v31 = vpack.i.bf16 %v513_v27, %v512_v26  ;;  %v6201_v32 = vpack.i.bf16 %v511_v30, %v510_v29  ;;  %v6326_v35 = vmov 0.0  }
  0x34   : > { %5956 = vmatprep.subr.bf16.mxu1 %v6326_v35  ;;  %5960 = vmatprep.mubr.msk.bf16.mxu1 %vm6330_vm0, %v6326_v35  ;;  %vm6800_vm0 = vmand %vm618_vm8, %vm619_vm9  ;;  %vm676_vm9 = vsmask.f32 4352 }
  0x35   : > { %393 = vrot.lane.b32.xlu0 %v389_v36, %s6316_s21  ;;  %v567_v36 = vrot.slane %v6571_v14, 1 }
  0x37   : > { %399 = vrot.lane.b32.xlu1 %v392_v37, %s6316_s21  ;;  %v6328_v37 = vmov 0  }
  0x38   : > { %804 = vmatprep.mubr.bf16.mxu0 %v6328_v37  ;;  %6231 = vset.pattern.permute.xlu0 %v6328_v37 }
  0x39   : > { %397 = vrot.lane.b32.xlu0 %v391_v47, %s6316_s21  ;;  %6232 = vset.pattern.permute.xlu1 %v6328_v37 }
  0x3b   : > { %6177 = vrot.lane.b32.xlu1 %v6176_v51, %s6317_s22 }
  0x3d   : > { %6172 = vrot.lane.b32.xlu0 %v6171_v52, %s6317_s22 }
  0x3f   : > { %430 = vrot.lane.b32.xlu1 %v425_v53, %s6318_s23 }
  0x41   : > { %428 = vrot.lane.b32.xlu0 %v424_v54, %s6318_s23 }
  0x43   : > { %434 = vrot.lane.b32.xlu1 %v427_v55, %s6318_s23 }
  0x45   : > { %432 = vrot.lane.b32.xlu0 %v426_v58, %s6318_s23 }
  0x47   : > { %6187 = vrot.lane.b32.xlu1 %v6186_v61, %s10134_s4 }
  0x49   : > { %6182 = vrot.lane.b32.xlu0 %v6181_v62, %s10134_s4  ;;  %s10137_s4 = smov 1  }
  0x4b   : > { %465 = vrot.lane.b32.xlu1 %v460_v63, %s6320_s29 }
  0x4d   : > { %463 = vrot.lane.b32.xlu0 %v459_v6, %s6320_s29 }
  0x4f   : > { %469 = vrot.lane.b32.xlu1 %v462_v7, %s6320_s29 }
  0x51   : > { %467 = vrot.lane.b32.xlu0 %v461_v10, %s6320_s29 }
  0x53   : > { %6197 = vrot.lane.b32.xlu1 %v6196_v21, %s6321_s8 }
  0x55   : > { %6192 = vrot.lane.b32.xlu0 %v6191_v22, %s6321_s8 }
  0x57   : > { %500 = vrot.lane.b32.xlu1 %v495_v23, %s10135_s10 }
  0x59   : > { %498 = vrot.lane.b32.xlu0 %v494_v24, %s10135_s10 }
  0x5b   : > { %504 = vrot.lane.b32.xlu1 %v497_v25, %s10135_s10 }
  0x5d   : > { %502 = vrot.lane.b32.xlu0 %v496_v28, %s10135_s10  ;;  %s6333_s10 = smov 108  }
  0x5f   : > { %6207 = vrot.lane.b32.xlu1 %v6206_v31, %s6323_s13 }
  0x61   : > { %6202 = vrot.lane.b32.xlu0 %v6201_v32, %s6323_s13 }
  0x63   : > { %535 = vrot.lane.b32.xlu1 %v530_v18, %s6324_s14 }
  0x65   : > { %533 = vrot.lane.b32.xlu0 %v529_v19, %s6324_s14 }
  0x67   : > { %539 = vrot.lane.b32.xlu1 %v532_v16, %s6324_s14 }
  0x69   : > { %537 = vrot.lane.b32.xlu0 %v531_v17, %s6324_s14 }
  0x6b   : > { %6217 = vrot.lane.b32.xlu1 %v6612_v38, %s10133_s15  ;;  %v566_v38 = vrot.slane %v6569_v13, 1 }
  0x6d   : > { %6212 = vrot.lane.b32.xlu0 %v6614_v39, %s10133_s15  ;;  %s10138_s15 = smov 112   ;;  %v751_v39 = vld [vmem:[%s10127_s2] sm:$0xff] }
  0x6f   : > { %570 = vrot.lane.b32.xlu1 %v565_v33, %s6327_s16 }
  0x71   : > { %568 = vrot.lane.b32.xlu0 %v564_v34, %s6327_s16 }
  0x73   : > { %574 = vrot.lane.b32.xlu1 %v567_v36, %s6327_s16 }
  0x75   : > { %572 = vrot.lane.b32.xlu0 %v566_v38, %s6327_s16 }
  0x77   : > { %6227 = vrot.lane.b32.xlu1 %v6623_v46, %s6329_s17 }
  0x79   : > { %6222 = vrot.lane.b32.xlu0 %v6629_v50, %s6329_s17 }
  0x7b   : > { %740 = vrot.lane.b32.xlu1 %v6567_v12, %s10138_s15 }
  0x7d   : > { %738 = vrot.lane.b32.xlu0 %v6565_v11, %s10138_s15 }
  0x7f   : > { %744 = vrot.lane.b32.xlu1 %v6571_v14, %s10138_s15 }
  0x81   : > { %742 = vrot.lane.b32.xlu0 %v6569_v13, %s10138_s15  ;;  %s6336_s15 = smov 105  }
  0x85   : > { %754 = vperm.xlu0 %6231, %v751_v39  }
  0x95   : > { %v359_v40 = vpop.permute.xlu1 %358 }
  0x97   : > { %v6153_v41 = vpop.permute.xlu0 %6152 }
  0x98   : > { %v6155_v8 = vunpack.i.h.bf16 %v6153_v41  ;;  %v6154_v9 = vunpack.i.l.bf16 %v6153_v41 }
  0x99   : > { %v361_v42 = vpop.permute.xlu1 %360 }
  0x9a   : > { %v344_v22 = vsel %vm343_vm1, %v6154_v9, %v6155_v8  ;;  %v367_v29 = vsel %vm366_vm4, %v359_v40, %v361_v42 }
  0x9b   : > { %v6158_v43 = vpop.permute.xlu0 %6157  ;;  %v602_v30 = vsel %vm6765_vm5, %v6565_v11, %v344_v22 }
  0x9c   : > { %v6160_v15 = vunpack.i.h.bf16 %v6158_v43  ;;  %v6159_v20 = vunpack.i.l.bf16 %v6158_v43  ;;  %v608_v39 = vsel %vm10136_vm2, %v602_v30, %v367_v29 }
  0x9d   : > { %v365_v44 = vpop.permute.xlu1 %364 }
  0x9e   : > { %v345_v27 = vsel %vm343_vm1, %v6155_v8, %v6159_v20  ;;  %v346_v28 = vsel %vm343_vm1, %v6159_v20, %v6160_v15  ;;  %vm506_vm1 = vcmask 965632  }
  0x9f   : > { %v363_v45 = vpop.permute.xlu0 %362  ;;  %v603_v11 = vsel %vm6765_vm5, %v6567_v12, %v345_v27  ;;  %v604_v36 = vsel %vm6765_vm5, %v6569_v13, %v346_v28  ;;  %vm675_vm5 = vcmask 1044480  }
  0xa0   : > { %v368_v33 = vsel %vm366_vm4, %v361_v42, %v363_v45  ;;  %v369_v34 = vsel %vm366_vm4, %v363_v45, %v365_v44  ;;  %vm487_vm4 = vcmask 973824  }
  0xa1   : > { %v6717_v46 = vpop.permute.xlu1 %6167  ;;  %v612_v45 = vsel %vm10136_vm2, %v603_v11, %v368_v33 }
  0xa2   : > { %v6170_v31 = vunpack.i.h.bf16 %v6717_v46  ;;  %v6169_v18 = vunpack.i.l.bf16 %v6717_v46  ;;  %v616_v46 = vsel %vm10136_vm2, %v604_v36, %v369_v34  ;;  %vm713_vm2 = vcmask 1046528  }
  0xa3   : > { %v6719_v47 = vpop.permute.xlu0 %6162 }
  0xa4   : > { %v6165_v24 = vunpack.i.h.bf16 %v6719_v47  ;;  %v6164_v25 = vunpack.i.l.bf16 %v6719_v47  ;;  %v385_v47 = vsel %vm382_vm6, %v6169_v18, %v6170_v31 }
  0xa5   : > { %v6721_v48 = vpop.permute.xlu1 %395  ;;  %v623_v28 = vsel %vm6800_vm0, %v616_v46, %v385_v47 }
  0xa6   : > { %v383_v19 = vsel %vm382_vm6, %v6164_v25, %v6165_v24  ;;  %v384_v40 = vsel %vm382_vm6, %v6165_v24, %v6169_v18  ;;  %vm6834_vm6 = vmand %vm637_vm12, %vm638_vm13  ;;  %vm695_vm13 = vsmask.f32 5376 }
  0xa7   : > { %v6723_v14 = vpop.permute.xlu0 %393  ;;  %v621_v43 = vsel %vm6800_vm0, %v608_v39, %v383_v19 }
  0xa8   : > { %v402_v13 = vsel %vm401_vm7, %v6723_v14, %v6721_v48 }
  0xa9   : > { %v6725_v49 = vpop.permute.xlu1 %399  ;;  %v627_v20 = vsel %vm618_vm8, %v621_v43, %v402_v13 }
  0xab   : > { %v6727_v50 = vpop.permute.xlu0 %397 }
  0xac   : > { %v403_v14 = vsel %vm401_vm7, %v6721_v48, %v6727_v50  ;;  %v404_v22 = vsel %vm401_vm7, %v6727_v50, %v6725_v49  ;;  %vm522_vm7 = vcmask 957440  }
  0xad   : > { %v6729_v51 = vpop.permute.xlu1 %6177 }
  0xae   : > { %v6180_v42 = vunpack.i.h.bf16 %v6729_v51  ;;  %v6179_v12 = vunpack.i.l.bf16 %v6729_v51  ;;  %v622_v51 = vsel %vm6800_vm0, %v612_v45, %v384_v40  ;;  %vm714_vm0 = vsmask.f32 6400 }
  0xaf   : > { %v6731_v52 = vpop.permute.xlu0 %6172  ;;  %v631_v29 = vsel %vm618_vm8, %v622_v51, %v403_v14 }
  0xb0   : > { %v6175_v16 = vunpack.i.h.bf16 %v6731_v52  ;;  %v6174_v17 = vunpack.i.l.bf16 %v6731_v52  ;;  %v420_v23 = vsel %vm417_vm10, %v6179_v12, %v6180_v42 }
  0xb1   : > { %v6733_v53 = vpop.permute.xlu1 %430 }
  0xb2   : > { %v418_v52 = vsel %vm417_vm10, %v6174_v17, %v6175_v16  ;;  %v419_v48 = vsel %vm417_vm10, %v6175_v16, %v6179_v12  ;;  %vm694_vm10 = vcmask 1045504  }
  0xb3   : > { %v6735_v54 = vpop.permute.xlu0 %428  ;;  %v640_v25 = vsel %vm6834_vm6, %v627_v20, %v418_v52 }
  0xb5   : > { %v6737_v55 = vpop.permute.xlu1 %434 }
  0xb7   : > { %v6739_v56 = vpop.permute.xlu0 %432 }
  0xb8   : > { %v438_v30 = vsel %vm436_vm11, %v6733_v53, %v6739_v56  ;;  %v439_v33 = vsel %vm436_vm11, %v6739_v56, %v6737_v55 }
  0xb9   : > { %v6741_v57 = vpop.permute.xlu1 %6187 }
  0xba   : > { %v6190_v27 = vunpack.i.h.bf16 %v6741_v57  ;;  %v6189_v49 = vunpack.i.l.bf16 %v6741_v57 }
  0xbb   : > { %v6743_v58 = vpop.permute.xlu0 %6182 }
  0xbc   : > { %v6185_v8 = vunpack.i.h.bf16 %v6743_v58  ;;  %v6184_v9 = vunpack.i.l.bf16 %v6743_v58  ;;  %v437_v58 = vsel %vm436_vm11, %v6735_v54, %v6733_v53  ;;  %v635_v54 = vsel %vm618_vm8, %v623_v28, %v404_v22  ;;  %vm6870_vm8 = vmand %vm656_vm15, %vm657_vm3 }
  0xbd   : > { %v6745_v59 = vpop.permute.xlu1 %465  ;;  %v646_v16 = vsel %vm637_vm12, %v640_v25, %v437_v58  ;;  %v642_v17 = vsel %vm6834_vm6, %v635_v54, %v420_v23  ;;  %v641_v53 = vsel %vm6834_vm6, %v631_v29, %v419_v48  ;;  %v455_v11 = vsel %vm452_vm14, %v6189_v49, %v6190_v27 }
  0xbe   : > { %v453_v31 = vsel %vm452_vm14, %v6184_v9, %v6185_v8  ;;  %v650_v34 = vsel %vm637_vm12, %v641_v53, %v438_v30  ;;  %vm557_vm6 = vcmask 941056   ;;  %vm10291_vm11 = vcmask 982016  }
  0xbf   : > { %v6747_v60 = vpop.permute.xlu0 %463  ;;  %v659_v56 = vsel %vm6870_vm8, %v646_v16, %v453_v31  ;;  %vm10293_vm3 = vmmov %vm10291_vm11 }
  0xc0   : > { %v472_v55 = vsel %vm10291_vm11, %v6747_v60, %v6745_v59  ;;  %v654_v60 = vsel %vm637_vm12, %v642_v17, %v439_v33  ;;  %vm6902_vm12 = vmand %vm675_vm5, %vm676_vm9 }
  0xc1   : > { %v6749_v61 = vpop.permute.xlu1 %469  ;;  %v661_v47 = vsel %vm6870_vm8, %v654_v60, %v455_v11 }
  0xc3   : > { %v6751_v62 = vpop.permute.xlu0 %467 }
  0xc4   : > { %v474_v46 = vsel %vm10293_vm3, %v6751_v62, %v6749_v61  ;;  %vm592_vm3 = vcmask 924672  }
  0xc5   : > { %v6753_v63 = vpop.permute.xlu1 %6197  ;;  %v673_v20 = vsel %vm656_vm15, %v661_v47, %v474_v46 }
  0xc6   : > { %v6200_v41 = vunpack.i.h.bf16 %v6753_v63  ;;  %v6199_v42 = vunpack.i.l.bf16 %v6753_v63  ;;  %v665_v63 = vsel %vm656_vm15, %v659_v56, %v472_v55 }
  0xc7   : > { %v6755_v6 = vpop.permute.xlu0 %6192 }
  0xc8   : > { %v6195_v57 = vunpack.i.h.bf16 %v6755_v6  ;;  %v6194_v18 = vunpack.i.l.bf16 %v6755_v6  ;;  %v454_v6 = vsel %vm452_vm14, %v6185_v8, %v6189_v49  ;;  %vm10292_vm14 = vmmov %vm10291_vm11  ;;  %vm576_vm11 = vcmask 932864  }
  0xc9   : > { %v6757_v7 = vpop.permute.xlu1 %500  ;;  %v473_v40 = vsel %vm10292_vm14, %v6745_v59, %v6751_v62  ;;  %v660_v59 = vsel %vm6870_vm8, %v650_v34, %v454_v6  ;;  %vm732_vm14 = vcmask 1047552   ;;  %v490_v22 = vsel %vm487_vm4, %v6199_v42, %v6200_v41 }
  0xca   : > { %v488_v12 = vsel %vm487_vm4, %v6194_v18, %v6195_v57  ;;  %v669_v52 = vsel %vm656_vm15, %v660_v59, %v473_v40  ;;  %vm6930_vm15 = vmand %vm694_vm10, %vm695_vm13  ;;  %vm982_vm8 = vcmask 15360  }
  0xcb   : > { %v6759_v10 = vpop.permute.xlu0 %498  ;;  %v678_v51 = vsel %vm6902_vm12, %v665_v63, %v488_v12  ;;  %vm6953_vm13 = vmand %vm713_vm2, %vm714_vm0  ;;  %vm10305_vm0 = vcmask 1040384  }
  0xcc   : > { %v507_v62 = vsel %vm506_vm1, %v6759_v10, %v6757_v7 }
  0xcd   : > { %v6761_v21 = vpop.permute.xlu1 %504  ;;  %v684_v49 = vsel %vm675_vm5, %v678_v51, %v507_v62 }
  0xcf   : > { %v6771_v26 = vpop.permute.xlu0 %502 }
  0xd0   : > { %v508_v23 = vsel %vm506_vm1, %v6757_v7, %v6771_v26 }
  0xd1   : > { %v6780_v32 = vpop.permute.xlu1 %6207 }
  0xd2   : > { %v6210_v8 = vunpack.i.h.bf16 %v6780_v32  ;;  %v6209_v9 = vunpack.i.l.bf16 %v6780_v32  ;;  %v509_v32 = vsel %vm506_vm1, %v6771_v26, %v6761_v21 }
  0xd3   : > { %v6794_v38 = vpop.permute.xlu0 %6202 }
  0xd4   : > { %v6205_v13 = vunpack.i.h.bf16 %v6794_v38  ;;  %v6204_v43 = vunpack.i.l.bf16 %v6794_v38  ;;  %v489_v38 = vsel %vm487_vm4, %v6195_v57, %v6199_v42  ;;  %v525_v54 = vsel %vm522_vm7, %v6209_v9, %v6210_v8 }
  0xd5   : > { %v6811_v44 = vpop.permute.xlu1 %535  ;;  %v679_v28 = vsel %vm6902_vm12, %v669_v52, %v489_v38  ;;  %vm10298_vm4 = vcmask 949248   ;;  %v680_v57 = vsel %vm6902_vm12, %v673_v20, %v490_v22 }
  0xd6   : > { %v523_v48 = vsel %vm522_vm7, %v6204_v43, %v6205_v13  ;;  %v524_v7 = vsel %vm522_vm7, %v6205_v13, %v6209_v9  ;;  %vm10299_vm1 = vmmov %vm10298_vm4  ;;  %v688_v18 = vsel %vm675_vm5, %v679_v28, %v508_v23  ;;  %vm733_vm7 = vsmask.f32 7424 }
  0xd7   : > { %v6824_v15 = vpop.permute.xlu0 %533  ;;  %v697_v21 = vsel %vm6930_vm15, %v684_v49, %v523_v48  ;;  %vm10300_vm9 = vmmov %vm10299_vm1  ;;  %v692_v53 = vsel %vm675_vm5, %v680_v57, %v509_v32  ;;  %v762_v23 = vsel %vm10305_vm0, 65535, %v6328_v37 }
  0xd8   : > { %v542_v31 = vsel %vm10298_vm4, %v6824_v15, %v6811_v44  ;;  %v698_v15 = vsel %vm6930_vm15, %v688_v18, %v524_v7  ;;  %vm6965_vm5 = vmand %vm732_vm14, %vm733_vm7 }
  0xd9   : > { %v6845_v50 = vpop.permute.xlu1 %539  ;;  %v703_v11 = vsel %vm694_vm10, %v697_v21, %v542_v31 }
  0xdb   : > { %v538_v19 = vpop.permute.xlu0 %537 }
  0xdc   : > { %v543_v26 = vsel %vm10299_vm1, %v6811_v44, %v538_v19  ;;  %v544_v16 = vsel %vm10300_vm9, %v538_v19, %v6845_v50  ;;  %v699_v50 = vsel %vm6930_vm15, %v692_v53, %v525_v54 }
  0xdd   : > { %v6874_v39 = vpop.permute.xlu1 %6217  ;;  %v707_v19 = vsel %vm694_vm10, %v698_v15, %v543_v26 }
  0xde   : > { %v6220_v10 = vunpack.i.h.bf16 %v6874_v39  ;;  %v6219_v58 = vunpack.i.l.bf16 %v6874_v39  ;;  %v711_v39 = vsel %vm694_vm10, %v699_v50, %v544_v16  ;;  %vm746_vm10 = vcmask 916480  }
  0xdf   : > { %v6213_v45 = vpop.permute.xlu0 %6212 }
  0xe0   : > { %v6215_v25 = vunpack.i.h.bf16 %v6213_v45  ;;  %v6214_v27 = vunpack.i.l.bf16 %v6213_v45  ;;  %v560_v33 = vsel %vm557_vm6, %v6219_v58, %v6220_v10 }
  0xe1   : > { %v571_v61 = vpop.permute.xlu1 %570  ;;  %v718_v43 = vsel %vm6953_vm13, %v711_v39, %v560_v33 }
  0xe2   : > { %v558_v34 = vsel %vm557_vm6, %v6214_v27, %v6215_v25  ;;  %v559_v41 = vsel %vm557_vm6, %v6215_v25, %v6219_v58  ;;  %vm3421_vm6 = vcmask 23552  }
  0xe3   : > { %v569_v24 = vpop.permute.xlu0 %568  ;;  %v716_v45 = vsel %vm6953_vm13, %v703_v11, %v558_v34  ;;  %v717_v38 = vsel %vm6953_vm13, %v707_v19, %v559_v41 }
  0xe4   : > { %v577_v42 = vsel %vm576_vm11, %v569_v24, %v571_v61 }
  0xe5   : > { %v575_v30 = vpop.permute.xlu1 %574  ;;  %v722_v51 = vsel %vm713_vm2, %v716_v45, %v577_v42 }
  0xe7   : > { %v573_v17 = vpop.permute.xlu0 %572 }
  0xe8   : > { %v579_v6 = vsel %vm576_vm11, %v573_v17, %v575_v30  ;;  %v578_v12 = vsel %vm576_vm11, %v571_v61, %v573_v17  ;;  %v6382_v17 = vmov 1983009808   ;;  %vm1116_vm11 = vcmask 7168  }
  0xe9   : > { %v6228_v36 = vpop.permute.xlu1 %6227  ;;  %v730_v63 = vsel %vm713_vm2, %v718_v43, %v579_v6  ;;  %v726_v61 = vsel %vm713_vm2, %v717_v38, %v578_v12  ;;  %vm757_vm2 = vcmask 138240   ;;  %v1248_v53 = vunpack.c.l.s4 %v6382_v17 }
  0xea   : > { %v6230_v55 = vunpack.i.h.bf16 %v6228_v36  ;;  %v6229_v56 = vunpack.i.l.bf16 %v6228_v36  ;;  %v6389_v12 = vmov 1934713408  }
  0xeb   : > { %v6223_v13 = vpop.permute.xlu0 %6222  ;;  %v1249_v44 = vunpack.c.0.s8 %v1248_v53 }
  0xec   : > { %v6225_v60 = vunpack.i.h.bf16 %v6223_v13  ;;  %v6224_v46 = vunpack.i.l.bf16 %v6223_v13  ;;  %v595_v59 = vsel %vm592_vm3, %v6229_v56, %v6230_v55  ;;  %v1312_v13 = vunpack.c.l.s4 %v6389_v12 }
  0xed   : > { %v737_v47 = vsel %vm6965_vm5, %v730_v63, %v595_v59  ;;  %v741_v52 = vpop.permute.xlu1 %740  ;;  %v7091_v50 = vsub.s32 %v1249_v44, %v6544_v1 }
  0xee   : > { %5957 = vmatpush3.bf16.msra.mxu1 %v737_v47  ;;  %v594_v14 = vsel %vm592_vm3, %v6225_v60, %v6229_v56  ;;  %v593_v62 = vsel %vm592_vm3, %v6224_v46, %v6225_v60 }
  0xef   : > { %v739_v8 = vpop.permute.xlu0 %738  ;;  %v736_v9 = vsel %vm6965_vm5, %v726_v61, %v594_v14  ;;  %v735_v20 = vsel %vm6965_vm5, %v722_v51, %v593_v62  ;;  %5958 = vmatprep.subr.bf16.mxu1 %v6326_v35  ;;  %v750_v35 = vld [vmem:[%s10126_s1] sm:$0xf] }
  0xf0   : > { %772 = vmatprep.subr.bf16.mxu0 %v736_v9  ;;  %v747_v48 = vsel %vm746_vm10, %v739_v8, %v741_v52 }
  0xf1   : > { %773 = vmatpush1.bf16.msra.mxu0 %v735_v20  ;;  %v745_v22 = vpop.permute.xlu1 %744  ;;  %v764_v49 = vand.u32 %v762_v23, %v747_v48 }
  0xf3   : > { %v743_v24 = vpop.permute.xlu0 %742 }
  0xf4   : > { %v748_v10 = vsel %vm746_vm10, %v741_v52, %v743_v24  ;;  %v749_v58 = vsel %vm746_vm10, %v743_v24, %v745_v22  ;;  %v1313_v52 = vunpack.c.0.s8 %v1312_v13 }
  0xf5   : > { %v767_v25 = vand.u32 %v762_v23, %v748_v10  ;;  %v770_v27 = vand.u32 %v762_v23, %v749_v58 }
  0xf6   : > { %v7128_v48 = vsub.s32 %v1313_v52, %v6544_v1 }
  0xf7   : > { %774 = vmatprep.subr.bf16.mxu0 %v767_v25  ;;  %5959 = vmatpush3.bf16.msra.mxu1 %v770_v27 }
  0xf8   : > { %775 = vmatpush1.bf16.msra.mxu0 %v764_v49 }
  0xfa   : > { %5961 = vmatmul.mubr.msk.bf16.vlgmr.msra.gmra.mrb[0].mxu1 %vm757_vm2, %v750_v35 }
  0xfb   : > { %5947 = vmatmul.mubr.msk.bf16.vlgmr.msra.gmra.mrb[0].mxu0 %vm757_vm2, %v750_v35 }
 0x104   : > { %v6996_v32 = vpop.permute.xlu0 %754 }
 0x1cd   : > { %v847_v37 = vpop.f32.mrb[0].mxu1 }
 0x1ce   : > { %v6999_v28 = vadd.f32 %v847_v37, %v6996_v32  ;;  %v7001_v7 = vpop.f32.mrb[0].mxu0  ;;  %v5962_v29 = vpop.f32.mrb[1].mxu1 }
 0x1cf   : > { %v7003_v30 = vpop.f32.mrb[1].mxu0  ;;  %v850_v54 = vpop.f32.mrb[2].mxu1  ;;  %v7055_v57 = vadd.f32 %v7001_v7, %v6996_v32 }
 0x1d0   : > { %v5963_v31 = vpop.f32.mrb[3].mxu1  ;;  %1119 = vrot.lane.b32.xlu1 %v6999_v28, %s6313_s18  ;;  %1114 = vrot.lane.b32.xlu0 %v6999_v28, %s10137_s4  ;;  %v810_v21 = vpop.f32.mrb[2].mxu0  ;;  %s6334_s18 = smov 111   ;;  %s6335_s4 = smov 102  }
 0x1d1   : > { %v811_v26 = vpop.f32.mrb[3].mxu0  ;;  %10306 = vst [vmem:[#allocation12_spill] sm:$0xff] %v7055_v57 }
 0x1d4   : > { %1125 = vrot.lane.b32.xlu1 %v6999_v28, %s6320_s29  ;;  %1122 = vrot.lane.b32.xlu0 %v6999_v28, %s6317_s22  ;;  %s6337_s29 = smov 96   ;;  %s6338_s22 = smov 99  }
 0x1d8   : > { %1131 = vrot.lane.b32.xlu1 %v6999_v28, %s6327_s16  ;;  %1128 = vrot.lane.b32.xlu0 %v6999_v28, %s6323_s13  ;;  %s6339_s16 = smov 90   ;;  %s6340_s13 = smov 93  }
 0x1dc   : > { %1137 = vrot.lane.b32.xlu1 %v6999_v28, %s6333_s10  ;;  %1134 = vrot.lane.b32.xlu0 %v6999_v28, %s6334_s18  ;;  %s6341_s10 = smov 84   ;;  %s6342_s18 = smov 87  }
 0x1e0   : > { %1143 = vrot.lane.b32.xlu1 %v6999_v28, %s6335_s4  ;;  %1140 = vrot.lane.b32.xlu0 %v6999_v28, %s6336_s15  ;;  %s6343_s4 = smov 78   ;;  %s6344_s15 = smov 81  }
 0x1e4   : > { %1149 = vrot.lane.b32.xlu1 %v6999_v28, %s6337_s29  ;;  %1146 = vrot.lane.b32.xlu0 %v6999_v28, %s6338_s22  ;;  %s6345_s29 = smov 72   ;;  %s6346_s22 = smov 75  }
 0x1e8   : > { %1155 = vrot.lane.b32.xlu1 %v6999_v28, %s6339_s16  ;;  %1152 = vrot.lane.b32.xlu0 %v6999_v28, %s6340_s13  ;;  %s6347_s16 = smov 66   ;;  %s6348_s13 = smov 69  }
 0x1ec   : > { %1161 = vrot.lane.b32.xlu1 %v6999_v28, %s6341_s10  ;;  %1158 = vrot.lane.b32.xlu0 %v6999_v28, %s6342_s18  ;;  %s6349_s10 = smov 60   ;;  %s6350_s18 = smov 63  }
 0x1f0   : > { %1167 = vrot.lane.b32.xlu1 %v6999_v28, %s6343_s4  ;;  %1164 = vrot.lane.b32.xlu0 %v6999_v28, %s6344_s15  ;;  %s6351_s4 = smov 54   ;;  %s6352_s15 = smov 57  }
 0x1f4   : > { %1173 = vrot.lane.b32.xlu1 %v6999_v28, %s6345_s29  ;;  %1170 = vrot.lane.b32.xlu0 %v6999_v28, %s6346_s22  ;;  %s6353_s29 = smov 48   ;;  %s6354_s22 = smov 51  }
 0x1f8   : > { %1179 = vrot.lane.b32.xlu1 %v6999_v28, %s6347_s16  ;;  %1176 = vrot.lane.b32.xlu0 %v6999_v28, %s6348_s13  ;;  %s6355_s16 = smov 42   ;;  %s6356_s13 = smov 45  }
 0x1fc   : > { %1185 = vrot.lane.b32.xlu1 %v6999_v28, %s6349_s10  ;;  %1182 = vrot.lane.b32.xlu0 %v6999_v28, %s6350_s18  ;;  %s6357_s10 = smov 36   ;;  %s6358_s18 = smov 39  }
 0x200   : > { %1191 = vrot.lane.b32.xlu1 %v6999_v28, %s6351_s4  ;;  %1188 = vrot.lane.b32.xlu0 %v6999_v28, %s6352_s15  ;;  %s6359_s4 = smov 30   ;;  %s6360_s15 = smov 33  }
 0x204   : > { %1197 = vrot.lane.b32.xlu1 %v6999_v28, %s6353_s29  ;;  %1194 = vrot.lane.b32.xlu0 %v6999_v28, %s6354_s22  ;;  %s6361_s29 = smov 24   ;;  %s6362_s22 = smov 27  }
 0x208   : > { %1203 = vrot.lane.b32.xlu1 %v6999_v28, %s6355_s16  ;;  %1200 = vrot.lane.b32.xlu0 %v6999_v28, %s6356_s13  ;;  %s6363_s16 = smov 18   ;;  %s6364_s13 = smov 21  }
 0x20c   : > { %1209 = vrot.lane.b32.xlu1 %v6999_v28, %s6357_s10  ;;  %1206 = vrot.lane.b32.xlu0 %v6999_v28, %s6358_s18  ;;  %s6365_s10 = smov 12   ;;  %s6366_s18 = smov 15  }
 0x210   : > { %1215 = vrot.lane.b32.xlu1 %v6999_v28, %s6359_s4  ;;  %1212 = vrot.lane.b32.xlu0 %v6999_v28, %s6360_s15  ;;  %s6367_s4 = smov 6   ;;  %s6368_s15 = smov 9  }
 0x214   : > { %1221 = vrot.lane.b32.xlu1 %v6999_v28, %s6361_s29  ;;  %1218 = vrot.lane.b32.xlu0 %v6999_v28, %s6362_s22  ;;  %s6369_s29 = smov 3   ;;  %s6370_s22 = smov 107  }
 0x218   : > { %1227 = vrot.lane.b32.xlu1 %v6999_v28, %s6363_s16  ;;  %1224 = vrot.lane.b32.xlu0 %v6999_v28, %s6364_s13  ;;  %s6371_s16 = smov 110   ;;  %s6372_s13 = smov 101  }
 0x21c   : > { %1233 = vrot.lane.b32.xlu1 %v6999_v28, %s6365_s10  ;;  %1230 = vrot.lane.b32.xlu0 %v6999_v28, %s6366_s18  ;;  %s6378_s10 = smov 83   ;;  %s6379_s18 = smov 86  }
 0x220   : > { %1239 = vrot.lane.b32.xlu1 %v6999_v28, %s6367_s4  ;;  %1236 = vrot.lane.b32.xlu0 %v6999_v28, %s6368_s15  ;;  %s6380_s4 = smov 77   ;;  %s6381_s15 = smov 80  }
 0x224   : > { %1242 = vrot.lane.b32.xlu0 %v6999_v28, %s6369_s29  ;;  %854 = vrot.lane.b32.xlu1 %v7055_v57, %s6315_s20  ;;  %s6373_s20 = smov 104   ;;  %s6383_s29 = smov 71  }
 0x228   : > { %860 = vrot.lane.b32.xlu0 %v7055_v57, %s6321_s8  ;;  %857 = vrot.lane.b32.xlu1 %v7055_v57, %s6318_s23  ;;  %s6374_s8 = smov 95   ;;  %s6375_s23 = smov 98  }
 0x22c   : > { %866 = vrot.lane.b32.xlu0 %v7055_v57, %s6329_s17  ;;  %863 = vrot.lane.b32.xlu1 %v7055_v57, %s6324_s14  ;;  %s6376_s17 = smov 89   ;;  %s6377_s14 = smov 92  }
 0x230   : > { %872 = vrot.lane.b32.xlu0 %v7055_v57, %s6370_s22  ;;  %869 = vrot.lane.b32.xlu1 %v7055_v57, %s6371_s16  ;;  %s6384_s22 = smov 74   ;;  %s6385_s16 = smov 65  }
 0x234   : > { %878 = vrot.lane.b32.xlu0 %v7055_v57, %s6372_s13  ;;  %875 = vrot.lane.b32.xlu1 %v7055_v57, %s6373_s20  ;;  %s6386_s13 = smov 68   ;;  %s6387_s20 = smov 59  }
 0x238   : > { %884 = vrot.lane.b32.xlu0 %v7055_v57, %s6374_s8  ;;  %881 = vrot.lane.b32.xlu1 %v7055_v57, %s6375_s23  ;;  %s6388_s8 = smov 62   ;;  %s6390_s23 = smov 53  }
 0x23c   : > { %890 = vrot.lane.b32.xlu0 %v7055_v57, %s6376_s17  ;;  %887 = vrot.lane.b32.xlu1 %v7055_v57, %s6377_s14  ;;  %s6391_s17 = smov 56   ;;  %s6392_s14 = smov 47  }
 0x240   : > { %896 = vrot.lane.b32.xlu0 %v7055_v57, %s6378_s10  ;;  %893 = vrot.lane.b32.xlu1 %v7055_v57, %s6379_s18  ;;  %s6393_s10 = smov 50   ;;  %s6394_s18 = smov 41  }
 0x242   : > { %v7078_v18 = vpop.permute.xlu1 %1119  ;;  %v7080_v16 = vpop.permute.xlu0 %1114 }
 0x243   : > { %10307 = vst [vmem:[#allocation13_spill] sm:$0xff] %v7078_v18  ;;  %10308 = vst [vmem:[#allocation14_spill] sm:$0xff] %v7080_v16 }
 0x244   : > { %902 = vrot.lane.b32.xlu0 %v7055_v57, %s6380_s4  ;;  %899 = vrot.lane.b32.xlu1 %v7055_v57, %s6381_s15  ;;  %s6395_s4 = smov 44   ;;  %s6396_s15 = smov 35  }
 0x246   : > { %v1126_v15 = vpop.permute.xlu1 %1125  ;;  %v7084_v33 = vpop.permute.xlu0 %1122 }
 0x247   : > { %10309 = vst [vmem:[#allocation15_spill] sm:$0xff] %v7084_v33 }
 0x248   : > { %908 = vrot.lane.b32.xlu0 %v7055_v57, %s6383_s29  ;;  %905 = vrot.lane.b32.xlu1 %v7055_v57, %s6384_s22  ;;  %s6397_s29 = smov 38   ;;  %s6398_s22 = smov 29  }
 0x24a   : > { %v1132_v34 = vpop.permute.xlu1 %1131  ;;  %v1129_v11 = vpop.permute.xlu0 %1128 }
 0x24b   : > { %v2742_v19 = vcombine.high %v1126_v15, %v1132_v34  ;;  %v2741_v45 = vcombine.low %v1126_v15, %v1132_v34 }
 0x24c   : > { %914 = vrot.lane.b32.xlu0 %v7055_v57, %s6385_s16  ;;  %911 = vrot.lane.b32.xlu1 %v7055_v57, %s6386_s13  ;;  %s6399_s16 = smov 32   ;;  %s6400_s13 = smov 23  }
 0x24d   : > { %v7096_v55 = vrot.slane %v2742_v19, %v7091_v50  ;;  %v7109_v61 = vrot.slane %v2741_v45, %v7091_v50 }
 0x24e   : > { %v1138_v6 = vpop.permute.xlu1 %1137  ;;  %v1135_v36 = vpop.permute.xlu0 %1134 }
 0x24f   : > { %v2758_v39 = vcombine.high %v1129_v11, %v1135_v36  ;;  %10310 = vst [vmem:[#allocation16_spill] sm:$0xff] %v7096_v55  ;;  %v2757_v40 = vcombine.low %v1129_v11, %v1135_v36 }
 0x250   : > { %920 = vrot.lane.b32.xlu0 %v7055_v57, %s6387_s20  ;;  %917 = vrot.lane.b32.xlu1 %v7055_v57, %s6388_s8  ;;  %s6401_s20 = smov 26   ;;  %s6402_s8 = smov 17  }
 0x251   : > { %v7099_v56 = vrot.slane %v2758_v39, %v7091_v50  ;;  %v7106_v59 = vrot.slane %v2757_v40, %v7091_v50 }
 0x252   : > { %v1144_v41 = vpop.permute.xlu1 %1143  ;;  %v1141_v42 = vpop.permute.xlu0 %1140 }
 0x253   : > { %10311 = vst [vmem:[#allocation17_spill] sm:$0xff] %v7099_v56  ;;  %v2822_v43 = vcombine.high %v7096_v55, %v7099_v56  ;;  %v2773_v60 = vcombine.low %v1138_v6, %v1144_v41  ;;  %v2774_v46 = vcombine.high %v1138_v6, %v1144_v41  ;;  %v2806_v20 = vcombine.high %v7109_v61, %v7106_v59 }
 0x254   : > { %926 = vrot.lane.b32.xlu0 %v7055_v57, %s6390_s23  ;;  %923 = vrot.lane.b32.xlu1 %v7055_v57, %s6391_s17  ;;  %s6403_s23 = smov 20   ;;  %s6404_s17 = smov 11  }
 0x255   : > { %v7114_v62 = vrot.slane %v2773_v60, %v7091_v50  ;;  %v7117_v51 = vrot.slane %v2774_v46, %v7091_v50  ;;  %v7140_v35 = vrot.slane %v2806_v20, %v7128_v48  ;;  %v7156_v17 = vrot.slane %v2822_v43, %v7128_v48 }
 0x256   : > { %v1150_v63 = vpop.permute.xlu1 %1149  ;;  %v1147_v47 = vpop.permute.xlu0 %1146 }
 0x257   : > { %v2789_v38 = vcombine.low %v1141_v42, %v1147_v47  ;;  %v2790_v14 = vcombine.high %v1141_v42, %v1147_v47  ;;  %10312 = vst [vmem:[#allocation18_spill] sm:$0xff] %v7117_v51  ;;  %10315 = vst [vmem:[#allocation21_spill] sm:$0xff] %v7140_v35 }
 0x258   : > { %932 = vrot.lane.b32.xlu0 %v7055_v57, %s6392_s14  ;;  %929 = vrot.lane.b32.xlu1 %v7055_v57, %s6393_s10  ;;  %10319 = vst [vmem:[#allocation25_spill] sm:$0xff] %v7156_v17  ;;  %s6405_s14 = smov 14   ;;  %s6406_s10 = smov 5  }
 0x259   : > { %v7120_v8 = vrot.slane %v2789_v38, %v7091_v50  ;;  %v7123_v9 = vrot.slane %v2790_v14, %v7091_v50 }
 0x25a   : > { %v1156_v22 = vpop.permute.xlu1 %1155  ;;  %v1153_v23 = vpop.permute.xlu0 %1152 }
 0x25b   : > { %10313 = vst [vmem:[#allocation19_spill] sm:$0xff] %v7123_v9  ;;  %v2838_v24 = vcombine.high %v7114_v62, %v7120_v8  ;;  %v2854_v10 = vcombine.high %v7117_v51, %v7123_v9  ;;  %v2878_v58 = vcombine.high %v1150_v63, %v1156_v22  ;;  %v2877_v15 = vcombine.low %v1150_v63, %v1156_v22 }
 0x25c   : > { %938 = vrot.lane.b32.xlu0 %v7055_v57, %s6394_s18  ;;  %935 = vrot.lane.b32.xlu1 %v7055_v57, %s6395_s4  ;;  %s6407_s18 = smov 8   ;;  %s6408_s4 = smov 2  }
 0x25d   : > { %v7137_v25 = vrot.slane %v2838_v24, %v7128_v48  ;;  %v7147_v7 = vrot.slane %v2854_v10, %v7128_v48  ;;  %v7150_v29 = vrot.slane %v2878_v58, %v7091_v50  ;;  %v7170_v42 = vrot.slane %v2877_v15, %v7091_v50 }
 0x25e   : > { %v1162_v27 = vpop.permute.xlu1 %1161  ;;  %v1159_v49 = vpop.permute.xlu0 %1158 }
 0x25f   : > { %10314 = vst [vmem:[#allocation20_spill] sm:$0xff] %v7137_v25  ;;  %v2894_v37 = vcombine.high %v1153_v23, %v1159_v49  ;;  %10316 = vst [vmem:[#allocation22_spill] sm:$0xff] %v7147_v7  ;;  %v2893_v31 = vcombine.low %v1153_v23, %v1159_v49 }
 0x260   : > { %944 = vrot.lane.b32.xlu0 %v7055_v57, %s6396_s15  ;;  %941 = vrot.lane.b32.xlu1 %v7055_v57, %s6397_s29  ;;  %10317 = vst [vmem:[#allocation23_spill] sm:$0xff] %v7150_v29  ;;  %s10332_s15 = smov 118   ;;  %s10333_s29 = smov 121  }
 0x261   : > { %v7153_v54 = vrot.slane %v2894_v37, %v7091_v50  ;;  %v7165_v19 = vrot.slane %v2893_v31, %v7091_v50 }
 0x262   : > { %v1168_v21 = vpop.permute.xlu1 %1167  ;;  %v1165_v26 = vpop.permute.xlu0 %1164 }
 0x263   : > { %10318 = vst [vmem:[#allocation24_spill] sm:$0xff] %v7153_v54  ;;  %v2958_v53 = vcombine.high %v7150_v29, %v7153_v54  ;;  %v2909_v34 = vcombine.low %v1162_v27, %v1168_v21  ;;  %v2910_v11 = vcombine.high %v1162_v27, %v1168_v21  ;;  %v2942_v60 = vcombine.high %v7170_v42, %v7165_v19 }
 0x264   : > { %950 = vrot.lane.b32.xlu0 %v7055_v57, %s6398_s22  ;;  %947 = vrot.lane.b32.xlu1 %v7055_v57, %s6399_s16  ;;  %s6409_s22 = smov 106   ;;  %s6410_s16 = smov 109  }
 0x265   : > { %v7175_v12 = vrot.slane %v2909_v34, %v7091_v50  ;;  %v7178_v13 = vrot.slane %v2910_v11, %v7091_v50  ;;  %v7198_v23 = vrot.slane %v2942_v60, %v7128_v48 }
 0x266   : > { %v1174_v6 = vpop.permute.xlu1 %1173  ;;  %v1171_v36 = vpop.permute.xlu0 %1170 }
 0x267   : > { %v2925_v40 = vcombine.low %v1165_v26, %v1171_v36  ;;  %v2926_v41 = vcombine.high %v1165_v26, %v1171_v36  ;;  %10320 = vst [vmem:[#allocation26_spill] sm:$0xff] %v7178_v13  ;;  %10323 = vst [vmem:[#allocation29_spill] sm:$0xff] %v7198_v23  ;;  %v7214_v26 = vrot.slane %v2958_v53, %v7128_v48 }
 0x268   : > { %956 = vrot.lane.b32.xlu0 %v7055_v57, %s6400_s13  ;;  %953 = vrot.lane.b32.xlu1 %v7055_v57, %s6401_s20  ;;  %s6411_s13 = smov 100   ;;  %s6412_s20 = smov 103  }
 0x269   : > { %v7181_v43 = vrot.slane %v2925_v40, %v7091_v50  ;;  %v7184_v45 = vrot.slane %v2926_v41, %v7091_v50  ;;  %10327 = vst [vmem:[#allocation33_spill] sm:$0xff] %v7214_v26  ;;  %v7224_v41 = vadd.f32 %v7003_v30, %v6996_v32 }
 0x26a   : > { %v1180_v46 = vpop.permute.xlu1 %1179  ;;  %v1177_v63 = vpop.permute.xlu0 %1176 }
 0x26b   : > { %10321 = vst [vmem:[#allocation27_spill] sm:$0xff] %v7184_v45  ;;  %v2974_v47 = vcombine.high %v7175_v12, %v7181_v43  ;;  %v2990_v52 = vcombine.high %v7178_v13, %v7184_v45  ;;  %v3014_v38 = vcombine.high %v1174_v6, %v1180_v46  ;;  %v3013_v34 = vcombine.low %v1174_v6, %v1180_v46 }
 0x26c   : > { %962 = vrot.lane.b32.xlu0 %v7055_v57, %s6402_s8  ;;  %959 = vrot.lane.b32.xlu1 %v7055_v57, %s6403_s23  ;;  %s6413_s8 = smov 94   ;;  %s6414_s23 = smov 97  }
 0x26d   : > { %v7195_v14 = vrot.slane %v2974_v47, %v7128_v48  ;;  %v7205_v58 = vrot.slane %v2990_v52, %v7128_v48  ;;  %v7208_v27 = vrot.slane %v3014_v38, %v7091_v50  ;;  %v7232_v52 = vrot.slane %v3013_v34, %v7091_v50 }
 0x26e   : > { %v1186_v20 = vpop.permute.xlu1 %1185  ;;  %v1183_v22 = vpop.permute.xlu0 %1182 }
 0x26f   : > { %10322 = vst [vmem:[#allocation28_spill] sm:$0xff] %v7195_v14  ;;  %v3030_v24 = vcombine.high %v1177_v63, %v1183_v22  ;;  %10324 = vst [vmem:[#allocation30_spill] sm:$0xff] %v7205_v58  ;;  %v3029_v37 = vcombine.low %v1177_v63, %v1183_v22 }
 0x270   : > { %968 = vrot.lane.b32.xlu0 %v7055_v57, %s6404_s17  ;;  %965 = vrot.lane.b32.xlu1 %v7055_v57, %s6405_s14  ;;  %10325 = vst [vmem:[#allocation31_spill] sm:$0xff] %v7208_v27  ;;  %s6415_s17 = smov 88   ;;  %s6416_s14 = smov 91  }
 0x271   : > { %v7211_v49 = vrot.slane %v3030_v24, %v7091_v50  ;;  %v7227_v53 = vrot.slane %v3029_v37, %v7091_v50 }
 0x272   : > { %v1192_v31 = vpop.permute.xlu1 %1191  ;;  %v1189_v21 = vpop.permute.xlu0 %1188 }
 0x273   : > { %10326 = vst [vmem:[#allocation32_spill] sm:$0xff] %v7211_v49  ;;  %v3094_v15 = vcombine.high %v7208_v27, %v7211_v49  ;;  %v3045_v36 = vcombine.low %v1186_v20, %v1192_v31  ;;  %v3046_v40 = vcombine.high %v1186_v20, %v1192_v31  ;;  %v3078_v22 = vcombine.high %v7232_v52, %v7227_v53 }
 0x274   : > { %974 = vrot.lane.b32.xlu0 %v7055_v57, %s6406_s10  ;;  %971 = vrot.lane.b32.xlu1 %v7055_v57, %s6407_s18  ;;  %s6417_s10 = smov 82   ;;  %s6418_s18 = smov 85  }
 0x275   : > { %v7237_v32 = vrot.slane %v3045_v36, %v7091_v50  ;;  %v7240_v30 = vrot.slane %v3046_v40, %v7091_v50  ;;  %v7280_v28 = vrot.slane %v3094_v15, %v7128_v48 }
 0x276   : > { %v1198_v60 = vpop.permute.xlu1 %1197  ;;  %v1195_v6 = vpop.permute.xlu0 %1194 }
 0x277   : > { %v3061_v63 = vcombine.low %v1189_v21, %v1195_v6  ;;  %v3062_v47 = vcombine.high %v1189_v21, %v1195_v6  ;;  %10328 = vst [vmem:[#allocation34_spill] sm:$0xff] %v7240_v30  ;;  %10337 = vst [vmem:[#allocation41_spill] sm:$0xff] %v7280_v28 }
 0x278   : > { %980 = vrot.lane.b32.xlu0 %v7224_v41, %s6408_s4  ;;  %978 = vrot.lane.b32.xlu1 %v7055_v57, %s6408_s4  ;;  %s6419_s4 = smov 76  }
 0x279   : > { %v7243_v38 = vrot.slane %v3061_v63, %v7091_v50  ;;  %v7246_v20 = vrot.slane %v3062_v47, %v7091_v50  ;;  %v7262_v63 = vrot.slane %v3078_v22, %v7128_v48 }
 0x27a   : > { %v1204_v24 = vpop.permute.xlu1 %1203  ;;  %v1201_v37 = vpop.permute.xlu0 %1200 }
 0x27b   : > { %10329 = vst [vmem:[#allocation35_spill] sm:$0xff] %v7246_v20  ;;  %v3110_v31 = vcombine.high %v7237_v32, %v7243_v38  ;;  %v3126_v21 = vcombine.high %v7240_v30, %v7246_v20  ;;  %v3150_v34 = vcombine.high %v1198_v60, %v1204_v24  ;;  %10331 = vst [vmem:[#allocation37_spill] sm:$0xff] %v7262_v63 }
 0x27c   : > { %988 = vrot.lane.b32.xlu0 %v7224_v41, %s6316_s21  ;;  %985 = vrot.lane.b32.xlu1 %v7224_v41, %s6314_s19  ;;  %v3149_v1 = vcombine.low %v1198_v60, %v1204_v24  ;;  %s10338_s19 = smov 112   ;;  %s10339_s21 = smov 115  }
 0x27d   : > { %v7259_v36 = vrot.slane %v3110_v31, %v7128_v48  ;;  %v7271_v39 = vrot.slane %v3126_v21, %v7128_v48  ;;  %v7274_v31 = vrot.slane %v3150_v34, %v7091_v50 }
 0x27e   : > { %v1210_v40 = vpop.permute.xlu1 %1209  ;;  %v1207_v6 = vpop.permute.xlu0 %1206  ;;  %v7296_v5 = vrot.slane %v3149_v1, %v7091_v50 }
 0x27f   : > { %10330 = vst [vmem:[#allocation36_spill] sm:$0xff] %v7259_v36  ;;  %v3166_v47 = vcombine.high %v1201_v37, %v1207_v6  ;;  %10334 = vst [vmem:[#allocation38_spill] sm:$0xff] %v7271_v39  ;;  %v3165_v22 = vcombine.low %v1201_v37, %v1207_v6 }
 0x280   : > { %994 = vrot.lane.b32.xlu0 %v7224_v41, %s10332_s15  ;;  %991 = vrot.lane.b32.xlu1 %v7224_v41, %s10333_s29  ;;  %10335 = vst [vmem:[#allocation39_spill] sm:$0xff] %v7274_v31  ;;  %s6420_s15 = smov 79   ;;  %s6421_s29 = smov 70  }
 0x281   : > { %v7277_v46 = vrot.slane %v3166_v47, %v7091_v50  ;;  %v7291_v6 = vrot.slane %v3165_v22, %v7091_v50 }
 0x282   : > { %v1216_v44 = vpop.permute.xlu1 %1215  ;;  %v1213_v11 = vpop.permute.xlu0 %1212 }
 0x283   : > { %10336 = vst [vmem:[#allocation40_spill] sm:$0xff] %v7277_v46  ;;  %v3230_v10 = vcombine.high %v7274_v31, %v7277_v46  ;;  %v3181_v34 = vcombine.low %v1210_v40, %v1216_v44  ;;  %v3182_v37 = vcombine.high %v1210_v40, %v1216_v44  ;;  %v3214_v1 = vcombine.high %v7296_v5, %v7291_v6 }
 0x284   : > { %1000 = vrot.lane.b32.xlu0 %v7224_v41, %s10338_s19  ;;  %997 = vrot.lane.b32.xlu1 %v7224_v41, %s10339_s21  ;;  %s6422_s19 = smov 73   ;;  %s6423_s21 = smov 64  }
 0x285   : > { %v7301_v44 = vrot.slane %v3181_v34, %v7091_v50  ;;  %v7304_v40 = vrot.slane %v3182_v37, %v7091_v50  ;;  %v7324_v3 = vrot.slane %v3214_v1, %v7128_v48  ;;  %v7340_v58 = vrot.slane %v3230_v10, %v7128_v48 }
 0x286   : > { %v1222_v15 = vpop.permute.xlu1 %1221  ;;  %v1219_v47 = vpop.permute.xlu0 %1218 }
 0x287   : > { %v3197_v60 = vcombine.low %v1213_v11, %v1219_v47  ;;  %v3198_v24 = vcombine.high %v1213_v11, %v1219_v47  ;;  %10340 = vst [vmem:[#allocation42_spill] sm:$0xff] %v7304_v40  ;;  %10343 = vst [vmem:[#allocation45_spill] sm:$0xff] %v7324_v3 }
 0x288   : > { %1006 = vrot.lane.b32.xlu0 %v7224_v41, %s6409_s22  ;;  %1003 = vrot.lane.b32.xlu1 %v7224_v41, %s6410_s16  ;;  %10347 = vst [vmem:[#allocation49_spill] sm:$0xff] %v7340_v58  ;;  %s6424_s22 = smov 67   ;;  %s6425_s16 = smov 58  }
 0x289   : > { %v7307_v22 = vrot.slane %v3197_v60, %v7091_v50  ;;  %v7310_v11 = vrot.slane %v3198_v24, %v7091_v50 }
 0x28a   : > { %v1228_v47 = vpop.permute.xlu1 %1227  ;;  %v1225_v0 = vpop.permute.xlu0 %1224 }
 0x28b   : > { %10341 = vst [vmem:[#allocation43_spill] sm:$0xff] %v7310_v11  ;;  %v3246_v21 = vcombine.high %v7301_v44, %v7307_v22  ;;  %v3262_v34 = vcombine.high %v7304_v40, %v7310_v11  ;;  %v3286_v37 = vcombine.high %v1222_v15, %v1228_v47  ;;  %v3285_v17 = vcombine.low %v1222_v15, %v1228_v47 }
 0x28c   : > { %1012 = vrot.lane.b32.xlu0 %v7224_v41, %s6411_s13  ;;  %1009 = vrot.lane.b32.xlu1 %v7224_v41, %s6412_s20  ;;  %s6426_s13 = smov 61   ;;  %s6427_s20 = smov 52  }
 0x28d   : > { %v7321_v60 = vrot.slane %v3246_v21, %v7128_v48  ;;  %v7331_v7 = vrot.slane %v3262_v34, %v7128_v48  ;;  %v7334_v21 = vrot.slane %v3286_v37, %v7091_v50  ;;  %v7352_v10 = vrot.slane %v3285_v17, %v7091_v50 }
 0x28e   : > { %v1234_v24 = vpop.permute.xlu1 %1233  ;;  %v1231_v4 = vpop.permute.xlu0 %1230 }
 0x28f   : > { %10342 = vst [vmem:[#allocation44_spill] sm:$0xff] %v7321_v60  ;;  %v3302_v2 = vcombine.high %v1225_v0, %v1231_v4  ;;  %v3301_v39 = vcombine.low %v1225_v0, %v1231_v4  ;;  %10344 = vst [vmem:[#allocation46_spill] sm:$0xff] %v7331_v7 }
 0x290   : > { %1018 = vrot.lane.b32.xlu0 %v7224_v41, %s6413_s8  ;;  %1015 = vrot.lane.b32.xlu1 %v7224_v41, %s6414_s23  ;;  %10345 = vst [vmem:[#allocation47_spill] sm:$0xff] %v7334_v21  ;;  %s6428_s8 = smov 55   ;;  %s6429_s23 = smov 46  }
 0x291   : > { %v7337_v1 = vrot.slane %v3302_v2, %v7091_v50  ;;  %v7345_v28 = vrot.slane %v3301_v39, %v7091_v50 }
 0x292   : > { %v1240_v0 = vpop.permute.xlu1 %1239  ;;  %v1237_v4 = vpop.permute.xlu0 %1236 }
 0x293   : > { %10346 = vst [vmem:[#allocation48_spill] sm:$0xff] %v7337_v1  ;;  %v3366_v26 = vcombine.high %v7334_v21, %v7337_v1  ;;  %v3317_v15 = vcombine.low %v1234_v24, %v1240_v0  ;;  %v3318_v47 = vcombine.high %v1234_v24, %v1240_v0  ;;  %v3350_v27 = vcombine.high %v7352_v10, %v7345_v28 }
 0x294   : > { %1024 = vrot.lane.b32.xlu0 %v7224_v41, %s6415_s17  ;;  %1021 = vrot.lane.b32.xlu1 %v7224_v41, %s6416_s14  ;;  %s6430_s17 = smov 49   ;;  %s6431_s14 = smov 40  }
 0x295   : > { %v7363_v17 = vrot.slane %v3317_v15, %v7091_v50  ;;  %v7366_v24 = vrot.slane %v3318_v47, %v7091_v50  ;;  %v7418_v20 = vrot.slane %v3366_v26, %v7128_v48 }
 0x296   : > { %v1243_v34 = vpop.permute.xlu0 %1242  ;;  %v7354_v37 = vpop.permute.xlu1 %854 }
 0x297   : > { %10348 = vst [vmem:[#allocation50_spill] sm:$0xff] %v7354_v37  ;;  %v3333_v21 = vcombine.low %v1237_v4, %v1243_v34  ;;  %v3334_v1 = vcombine.high %v1237_v4, %v1243_v34  ;;  %10349 = vst [vmem:[#allocation51_spill] sm:$0xff] %v7366_v24 }
 0x298   : > { %1030 = vrot.lane.b32.xlu0 %v7224_v41, %s6417_s10  ;;  %1027 = vrot.lane.b32.xlu1 %v7224_v41, %s6418_s18  ;;  %10357 = vst [vmem:[#allocation59_spill] sm:$0xff] %v7418_v20  ;;  %s6432_s10 = smov 43   ;;  %s6433_s18 = smov 34  }
 0x299   : > { %v7369_v0 = vrot.slane %v3333_v21, %v7091_v50  ;;  %v7372_v4 = vrot.slane %v3334_v1, %v7091_v50  ;;  %v7389_v1 = vrot.slane %v3350_v27, %v7128_v48 }
 0x29a   : > { %v7374_v34 = vpop.permute.xlu0 %860  ;;  %v7376_v39 = vpop.permute.xlu1 %857 }
 0x29b   : > { %10350 = vst [vmem:[#allocation52_spill] sm:$0xff] %v7372_v4  ;;  %10351 = vst [vmem:[#allocation53_spill] sm:$0xff] %v7376_v39  ;;  %v3382_v2 = vcombine.high %v7363_v17, %v7369_v0  ;;  %v3398_v15 = vcombine.high %v7366_v24, %v7372_v4  ;;  %v1262_v47 = vcombine.high %v7354_v37, %v7374_v34 }
 0x29c   : > { %v1246_v21 = vcombine.high %v7055_v57, %v7376_v39  ;;  %1036 = vrot.lane.b32.xlu0 %v7224_v41, %s6419_s4  ;;  %1033 = vrot.lane.b32.xlu1 %v7224_v41, %s6420_s15  ;;  %10352 = vst [vmem:[#allocation54_spill] sm:$0xff] %v7389_v1  ;;  %s6434_s4 = smov 37   ;;  %s6435_s15 = smov 28   ;;  %v3213_v39 = vcombine.low %v7296_v5, %v7291_v6 }
 0x29d   : > { %v7392_v7 = vrot.slane %v3382_v2, %v7128_v48  ;;  %v7395_v58 = vrot.slane %v1262_v47, %v7091_v50  ;;  %v7410_v2 = vrot.slane %v3398_v15, %v7128_v48 }
 0x29e   : > { %v7398_v24 = vrot.slane %v1246_v21, %v7091_v50  ;;  %v7400_v4 = vpop.permute.xlu0 %866  ;;  %v7402_v49 = vpop.permute.xlu1 %863 }
 0x29f   : > { %10353 = vst [vmem:[#allocation55_spill] sm:$0xff] %v7392_v7  ;;  %10354 = vst [vmem:[#allocation56_spill] sm:$0xff] %v7395_v58 }
 0x2a0   : > { %10355 = vst [vmem:[#allocation57_spill] sm:$0xff] %v7398_v24  ;;  %v1326_v27 = vcombine.high %v7398_v24, %v7395_v58  ;;  %1042 = vrot.lane.b32.xlu0 %v7224_v41, %s6421_s29  ;;  %10356 = vst [vmem:[#allocation58_spill] sm:$0xff] %v7410_v2  ;;  %1039 = vrot.lane.b32.xlu1 %v7224_v41, %s6422_s19  ;;  %s6436_s29 = smov 31   ;;  %s6437_s19 = smov 22  }
 0x2a2   : > { %v7413_v47 = vpop.permute.xlu0 %872  ;;  %v7415_v21 = vpop.permute.xlu1 %869  ;;  %v7468_v54 = vrot.slane %v1326_v27, %v7128_v48 }
 0x2a3   : > { %v1294_v30 = vcombine.high %v7400_v4, %v7413_v47  ;;  %v1278_v55 = vcombine.high %v7402_v49, %v7415_v21 }
 0x2a4   : > { %1048 = vrot.lane.b32.xlu0 %v7224_v41, %s6423_s21  ;;  %1045 = vrot.lane.b32.xlu1 %v7224_v41, %s6424_s22  ;;  %10363 = vst [vmem:[#allocation65_spill] sm:$0xff] %v7468_v54  ;;  %s6438_s21 = smov 25   ;;  %s6439_s22 = smov 16  }
 0x2a5   : > { %v7428_v56 = vrot.slane %v1294_v30, %v7091_v50  ;;  %v7431_v31 = vrot.slane %v1278_v55, %v7091_v50 }
 0x2a6   : > { %v7434_v26 = vpop.permute.xlu0 %878  ;;  %v7436_v46 = vpop.permute.xlu1 %875 }
 0x2a7   : > { %10358 = vst [vmem:[#allocation60_spill] sm:$0xff] %v7428_v56  ;;  %10359 = vst [vmem:[#allocation61_spill] sm:$0xff] %v7431_v31  ;;  %v1358_v9 = vcombine.high %v7431_v31, %v7428_v56 }
 0x2a8   : > { %1054 = vrot.lane.b32.xlu0 %v7224_v41, %s6425_s16  ;;  %1051 = vrot.lane.b32.xlu1 %v7224_v41, %s6426_s13  ;;  %s6440_s16 = smov 19   ;;  %s6441_s13 = smov 10  }
 0x2a9   : > { %v7454_v51 = vrot.slane %v1358_v9, %v7128_v48 }
 0x2aa   : > { %v7444_v55 = vpop.permute.xlu0 %884  ;;  %v7446_v30 = vpop.permute.xlu1 %881 }
 0x2ab   : > { %v1398_v15 = vcombine.high %v7434_v26, %v7444_v55  ;;  %v1382_v40 = vcombine.high %v7436_v46, %v7446_v30  ;;  %10360 = vst [vmem:[#allocation62_spill] sm:$0xff] %v7454_v51 }
 0x2ac   : > { %1060 = vrot.lane.b32.xlu0 %v7224_v41, %s6427_s20  ;;  %1057 = vrot.lane.b32.xlu1 %v7224_v41, %s6428_s8  ;;  %s6442_s20 = smov 13   ;;  %s6443_s8 = smov 4  }
 0x2ad   : > { %v7457_v2 = vrot.slane %v1398_v15, %v7091_v50  ;;  %v7460_v20 = vrot.slane %v1382_v40, %v7091_v50 }
 0x2ae   : > { %v7463_v11 = vpop.permute.xlu0 %890  ;;  %v7465_v29 = vpop.permute.xlu1 %887 }
 0x2af   : > { %10361 = vst [vmem:[#allocation63_spill] sm:$0xff] %v7457_v2  ;;  %10362 = vst [vmem:[#allocation64_spill] sm:$0xff] %v7460_v20  ;;  %v1462_v9 = vcombine.high %v7460_v20, %v7457_v2 }
 0x2b0   : > { %1066 = vrot.lane.b32.xlu0 %v7224_v41, %s6429_s23  ;;  %1063 = vrot.lane.b32.xlu1 %v7224_v41, %s6430_s17  ;;  %s6444_s23 = smov 7   ;;  %s10382_s17 = smov 1  }
 0x2b1   : > { %v7526_v16 = vrot.slane %v1462_v9, %v7128_v48 }
 0x2b2   : > { %v7478_v13 = vpop.permute.xlu0 %896  ;;  %v7480_v45 = vpop.permute.xlu1 %893 }
 0x2b3   : > { %v1430_v27 = vcombine.high %v7463_v11, %v7478_v13  ;;  %v1414_v20 = vcombine.high %v7465_v29, %v7480_v45  ;;  %10369 = vst [vmem:[#allocation71_spill] sm:$0xff] %v7526_v16 }
 0x2b4   : > { %1072 = vrot.lane.b32.xlu0 %v7224_v41, %s6431_s14  ;;  %1069 = vrot.lane.b32.xlu1 %v7224_v41, %s6432_s10 }
 0x2b5   : > { %v7488_v40 = vrot.slane %v1430_v27, %v7091_v50  ;;  %v7491_v15 = vrot.slane %v1414_v20, %v7091_v50 }
 0x2b6   : > { %v7494_v51 = vpop.permute.xlu0 %902  ;;  %v7496_v54 = vpop.permute.xlu1 %899 }
 0x2b7   : > { %10364 = vst [vmem:[#allocation66_spill] sm:$0xff] %v7488_v40  ;;  %10365 = vst [vmem:[#allocation67_spill] sm:$0xff] %v7491_v15  ;;  %v1494_v2 = vcombine.high %v7491_v15, %v7488_v40 }
 0x2b8   : > { %1078 = vrot.lane.b32.xlu0 %v7224_v41, %s6433_s18  ;;  %1075 = vrot.lane.b32.xlu1 %v7224_v41, %s6434_s4 }
 0x2b9   : > { %v7512_v15 = vrot.slane %v1494_v2, %v7128_v48 }
 0x2ba   : > { %v7502_v27 = vpop.permute.xlu0 %908  ;;  %v7504_v20 = vpop.permute.xlu1 %905 }
 0x2bb   : > { %v1534_v24 = vcombine.high %v7494_v51, %v7502_v27  ;;  %v1518_v58 = vcombine.high %v7496_v54, %v7504_v20  ;;  %10366 = vst [vmem:[#allocation68_spill] sm:$0xff] %v7512_v15 }
 0x2bc   : > { %1084 = vrot.lane.b32.xlu0 %v7224_v41, %s6435_s15  ;;  %1081 = vrot.lane.b32.xlu1 %v7224_v41, %s6436_s29  ;;  %s285_s15 = sand.u32 1, %s6295_s25  }
 0x2bd   : > { %v7515_v40 = vrot.slane %v1534_v24, %v7091_v50  ;;  %v7518_v31 = vrot.slane %v1518_v58, %v7091_v50  ;;  %s10047_s29 = sshll.u32 %s285_s15, 3 }
 0x2be   : > { %v7521_v56 = vpop.permute.xlu0 %914  ;;  %v7523_v33 = vpop.permute.xlu1 %911 }
 0x2bf   : > { %10367 = vst [vmem:[#allocation69_spill] sm:$0xff] %v7515_v40  ;;  %10368 = vst [vmem:[#allocation70_spill] sm:$0xff] %v7518_v31  ;;  %v1598_v2 = vcombine.high %v7518_v31, %v7515_v40 }
 0x2c0   : > { %1090 = vrot.lane.b32.xlu0 %v7224_v41, %s6437_s19  ;;  %1087 = vrot.lane.b32.xlu1 %v7224_v41, %s6438_s21  ;;  %s5950_s19 = sshll.u32 %s6303_s3, 7  ;;  %s287_s21 = scalar_lea.vmem [#allocation4], %s10047_s29 }
 0x2c1   : > { %s5857_s3 = scalar_lea.sflag [#allocation5], %s285_s15 }
 0x2c2   : > { %v7536_v18 = vpop.permute.xlu0 %920  ;;  %v7538_v1 = vpop.permute.xlu1 %917 }
 0x2c3   : > { %v1566_v9 = vcombine.high %v7521_v56, %v7536_v18  ;;  %v1550_v31 = vcombine.high %v7523_v33, %v7538_v1 }
 0x2c4   : > { %1096 = vrot.lane.b32.xlu0 %v7224_v41, %s6439_s22  ;;  %1093 = vrot.lane.b32.xlu1 %v7224_v41, %s6440_s16  ;;  %s5871_s22 = sshll.u32 %s287_s21, 4  ;;  %s10078_s22 = int_to_ptr.vmem [resolvable:$true] %s5871_s22 }
 0x2c5   : > { %v7546_v58 = vrot.slane %v1566_v9, %v7091_v50  ;;  %v7549_v24 = vrot.slane %v1550_v31, %v7091_v50 }
 0x2c6   : > { %v7552_v15 = vpop.permute.xlu0 %926  ;;  %v7554_v16 = vpop.permute.xlu1 %923 }
 0x2c7   : > { %10370 = vst [vmem:[#allocation72_spill] sm:$0xff] %v7546_v58  ;;  %10371 = vst [vmem:[#allocation73_spill] sm:$0xff] %v7549_v24  ;;  %v1630_v40 = vcombine.high %v7549_v24, %v7546_v58 }
 0x2c8   : > { %10372 = vst [vmem:[#allocation74_spill] sm:$0xff] %v7552_v15  ;;  %10373 = vst [vmem:[#allocation75_spill] sm:$0xff] %v7554_v16  ;;  %1102 = vrot.lane.b32.xlu0 %v7224_v41, %s6441_s13  ;;  %1099 = vrot.lane.b32.xlu1 %v7224_v41, %s6442_s20  ;;  %s10076_s20 = scalar_lea.hbm %s10131_s7, %s5950_s19 }
 0x2c9   : > { %v7570_v24 = vrot.slane %v1630_v40, %v7128_v48 }
 0x2ca   : > { %v7560_v9 = vpop.permute.xlu0 %932  ;;  %v7562_v31 = vpop.permute.xlu1 %929 }
 0x2cb   : > { %10374 = vst [vmem:[#allocation76_spill] sm:$0xff] %v7560_v9  ;;  %10375 = vst [vmem:[#allocation77_spill] sm:$0xff] %v7562_v31  ;;  %v1670_v7 = vcombine.high %v7552_v15, %v7560_v9  ;;  %v1654_v63 = vcombine.high %v7554_v16, %v7562_v31  ;;  %v7584_v16 = vrot.slane %v1598_v2, %v7128_v48 }
 0x2cc   : > { %1108 = vrot.lane.b32.xlu0 %v7224_v41, %s6443_s8  ;;  %10376 = vst [vmem:[#allocation78_spill] sm:$0xff] %v7570_v24  ;;  %1105 = vrot.lane.b32.xlu1 %v7224_v41, %s6444_s23  ;;  %s6233_s8 = scalar_lea.vmem %s10078_s22, 128  ;;  %s6445_s23 = smov [#allocation4]  }
 0x2cd   : > { %v7573_v58 = vrot.slane %v1670_v7, %v7091_v50  ;;  %v7576_v36 = vrot.slane %v1654_v63, %v7091_v50  ;;  %10381 = vst [vmem:[#allocation83_spill] sm:$0xff] %v7584_v16  ;;  %p6234_p12 = scmp.ne.s32.totalorder %s10078_s22, %s6233_s8 }
 0x2ce   : > { %v7579_v35 = vpop.permute.xlu0 %938  ;;  %v7581_v15 = vpop.permute.xlu1 %935 }
 0x2cf   : > { %10377 = vst [vmem:[#allocation79_spill] sm:$0xff] %v7573_v58  ;;  %10378 = vst [vmem:[#allocation80_spill] sm:$0xff] %v7576_v36  ;;  %v1734_v40 = vcombine.high %v7576_v36, %v7573_v58  ;;  %p6235_p13 = pnand %p6234_p12, %p6526_p4 }
 0x2d0   : > { %10379 = vst [vmem:[#allocation81_spill] sm:$0xff] %v7579_v35  ;;  %10380 = vst [vmem:[#allocation82_spill] sm:$0xff] %v7581_v15  ;;  %1112 = vrot.lane.b32.xlu1 %v7224_v41, %s10382_s17  ;;  %s6237_s17 = sshll.u32 %s6445_s23, 4  ;;  %s6238_s17 = int_to_ptr.vmem [resolvable:$false] %s6237_s17 }
 0x2d1   : > { %v7638_v57 = vrot.slane %v1734_v40, %v7128_v48  ;;  %p6236_p0 = pneg %p6235_p13  ;;  %s6239_s14 = scalar_lea.vmem %s6238_s17, 256 }
 0x2d2   : > { %v7594_v31 = vpop.permute.xlu0 %944  ;;  %v7596_v9 = vpop.permute.xlu1 %941  ;;  %p6240_p1 = scmp.lt.s32.totalorder %s10078_s22, %s6238_s17  ;;  %p6241_p2 = scmp.lt.s32.totalorder %s6239_s14, %s6233_s8 }
 0x2d3   : > { %10383 = vst [vmem:[#allocation84_spill] sm:$0xff] %v7594_v31  ;;  %10384 = vst [vmem:[#allocation85_spill] sm:$0xff] %v7596_v9  ;;  %v1702_v2 = vcombine.high %v7579_v35, %v7594_v31  ;;  %v1686_v25 = vcombine.high %v7581_v15, %v7596_v9 }
 0x2d4   : > { %10390 = vst [vmem:[#allocation91_spill] sm:$0xff] %v7638_v57  ;;  %p6242_p3 = por %p6241_p2, %p6240_p1 }
 0x2d5   : > { %v7603_v36 = vrot.slane %v1702_v2, %v7091_v50  ;;  %v7606_v7 = vrot.slane %v1686_v25, %v7091_v50 }
 0x2d6   : > { %v7608_v63 = vpop.permute.xlu0 %950  ;;  %v7610_v24 = vpop.permute.xlu1 %947  ;;  %p6243_p5 = pnand %p6242_p3, %p6236_p0 }
 0x2d7   : > { %10385 = vst [vmem:[#allocation86_spill] sm:$0xff] %v7603_v36  ;;  %10386 = vst [vmem:[#allocation87_spill] sm:$0xff] %v7606_v7  ;;  %v1766_v41 = vcombine.high %v7606_v7, %v7603_v36  ;;  %v2973_v7 = vcombine.low %v7175_v12, %v7181_v43  ;;  %v3245_v12 = vcombine.low %v7301_v44, %v7307_v22 }
 0x2d9   : > { %v7623_v25 = vrot.slane %v1766_v41, %v7128_v48  ;;  %v2981_v40 = vrot.slane %v2973_v7, %v7128_v48  ;;  %v2805_v7 = vcombine.low %v7109_v61, %v7106_v59  ;;  %v3077_v59 = vcombine.low %v7232_v52, %v7227_v53 }
 0x2da   : > { %v7614_v16 = vpop.permute.xlu0 %956  ;;  %v7616_v58 = vpop.permute.xlu1 %953 }
 0x2db   : > { %v1806_v15 = vcombine.high %v7608_v63, %v7614_v16  ;;  %v1790_v2 = vcombine.high %v7610_v24, %v7616_v58  ;;  %10387 = vst [vmem:[#allocation88_spill] sm:$0xff] %v7623_v25 }
 0x2dd   : > { %v7626_v9 = vrot.slane %v1806_v15, %v7091_v50  ;;  %v7629_v35 = vrot.slane %v1790_v2, %v7091_v50  ;;  %v2941_v15 = vcombine.low %v7170_v42, %v7165_v19  ;;  %v2837_v42 = vcombine.low %v7114_v62, %v7120_v8 }
 0x2de   : > { %v7633_v36 = vpop.permute.xlu0 %962  ;;  %v7635_v31 = vpop.permute.xlu1 %959  ;;  %v3253_v62 = vrot.slane %v3245_v12, %v7128_v48  ;;  %v3109_v8 = vcombine.low %v7237_v32, %v7243_v38 }
 0x2df   : > { %10388 = vst [vmem:[#allocation89_spill] sm:$0xff] %v7626_v9  ;;  %10389 = vst [vmem:[#allocation90_spill] sm:$0xff] %v7629_v35  ;;  %v1870_v41 = vcombine.high %v7629_v35, %v7626_v9  ;;  %v2949_v44 = vrot.slane %v2941_v15, %v7128_v48  ;;  %v7683_v6 = vrot.slane %v2837_v42, %v7128_v48 }
 0x2e0   : > { %v7699_v53 = vrot.slane %v3109_v8, %v7128_v48  ;;  %v1413_v42 = vcombine.low %v7465_v29, %v7480_v45  ;;  %v3007_v29 = vcombine.low %v7198_v23, %v7195_v14  ;;  %v1397_v45 = vcombine.low %v7434_v26, %v7444_v55  ;;  %v10416_v14 = vld [vmem:[#allocation77_spill] sm:$0xff] }
 0x2e1   : > { %v3005_v9 = vcombine.low %v2949_v44, %v2981_v40  ;;  %v3006_v38 = vcombine.high %v2949_v44, %v2981_v40  ;;  %v7710_v40 = vrot.slane %v1870_v41, %v7128_v48  ;;  %v3381_v44 = vcombine.low %v7363_v17, %v7369_v0 }
 0x2e2   : > { %v7650_v43 = vpop.permute.xlu0 %968  ;;  %v7652_v37 = vpop.permute.xlu1 %965  ;;  %v3349_v41 = vcombine.low %v7352_v10, %v7345_v28  ;;  %v1565_v28 = vcombine.low %v7521_v56, %v7536_v18  ;;  %v1549_v10 = vcombine.low %v7523_v33, %v7538_v1  ;;  %v1533_v56 = vcombine.low %v7494_v51, %v7502_v27 }
 0x2e3   : > { %v1838_v35 = vcombine.high %v7633_v36, %v7650_v43  ;;  %v1822_v19 = vcombine.high %v7635_v31, %v7652_v37  ;;  %v3458_v12 = vsel %vm3421_vm6, %v3005_v9, -inf  ;;  %v1429_v9 = vcombine.low %v7463_v11, %v7478_v13  ;;  %10394 = vst [vmem:[#allocation95_spill] sm:$0xff] %v7710_v40 }
 0x2e4   : > { %v7720_v13 = vrot.slane %v3077_v59, %v7128_v48  ;;  %v1381_v11 = vcombine.low %v7436_v46, %v7446_v30  ;;  %v7742_v46 = vrot.slane %v1413_v42, %v7091_v50  ;;  %v7761_v42 = vrot.slane %v1397_v45, %v7091_v50 }
 0x2e5   : > { %v7665_v22 = vrot.slane %v1838_v35, %v7091_v50  ;;  %v7668_v2 = vrot.slane %v1822_v19, %v7091_v50  ;;  %v3221_v35 = vrot.slane %v3213_v39, %v7128_v48  ;;  %v7739_v55 = vrot.slane %v1429_v9, %v7091_v50 }
 0x2e6   : > { %v7672_v25 = vpop.permute.xlu0 %974  ;;  %v7674_v57 = vpop.permute.xlu1 %971  ;;  %v7769_v33 = vrot.slane %v3381_v44, %v7128_v48  ;;  %v1517_v1 = vcombine.low %v7496_v54, %v7504_v20  ;;  %v7786_v51 = vrot.slane %v1565_v28, %v7091_v50  ;;  %v7789_v54 = vrot.slane %v1549_v10, %v7091_v50 }
 0x2e7   : > { %10391 = vst [vmem:[#allocation92_spill] sm:$0xff] %v7665_v22  ;;  %10392 = vst [vmem:[#allocation93_spill] sm:$0xff] %v7668_v2  ;;  %v1902_v5 = vcombine.high %v7668_v2, %v7665_v22  ;;  %v3277_v19 = vcombine.low %v3221_v35, %v3253_v62  ;;  %v7689_v2 = vrot.slane %v2805_v7, %v7128_v48 }
 0x2e8   : > { %v3278_v59 = vcombine.high %v3221_v35, %v3253_v62  ;;  %v1837_v27 = vcombine.low %v7633_v36, %v7650_v43  ;;  %v1821_v20 = vcombine.low %v7635_v31, %v7652_v37  ;;  %v3279_v36 = vcombine.low %v7324_v3, %v7321_v60 }
 0x2e9   : > { %v7694_v32 = vrot.slane %v1902_v5, %v7128_v48  ;;  %v2869_v39 = vcombine.low %v7689_v2, %v7683_v6  ;;  %v2870_v52 = vcombine.high %v7689_v2, %v7683_v6  ;;  %v7808_v43 = vrot.slane %v1533_v56, %v7091_v50 }
 0x2ea   : > { %v981_v61 = vpop.permute.xlu0 %980  ;;  %v979_v15 = vpop.permute.xlu1 %978  ;;  %v3512_v44 = vsel %vm3421_vm6, %v3278_v59, -inf  ;;  %v7811_v37 = vrot.slane %v1517_v1, %v7091_v50  ;;  %v1805_v31 = vcombine.low %v7608_v63, %v7614_v16  ;;  %v1789_v28 = vcombine.low %v7610_v24, %v7616_v58  ;;  %v10400_v63 = vld [vmem:[#allocation53_spill] sm:$0xff] }
 0x2eb   : > { %v7691_v22 = vsel %vm982_vm8, %v979_v15, %v981_v61  ;;  %3459 = vmax.xlane.f32.xlu0 %v3458_v12  ;;  %10393 = vst [vmem:[#allocation94_spill] sm:$0xff] %v7694_v32  ;;  %v3464_v61 = vsel %vm3421_vm6, %v3277_v19, -inf  ;;  %v3141_v15 = vcombine.low %v7720_v13, %v7699_v53  ;;  %v3506_v19 = vsel %vm3421_vm6, %v3006_v38, -inf }
 0x2ec   : > { %v1926_v7 = vcombine.high %v7674_v57, %v7691_v22  ;;  %v3455_v9 = vsel %vm3421_vm6, %v2869_v39, -inf  ;;  %v3554_v39 = vsel %vm3421_vm6, %v3007_v29, -inf  ;;  %v1293_v10 = vcombine.low %v7400_v4, %v7413_v47 }
 0x2ed   : > { %v3461_v38 = vsel %vm3421_vm6, %v3141_v15, -inf  ;;  %v1613_v1 = vcombine.low %v7789_v54, %v7786_v51  ;;  %v7830_v16 = vrot.slane %v1837_v27, %v7091_v50  ;;  %v7833_v58 = vrot.slane %v1821_v20, %v7091_v50 }
 0x2ee   : > { %v7714_v5 = vpop.permute.xlu0 %988  ;;  %v7716_v8 = vpop.permute.xlu1 %985  ;;  %v7745_v30 = vrot.slane %v1926_v7, %v7091_v50  ;;  %v7764_v7 = vrot.slane %v1381_v11, %v7091_v50  ;;  %v7783_v11 = vrot.slane %v3349_v41, %v7128_v48  ;;  %v1581_v20 = vcombine.low %v7811_v37, %v7808_v43 }
 0x2ef   : > { %v1942_v17 = vcombine.high %v7672_v25, %v7716_v8  ;;  %3465 = vmax.xlane.f32.xlu0 %v3464_v61  ;;  %v1477_v61 = vcombine.low %v7742_v46, %v7739_v55  ;;  %v3503_v26 = vsel %vm3421_vm6, %v2870_v52, -inf }
 0x2f0   : > { %10395 = vst [vmem:[#allocation96_spill] sm:$0xff] %v7745_v30  ;;  %v1445_v41 = vcombine.low %v7764_v7, %v7761_v42  ;;  %v3413_v15 = vcombine.low %v7783_v11, %v7769_v33 }
 0x2f1   : > { %v7748_v12 = vrot.slane %v1942_v17, %v7091_v50 }
 0x2f2   : > { %v7754_v62 = vpop.permute.xlu0 %994  ;;  %v7756_v35 = vpop.permute.xlu1 %991  ;;  %v3467_v27 = vsel %vm3421_vm6, %v3413_v15, -inf  ;;  %v1885_v15 = vcombine.low %v7833_v58, %v7830_v16 }
 0x2f3   : > { %10396 = vst [vmem:[#allocation97_spill] sm:$0xff] %v7748_v12  ;;  %3507 = vmax.xlane.f32.xlu0 %v3506_v19  ;;  %v1958_v45 = vcombine.high %v7714_v5, %v7754_v62  ;;  %v1277_v19 = vcombine.low %v7402_v49, %v7415_v21  ;;  %v7840_v49 = vrot.slane %v1477_v61, %v7128_v48  ;;  %v10399_v21 = vld [vmem:[#allocation50_spill] sm:$0xff] }
 0x2f4   : > { %3456 = vmax.xlane.f32.xlu1 %v3455_v9  ;;  %v1261_v24 = vcombine.low %v10399_v21, %v7374_v34  ;;  %v7855_v61 = vrot.slane %v1789_v28, %v7091_v50  ;;  %v7858_v34 = vrot.slane %v1445_v41, %v7128_v48  ;;  %v7861_v21 = vrot.slane %v1293_v10, %v7091_v50 }
 0x2f5   : > { %v7822_v9 = vrot.slane %v1958_v45, %v7091_v50  ;;  %v3560_v41 = vsel %vm3421_vm6, %v3279_v36, -inf  ;;  %v3142_v36 = vcombine.high %v7720_v13, %v7699_v53 }
 0x2f6   : > { %v7795_v29 = vpop.permute.xlu0 %1000  ;;  %v7797_v17 = vpop.permute.xlu1 %997  ;;  %v1509_v10 = vcombine.low %v7858_v34, %v7840_v49 }
 0x2f7   : > { %v1974_v59 = vcombine.high %v7756_v35, %v7797_v17  ;;  %3513 = vmax.xlane.f32.xlu0 %v3512_v44  ;;  %10397 = vst [vmem:[#allocation98_spill] sm:$0xff] %v7822_v9 }
 0x2f8   : > { %3462 = vmax.xlane.f32.xlu1 %v3461_v38  ;;  %v10401_v38 = vld [vmem:[#allocation12_spill] sm:$0xff] }
 0x2f9   : > { %v7825_v56 = vrot.slane %v1974_v59, %v7091_v50  ;;  %v1245_v45 = vcombine.low %v10401_v38, %v10400_v63  ;;  %v7852_v59 = vrot.slane %v1805_v31, %v7091_v50  ;;  %v7864_v63 = vrot.slane %v1277_v19, %v7091_v50 }
 0x2fa   : > { %v7835_v4 = vpop.permute.xlu0 %1006  ;;  %v7837_v47 = vpop.permute.xlu1 %1003  ;;  %v7878_v38 = vrot.slane %v1613_v1, %v7128_v48  ;;  %v7881_v19 = vrot.slane %v1261_v24, %v7091_v50  ;;  %v7897_v24 = vrot.slane %v1581_v20, %v7128_v48  ;;  %v7918_v20 = vrot.slane %v1885_v15, %v7128_v48 }
 0x2fb   : > { %10398 = vst [vmem:[#allocation99_spill] sm:$0xff] %v7825_v56  ;;  %v2038_v44 = vcombine.high %v7822_v9, %v7825_v56  ;;  %3555 = vmax.xlane.f32.xlu0 %v3554_v39  ;;  %v2062_v39 = vcombine.high %v7795_v29, %v7835_v4  ;;  %v7892_v0 = vrot.slane %v1245_v45, %v7091_v50  ;;  %v3425_v45 = vsel %vm3421_vm6, %v1509_v10, -inf  ;;  %v10411_v56 = vld [vmem:[#allocation85_spill] sm:$0xff] }
 0x2fc   : > { %3468 = vmax.xlane.f32.xlu1 %v3467_v27  ;;  %v1853_v1 = vcombine.low %v7855_v61, %v7852_v59  ;;  %v1341_v2 = vcombine.low %v7864_v63, %v7861_v21  ;;  %v3414_v10 = vcombine.high %v7783_v11, %v7769_v33 }
 0x2fd   : > { %v7900_v18 = vrot.slane %v2038_v44, %v7128_v48  ;;  %v7905_v6 = vrot.slane %v2062_v39, %v7091_v50  ;;  %v1645_v44 = vcombine.low %v7897_v24, %v7878_v38  ;;  %v10405_v39 = vcombine.high %v7745_v30, %v7748_v12  ;;  %v10410_v12 = vld [vmem:[#allocation81_spill] sm:$0xff] }
 0x2fe   : > { %v7870_v31 = vpop.permute.xlu0 %1012  ;;  %v7872_v28 = vpop.permute.xlu1 %1009  ;;  %v1309_v32 = vcombine.low %v7892_v0, %v7881_v19  ;;  %v7934_v15 = vrot.slane %v1853_v1, %v7128_v48  ;;  %v7950_v1 = vrot.slane %v1341_v2, %v7128_v48 }
 0x2ff   : > { %v2078_v27 = vcombine.high %v7837_v47, %v7872_v28  ;;  %3561 = vmax.xlane.f32.xlu0 %v3560_v41  ;;  %10402 = vst [vmem:[#allocation50_spill] sm:$0xff] %v7900_v18  ;;  %10403 = vst [vmem:[#allocation53_spill] sm:$0xff] %v7905_v6  ;;  %v7924_v41 = vrot.slane %v10405_v39, %v7128_v48  ;;  %v3428_v33 = vsel %vm3421_vm6, %v1645_v44, -inf  ;;  %v10407_v39 = vld [vmem:[#allocation20_spill] sm:$0xff]  ;;  %v10408_v18 = vld [vmem:[#allocation21_spill] sm:$0xff]  ;;  %v3515_v44 = vsel %vm3421_vm6, %v3414_v10, -inf }
 0x300   : > { %3504 = vmax.xlane.f32.xlu1 %v3503_v26  ;;  %v1917_v11 = vcombine.low %v7934_v15, %v7918_v20  ;;  %v7962_v60 = vrot.slane %v1309_v32, %v7128_v48 }
 0x301   : > { %v7908_v53 = vrot.slane %v2078_v27, %v7091_v50  ;;  %10406 = vst [vmem:[#allocation100_spill] sm:$0xff] %v7924_v41  ;;  %v3509_v27 = vsel %vm3421_vm6, %v3142_v36, -inf  ;;  %v2871_v41 = vcombine.low %v10408_v18, %v10407_v39  ;;  %v10415_v39 = vld [vmem:[#allocation74_spill] sm:$0xff] }
 0x302   : > { %v7910_v52 = vpop.permute.xlu0 %1018  ;;  %v7912_v13 = vpop.permute.xlu1 %1015  ;;  %v3434_v32 = vsel %vm3421_vm6, %v1917_v11, -inf  ;;  %v1342_v11 = vcombine.high %v7864_v63, %v7861_v21  ;;  %v1310_v21 = vcombine.high %v7892_v0, %v7881_v19  ;;  %v1614_v0 = vcombine.high %v7789_v54, %v7786_v51 }
 0x303   : > { %10404 = vst [vmem:[#allocation12_spill] sm:$0xff] %v7908_v53  ;;  %v2142_v26 = vcombine.high %v7905_v6, %v7908_v53  ;;  %3426 = vmax.xlane.f32.xlu0 %v3425_v45  ;;  %v2094_v45 = vcombine.high %v7870_v31, %v7910_v52  ;;  %v10412_v6 = vld [vmem:[#allocation82_spill] sm:$0xff]  ;;  %v1918_v51 = vcombine.high %v7934_v15, %v7918_v20 }
 0x304   : > { %3510 = vmax.xlane.f32.xlu1 %v3509_v27  ;;  %v10409_v27 = vld [vmem:[#allocation84_spill] sm:$0xff]  ;;  %v1685_v53 = vcombine.low %v10412_v6, %v10411_v56  ;;  %v1374_v6 = vcombine.high %v7962_v60, %v7950_v1 }
 0x305   : > { %v1701_v9 = vcombine.low %v10410_v12, %v10409_v27  ;;  %v7965_v2 = vrot.slane %v2094_v45, %v7091_v50  ;;  %v10417_v12 = vld [vmem:[#allocation75_spill] sm:$0xff]  ;;  %v10418_v45 = vld [vmem:[#allocation36_spill] sm:$0xff] }
 0x306   : > { %v7942_v36 = vpop.permute.xlu0 %1024  ;;  %v7944_v30 = vpop.permute.xlu1 %1021  ;;  %v1653_v27 = vcombine.low %v10417_v12, %v10416_v14  ;;  %v3551_v14 = vsel %vm3421_vm6, %v2871_v41, -inf  ;;  %v1646_v12 = vcombine.high %v7897_v24, %v7878_v38 }
 0x307   : > { %v2110_v40 = vcombine.high %v7912_v13, %v7944_v30  ;;  %3429 = vmax.xlane.f32.xlu0 %v3428_v33  ;;  %10413 = vst [vmem:[#allocation84_spill] sm:$0xff] %v7965_v2  ;;  %v10414_v33 = vld [vmem:[#allocation76_spill] sm:$0xff]  ;;  %v7984_v10 = vrot.slane %v1701_v9, %v7091_v50 }
 0x308   : > { %3516 = vmax.xlane.f32.xlu1 %v3515_v44  ;;  %v1669_v18 = vcombine.low %v10415_v39, %v10414_v33  ;;  %v7987_v39 = vrot.slane %v1685_v53, %v7091_v50  ;;  %v10419_v44 = vld [vmem:[#allocation37_spill] sm:$0xff]  ;;  %v8000_v9 = vrot.slane %v1653_v27, %v7091_v50  ;;  %v3476_v19 = vsel %vm3421_vm6, %v1646_v12, -inf }
 0x309   : > { %v7968_v3 = vrot.slane %v2110_v40, %v7091_v50  ;;  %v3143_v33 = vcombine.low %v10419_v44, %v10418_v45  ;;  %v3470_v45 = vsel %vm3421_vm6, %v1374_v6, -inf  ;;  %v10421_v44 = vld [vmem:[#allocation54_spill] sm:$0xff] }
 0x30a   : > { %v7974_v23 = vpop.permute.xlu0 %1030  ;;  %v7976_v56 = vpop.permute.xlu1 %1027 }
 0x30b   : > { %v2174_v40 = vcombine.high %v7965_v2, %v7968_v3  ;;  %3435 = vmax.xlane.f32.xlu0 %v3434_v32  ;;  %v7997_v32 = vrot.slane %v1669_v18, %v7091_v50  ;;  %v2198_v53 = vcombine.high %v7942_v36, %v7974_v23  ;;  %v1749_v18 = vcombine.low %v7987_v39, %v7984_v10 }
 0x30c   : > { %3552 = vmax.xlane.f32.xlu1 %v3551_v14  ;;  %v3557_v27 = vsel %vm3421_vm6, %v3143_v33, -inf  ;;  %v10420_v14 = vld [vmem:[#allocation55_spill] sm:$0xff] }
 0x30d   : > { %v8012_v38 = vrot.slane %v2174_v40, %v7128_v48  ;;  %v3415_v6 = vcombine.low %v10421_v44, %v10420_v14  ;;  %v8025_v40 = vrot.slane %v1342_v11, %v7128_v48  ;;  %v1717_v2 = vcombine.low %v8000_v9, %v7997_v32 }
 0x30e   : > { %v8004_v41 = vpop.permute.xlu0 %1036  ;;  %v8009_v63 = vpop.permute.xlu1 %1033  ;;  %v8033_v33 = vrot.slane %v2198_v53, %v7091_v50  ;;  %v1324_v11 = vrot.slane %v1310_v21, %v7128_v48  ;;  %v1628_v21 = vrot.slane %v1614_v0, %v7128_v48 }
 0x30f   : > { %3471 = vmax.xlane.f32.xlu0 %v3470_v45  ;;  %v2214_v24 = vcombine.high %v7976_v56, %v8009_v63  ;;  %v8028_v45 = vrot.slane %v2142_v26, %v7128_v48  ;;  %v1373_v26 = vcombine.low %v7962_v60, %v7950_v1  ;;  %v3563_v15 = vsel %vm3421_vm6, %v3415_v6, -inf }
 0x310   : > { %3558 = vmax.xlane.f32.xlu1 %v3557_v27  ;;  %v8057_v27 = vrot.slane %v1749_v18, %v7128_v48  ;;  %v1478_v60 = vcombine.high %v7742_v46, %v7739_v55  ;;  %v1375_v1 = vcombine.low %v1324_v11, %v8025_v40  ;;  %v3482_v6 = vsel %vm3421_vm6, %v1918_v51, -inf }
 0x311   : > { %v8036_v14 = vrot.slane %v2214_v24, %v7091_v50  ;;  %v2195_v12 = vcombine.low %v8028_v45, %v8012_v38  ;;  %v1582_v24 = vcombine.high %v7811_v37, %v7808_v43  ;;  %v1725_v18 = vrot.slane %v1717_v2, %v7128_v48 }
 0x312   : > { %v8038_v44 = vpop.permute.xlu0 %1042  ;;  %v8042_v54 = vpop.permute.xlu1 %1039  ;;  %v1446_v55 = vcombine.high %v7764_v7, %v7761_v42  ;;  %v3422_v0 = vsel %vm3421_vm6, %v1373_v26, -inf  ;;  %v3518_v2 = vsel %vm3421_vm6, %v1375_v1, -inf  ;;  %v8084_v42 = vrot.slane %v1478_v60, %v7128_v48 }
 0x313   : > { %3477 = vmax.xlane.f32.xlu0 %v3476_v19  ;;  %v2278_v20 = vcombine.high %v8033_v33, %v8036_v14  ;;  %v1886_v19 = vcombine.high %v7833_v58, %v7830_v16  ;;  %v2230_v43 = vcombine.high %v8004_v41, %v8038_v44  ;;  %v1854_v16 = vcombine.high %v7855_v61, %v7852_v59 }
 0x314   : > { %3564 = vmax.xlane.f32.xlu1 %v3563_v15  ;;  %v1781_v15 = vcombine.low %v1725_v18, %v8057_v27  ;;  %v1596_v51 = vrot.slane %v1582_v24, %v7128_v48  ;;  %v1510_v24 = vcombine.high %v7858_v34, %v7840_v49  ;;  %v1376_v60 = vcombine.high %v1324_v11, %v8025_v40 }
 0x315   : > { %v8087_v7 = vrot.slane %v2230_v43, %v7091_v50  ;;  %v8103_v1 = vrot.slane %v1446_v55, %v7128_v48  ;;  %v2109_v43 = vcombine.low %v7912_v13, %v7944_v30  ;;  %v1750_v49 = vcombine.high %v7987_v39, %v7984_v10 }
 0x316   : > { %v8067_v37 = vpop.permute.xlu0 %1048  ;;  %v8073_v46 = vpop.permute.xlu1 %1045  ;;  %v1647_v61 = vcombine.low %v1596_v51, %v1628_v21  ;;  %v1648_v40 = vcombine.high %v1596_v51, %v1628_v21  ;;  %v2093_v30 = vcombine.low %v7870_v31, %v7910_v52  ;;  %v2061_v10 = vcombine.low %v7795_v29, %v7835_v4 }
 0x317   : > { %3483 = vmax.xlane.f32.xlu0 %v3482_v6  ;;  %v2246_v58 = vcombine.high %v8042_v54, %v8073_v46  ;;  %v8095_v6 = vrot.slane %v1886_v19, %v7128_v48  ;;  %v3431_v19 = vsel %vm3421_vm6, %v1781_v15, -inf  ;;  %v1511_v34 = vcombine.low %v8103_v1, %v8084_v42 }
 0x318   : > { %3423 = vmax.xlane.f32.xlu1 %v3422_v0  ;;  %v3524_v55 = vsel %vm3421_vm6, %v1647_v61, -inf  ;;  %v2077_v39 = vcombine.low %v7837_v47, %v7872_v28  ;;  %v1782_v21 = vcombine.high %v1725_v18, %v8057_v27  ;;  %v8132_v31 = vrot.slane %v2109_v43, %v7091_v50 }
 0x319   : > { %v8090_v26 = vrot.slane %v2246_v58, %v7091_v50  ;;  %v8111_v58 = vrot.slane %v1854_v16, %v7128_v48  ;;  %v3473_v16 = vsel %vm3421_vm6, %v1510_v24, -inf  ;;  %v3566_v15 = vsel %vm3421_vm6, %v1376_v60, -inf }
 0x31a   : > { %v8092_v59 = vpop.permute.xlu0 %1054  ;;  %v8097_v53 = vpop.permute.xlu1 %1051  ;;  %v3521_v51 = vsel %vm3421_vm6, %v1511_v34, -inf  ;;  %v3572_v29 = vsel %vm3421_vm6, %v1648_v40, -inf  ;;  %v8143_v47 = vrot.slane %v1750_v49, %v7128_v48  ;;  %v8146_v28 = vrot.slane %v2093_v30, %v7091_v50 }
 0x31b   : > { %3519 = vmax.xlane.f32.xlu0 %v3518_v2  ;;  %v2310_v0 = vcombine.high %v8087_v7, %v8090_v26  ;;  %v1718_v2 = vcombine.high %v8000_v9, %v7997_v32  ;;  %v2334_v13 = vcombine.high %v8067_v37, %v8092_v59  ;;  %v1919_v32 = vcombine.low %v8111_v58, %v8095_v6 }
 0x31c   : > { %3432 = vmax.xlane.f32.xlu1 %v3431_v19  ;;  %v8156_v60 = vrot.slane %v2061_v10, %v7091_v50  ;;  %v8159_v43 = vrot.slane %v2077_v39, %v7091_v50  ;;  %v2157_v34 = vcombine.low %v8146_v28, %v8132_v31  ;;  %v2245_v40 = vcombine.low %v8042_v54, %v8073_v46 }
 0x31d   : > { %v8140_v4 = vrot.slane %v1718_v2, %v7128_v48  ;;  %v8149_v27 = vrot.slane %v2334_v13, %v7091_v50  ;;  %v3530_v24 = vsel %vm3421_vm6, %v1919_v32, -inf  ;;  %v3479_v2 = vsel %vm3421_vm6, %v1782_v21, -inf }
 0x31e   : > { %v1061_v11 = vpop.permute.xlu0 %1060  ;;  %v1058_v9 = vpop.permute.xlu1 %1057  ;;  %v8163_v49 = vrot.slane %v2310_v0, %v7128_v48  ;;  %v2229_v32 = vcombine.low %v8004_v41, %v8038_v44  ;;  %v2333_v0 = vcombine.low %v8067_v37, %v8092_v59  ;;  %v8182_v54 = vrot.slane %v2278_v20, %v7128_v48  ;;  %v10487_v20 = vld [vmem:[#allocation47_spill] sm:$0xff] }
 0x31f   : > { %3525 = vmax.xlane.f32.xlu0 %v3524_v55  ;;  %v2350_v52 = vcombine.high %v8097_v53, %v1058_v9  ;;  %v2349_v30 = vcombine.low %v8097_v53, %v1058_v9  ;;  %v2213_v55 = vcombine.low %v7976_v56, %v8009_v63  ;;  %v1783_v56 = vcombine.low %v8140_v4, %v8143_v47 }
 0x320   : > { %3474 = vmax.xlane.f32.xlu1 %v3473_v16  ;;  %v1920_v44 = vcombine.high %v8111_v58, %v8095_v6  ;;  %v2125_v41 = vcombine.low %v8156_v60, %v8159_v43  ;;  %v2197_v63 = vcombine.low %v7942_v36, %v7974_v23  ;;  %v8208_v23 = vrot.slane %v2229_v32, %v7091_v50 }
 0x321   : > { %v8152_v18 = vrot.slane %v2350_v52, %v7091_v50  ;;  %v8202_v39 = vrot.slane %v2349_v30, %v7091_v50  ;;  %v8205_v9 = vrot.slane %v2213_v55, %v7091_v50  ;;  %v8211_v36 = vrot.slane %v2333_v0, %v7091_v50 }
 0x322   : > { %v1067_v61 = vpop.permute.xlu0 %1066  ;;  %v1064_v19 = vpop.permute.xlu1 %1063  ;;  %v8214_v21 = vrot.slane %v2157_v34, %v7128_v48  ;;  %v1512_v34 = vcombine.high %v8103_v1, %v8084_v42 }
 0x323   : > { %3531 = vmax.xlane.f32.xlu0 %v3530_v24  ;;  %v2414_v13 = vcombine.high %v8149_v27, %v8152_v18  ;;  %v2365_v53 = vcombine.low %v1061_v11, %v1067_v61  ;;  %v2366_v46 = vcombine.high %v1061_v11, %v1067_v61  ;;  %v8199_v11 = vrot.slane %v2245_v40, %v7091_v50 }
 0x324   : > { %3480 = vmax.xlane.f32.xlu1 %v3479_v2  ;;  %v3527_v2 = vsel %vm3421_vm6, %v1783_v56, -inf  ;;  %v2133_v40 = vrot.slane %v2125_v41, %v7128_v48  ;;  %v2397_v55 = vcombine.low %v8211_v36, %v8202_v39 }
 0x325   : > { %v8217_v52 = vrot.slane %v2365_v53, %v7091_v50  ;;  %v8220_v16 = vrot.slane %v2366_v46, %v7091_v50  ;;  %v2293_v30 = vcombine.low %v8208_v23, %v8199_v11  ;;  %v3578_v46 = vsel %vm3421_vm6, %v1920_v44, -inf }
 0x326   : > { %v8184_v10 = vpop.permute.xlu0 %1072  ;;  %v1070_v37 = vpop.permute.xlu1 %1069  ;;  %v2189_v42 = vcombine.low %v2133_v40, %v8214_v21 }
 0x327   : > { %3567 = vmax.xlane.f32.xlu0 %v3566_v15  ;;  %v2381_v6 = vcombine.low %v1064_v19, %v1070_v37  ;;  %v2382_v58 = vcombine.high %v1064_v19, %v1070_v37  ;;  %v8229_v19 = vrot.slane %v2197_v63, %v7091_v50  ;;  %v1784_v63 = vcombine.high %v8140_v4, %v8143_v47 }
 0x328   : > { %3522 = vmax.xlane.f32.xlu1 %v3521_v51  ;;  %v3440_v44 = vsel %vm3421_vm6, %v2189_v42, -inf  ;;  %v2158_v42 = vcombine.high %v8146_v28, %v8132_v31 }
 0x329   : > { %v8223_v15 = vrot.slane %v2381_v6, %v7091_v50  ;;  %v8226_v61 = vrot.slane %v2382_v58, %v7091_v50  ;;  %v3569_v6 = vsel %vm3421_vm6, %v1512_v34, -inf  ;;  %v8255_v58 = vrot.slane %v2397_v55, %v7128_v48 }
 0x32a   : > { %v1079_v24 = vpop.permute.xlu0 %1078  ;;  %v1076_v51 = vpop.permute.xlu1 %1075 }
 0x32b   : > { %3573 = vmax.xlane.f32.xlu0 %v3572_v29  ;;  %v2429_v32 = vcombine.low %v8217_v52, %v8223_v15  ;;  %v2446_v0 = vcombine.high %v8220_v16, %v8226_v61  ;;  %v2261_v29 = vcombine.low %v8229_v19, %v8205_v9  ;;  %v2470_v1 = vcombine.high %v8184_v10, %v1079_v24 }
 0x32c   : > { %3528 = vmax.xlane.f32.xlu1 %v3527_v2  ;;  %v8258_v2 = vrot.slane %v2293_v30, %v7128_v48 }
 0x32d   : > { %v8249_v56 = vrot.slane %v2429_v32, %v7128_v48  ;;  %v8262_v32 = vrot.slane %v2261_v29, %v7128_v48  ;;  %v8273_v30 = vrot.slane %v2446_v0, %v7128_v48  ;;  %v3575_v29 = vsel %vm3421_vm6, %v1784_v63, -inf }
 0x32e   : > { %v1085_v53 = vpop.permute.xlu0 %1084  ;;  %v1082_v41 = vpop.permute.xlu1 %1081  ;;  %v8287_v0 = vrot.slane %v2414_v13, %v7128_v48  ;;  %v2126_v13 = vcombine.high %v8156_v60, %v8159_v43 }
 0x32f   : > { %3579 = vmax.xlane.f32.xlu0 %v3578_v46  ;;  %v2486_v37 = vcombine.high %v1076_v51, %v1082_v41  ;;  %v2485_v59 = vcombine.low %v1076_v51, %v1082_v41  ;;  %v8265_v46 = vrot.slane %v2470_v1, %v7091_v50  ;;  %v2461_v34 = vcombine.low %v8255_v58, %v8249_v56 }
 0x330   : > { %3570 = vmax.xlane.f32.xlu1 %v3569_v6  ;;  %v2469_v51 = vcombine.low %v8184_v10, %v1079_v24  ;;  %v2325_v41 = vcombine.low %v8262_v32, %v8258_v2  ;;  %v2190_v24 = vcombine.high %v2133_v40, %v8214_v21  ;;  %v2467_v6 = vcombine.low %v8287_v0, %v8273_v30  ;;  %v10485_v21 = vld [vmem:[#allocation51_spill] sm:$0xff] }
 0x331   : > { %v8268_v4 = vrot.slane %v2486_v37, %v7091_v50  ;;  %v8290_v10 = vrot.slane %v2485_v59, %v7091_v50  ;;  %v3446_v37 = vsel %vm3421_vm6, %v2461_v34, -inf  ;;  %v8309_v34 = vrot.slane %v2158_v42, %v7128_v48 }
 0x332   : > { %v1091_v47 = vpop.permute.xlu0 %1090  ;;  %v1088_v55 = vpop.permute.xlu1 %1087  ;;  %v8303_v59 = vrot.slane %v2469_v51, %v7091_v50  ;;  %v3488_v60 = vsel %vm3421_vm6, %v2190_v24, -inf  ;;  %v2462_v43 = vcombine.high %v8255_v58, %v8249_v56  ;;  %v1973_v24 = vcombine.low %v7756_v35, %v7797_v17 }
 0x333   : > { %3441 = vmax.xlane.f32.xlu0 %v3440_v44  ;;  %v2550_v1 = vcombine.high %v8265_v46, %v8268_v4  ;;  %v2501_v63 = vcombine.low %v1085_v53, %v1091_v47  ;;  %v2502_v31 = vcombine.high %v1085_v53, %v1091_v47  ;;  %v1941_v44 = vcombine.low %v7672_v25, %v7716_v8 }
 0x334   : > { %3576 = vmax.xlane.f32.xlu1 %v3575_v29  ;;  %v3443_v47 = vsel %vm3421_vm6, %v2325_v41, -inf  ;;  %v2430_v25 = vcombine.high %v8217_v52, %v8223_v15  ;;  %v2533_v8 = vcombine.low %v8303_v59, %v8290_v10  ;;  %v1957_v41 = vcombine.low %v7714_v5, %v7754_v62 }
 0x335   : > { %v8319_v51 = vrot.slane %v2501_v63, %v7091_v50  ;;  %v2398_v56 = vcombine.high %v8211_v36, %v8202_v39  ;;  %v8337_v63 = vrot.slane %v2126_v13, %v7128_v48  ;;  %v8346_v62 = vrot.slane %v1941_v44, %v7091_v50 }
 0x336   : > { %v8293_v28 = vpop.permute.xlu0 %1096  ;;  %v1094_v29 = vpop.permute.xlu1 %1093  ;;  %v2262_v35 = vcombine.high %v8229_v19, %v8205_v9  ;;  %v8353_v39 = vrot.slane %v2430_v25, %v7128_v48  ;;  %v2541_v36 = vrot.slane %v2533_v8, %v7128_v48  ;;  %v8360_v44 = vrot.slane %v1957_v41, %v7091_v50 }
 0x337   : > { %3447 = vmax.xlane.f32.xlu0 %v3446_v37  ;;  %v2517_v40 = vcombine.low %v1088_v55, %v1094_v29  ;;  %v2518_v53 = vcombine.high %v1088_v55, %v1094_v29  ;;  %v8322_v55 = vrot.slane %v2502_v31, %v7091_v50  ;;  %v1925_v31 = vcombine.low %v7674_v57, %v7691_v22 }
 0x338   : > { %3444 = vmax.xlane.f32.xlu1 %v3443_v47  ;;  %v2191_v17 = vcombine.low %v8337_v63, %v8309_v34  ;;  %v3494_v22 = vsel %vm3421_vm6, %v2462_v43, -inf  ;;  %v8363_v29 = vrot.slane %v1973_v24, %v7091_v50  ;;  %v2294_v9 = vcombine.high %v8208_v23, %v8199_v11 }
 0x339   : > { %v8325_v42 = vrot.slane %v2517_v40, %v7091_v50  ;;  %v8328_v52 = vrot.slane %v2518_v53, %v7091_v50  ;;  %v8368_v40 = vrot.slane %v2398_v56, %v7128_v48  ;;  %v8376_v24 = vrot.slane %v2262_v35, %v7128_v48 }
 0x33a   : > { %v1103_v15 = vpop.permute.xlu0 %1102  ;;  %v1100_v58 = vpop.permute.xlu1 %1099  ;;  %v3536_v43 = vsel %vm3421_vm6, %v2191_v17, -inf  ;;  %v8391_v35 = vrot.slane %v2294_v9, %v7128_v48  ;;  %v10423_v9 = vld [vmem:[#allocation14_spill] sm:$0xff] }
 0x33b   : > { %3489 = vmax.xlane.f32.xlu0 %v3488_v60  ;;  %v2565_v37 = vcombine.low %v8319_v51, %v8325_v42  ;;  %v2582_v5 = vcombine.high %v8322_v55, %v8328_v52  ;;  %v2606_v57 = vcombine.high %v8293_v28, %v1103_v15  ;;  %v2326_v60 = vcombine.high %v8262_v32, %v8258_v2  ;;  %v10422_v32 = vld [vmem:[#allocation13_spill] sm:$0xff] }
 0x33c   : > { %v2463_v41 = vcombine.low %v8368_v40, %v8353_v39  ;;  %v2605_v23 = vcombine.low %v8293_v28, %v1103_v15  ;;  %v8397_v28 = vrot.slane %v2550_v1, %v7128_v48 }
 0x33d   : > { %v2573_v13 = vrot.slane %v2565_v37, %v7128_v48  ;;  %v8379_v11 = vrot.slane %v2582_v5, %v7128_v48  ;;  %v8383_v56 = vrot.slane %v2606_v57, %v7091_v50 }
 0x33e   : > { %v1106_v19 = vpop.permute.xlu1 %1105  ;;  %v1109_v53 = vpop.permute.xlu0 %1108 }
 0x33f   : > { %3495 = vmax.xlane.f32.xlu0 %v3494_v22  ;;  %v2621_v47 = vcombine.low %v1100_v58, %v1106_v19  ;;  %v2622_v25 = vcombine.high %v1100_v58, %v1106_v19  ;;  %v2597_v8 = vcombine.low %v2541_v36, %v2573_v13  ;;  %v2637_v37 = vcombine.low %v1109_v53, %v10422_v32 }
 0x340   : > { %v2638_v15 = vcombine.high %v1109_v53, %v10422_v32  ;;  %v3491_v22 = vsel %vm3421_vm6, %v2326_v60, -inf  ;;  %v2566_v19 = vcombine.high %v8319_v51, %v8325_v42  ;;  %v2613_v53 = vrot.slane %v2605_v23, %v7091_v50 }
 0x341   : > { %v8386_v58 = vrot.slane %v2622_v25, %v7091_v50  ;;  %v3449_v2 = vsel %vm3421_vm6, %v2597_v8, -inf  ;;  %v2629_v5 = vrot.slane %v2621_v47, %v7091_v50  ;;  %v3542_v8 = vsel %vm3421_vm6, %v2463_v41, -inf }
 0x342   : > { %3450 = vmax.xlane.f32.xlu1 %v3449_v2  ;;  %v1113_v17 = vpop.permute.xlu1 %1112  ;;  %v2598_v32 = vcombine.high %v2541_v36, %v2573_v13  ;;  %v2534_v60 = vcombine.high %v8303_v59, %v8290_v10  ;;  %v2645_v51 = vrot.slane %v2637_v37, %v7091_v50  ;;  %v8420_v41 = vrot.slane %v2638_v15, %v7091_v50 }
 0x343   : > { %3537 = vmax.xlane.f32.xlu0 %v3536_v43  ;;  %v2686_v57 = vcombine.high %v8383_v56, %v8386_v58  ;;  %v1117_v25 = vsel %vm1116_vm11, %v1113_v17, %v10423_v9  ;;  %v10424_v43 = vld [vmem:[#allocation15_spill] sm:$0xff]  ;;  %v2669_v17 = vcombine.low %v2613_v53, %v2629_v5  ;;  %v1933_v36 = vrot.slane %v1925_v31, %v7091_v50 }
 0x344   : > { %v2653_v47 = vcombine.low %v1117_v25, %v10424_v43  ;;  %v2654_v2 = vcombine.high %v1117_v25, %v10424_v43  ;;  %v2021_v10 = vcombine.low %v8360_v44, %v8363_v29  ;;  %v2327_v59 = vcombine.low %v8376_v24, %v8391_v35 }
 0x345   : > { %v3497_v15 = vsel %vm3421_vm6, %v2598_v32, -inf  ;;  %v1989_v25 = vcombine.low %v1933_v36, %v8346_v62  ;;  %v8448_v32 = vrot.slane %v2686_v57, %v7128_v48 }
 0x346   : > { %3492 = vmax.xlane.f32.xlu1 %v3491_v22  ;;  %v2661_v23 = vrot.slane %v2653_v47, %v7091_v50  ;;  %v8424_v9 = vrot.slane %v2654_v2, %v7091_v50  ;;  %v8435_v22 = vrot.slane %v2566_v19, %v7128_v48  ;;  %v8439_v50 = vrot.slane %v2534_v60, %v7128_v48 }
 0x347   : > { %3543 = vmax.xlane.f32.xlu0 %v3542_v8  ;;  %v2677_v8 = vrot.slane %v2669_v17, %v7128_v48  ;;  %v2029_v2 = vrot.slane %v2021_v10, %v7128_v48  ;;  %v2670_v19 = vcombine.high %v2613_v53, %v2629_v5  ;;  %v3539_v42 = vsel %vm3421_vm6, %v2327_v59, -inf }
 0x348   : > { %v2701_v13 = vcombine.low %v2645_v51, %v2661_v23  ;;  %v2718_v37 = vcombine.high %v8420_v41, %v8424_v9  ;;  %v2702_v31 = vcombine.high %v2645_v51, %v2661_v23  ;;  %v2599_v60 = vcombine.low %v8439_v50, %v8435_v22 }
 0x349   : > { %v1997_v57 = vrot.slane %v1989_v25, %v7128_v48  ;;  %v2022_v53 = vcombine.high %v8360_v44, %v8363_v29  ;;  %v2192_v29 = vcombine.high %v8337_v63, %v8309_v34 }
 0x34a   : > { %3498 = vmax.xlane.f32.xlu1 %v3497_v15  ;;  %v2709_v43 = vrot.slane %v2701_v13, %v7128_v48  ;;  %v8444_v47 = vrot.slane %v2718_v37, %v7128_v48  ;;  %v2716_v5 = vrot.slane %v2702_v31, %v7128_v48  ;;  %v3545_v59 = vsel %vm3421_vm6, %v2599_v60, -inf }
 0x34b   : > { %v2684_v13 = vrot.slane %v2670_v19, %v7128_v48  ;;  %v1990_v37 = vcombine.high %v1933_v36, %v8346_v62  ;;  %v2036_v31 = vrot.slane %v2022_v53, %v7128_v48  ;;  %v3584_v19 = vsel %vm3421_vm6, %v2192_v29, -inf  ;;  %v10426_v53 = vld [vmem:[#allocation61_spill] sm:$0xff] }
 0x34c   : > { %v2733_v15 = vcombine.low %v2677_v8, %v2709_v43  ;;  %v2734_v10 = vcombine.high %v2677_v8, %v2709_v43  ;;  %v2054_v8 = vcombine.high %v1997_v57, %v2029_v2 }
 0x34d   : > { %v2004_v43 = vrot.slane %v1990_v37, %v7128_v48  ;;  %v2736_v34 = vcombine.high %v2684_v13, %v2716_v5 }
 0x34e   : > { %3540 = vmax.xlane.f32.xlu1 %v3539_v42  ;;  %v3452_v23 = vsel %vm3421_vm6, %v2733_v15, -inf  ;;  %v2053_v42 = vcombine.low %v1997_v57, %v2029_v2  ;;  %v3500_v17 = vsel %vm3421_vm6, %v2734_v10, -inf  ;;  %v2735_v15 = vcombine.low %v2684_v13, %v2716_v5  ;;  %v10425_v57 = vld [vmem:[#allocation60_spill] sm:$0xff] }
 0x34f   : > { %3453 = vmax.xlane.f32.xlu0 %v3452_v23  ;;  %v3485_v62 = vsel %vm3421_vm6, %v2054_v8, -inf  ;;  %v2055_v36 = vcombine.low %v2004_v43, %v2036_v31  ;;  %v2464_v2 = vcombine.high %v8368_v40, %v8353_v39  ;;  %v2328_v10 = vcombine.high %v8376_v24, %v8391_v35  ;;  %v10427_v40 = vld [vmem:[#allocation56_spill] sm:$0xff]  ;;  %v10431_v24 = vld [vmem:[#allocation29_spill] sm:$0xff] }
 0x350   : > { %v3437_v25 = vsel %vm3421_vm6, %v2053_v42, -inf  ;;  %v3548_v44 = vsel %vm3421_vm6, %v2735_v15, -inf  ;;  %v3596_v39 = vsel %vm3421_vm6, %v2736_v34, -inf  ;;  %v10428_v42 = vld [vmem:[#allocation57_spill] sm:$0xff]  ;;  %v2600_v5 = vcombine.high %v8439_v50, %v8435_v22  ;;  %v10429_v13 = vld [vmem:[#allocation72_spill] sm:$0xff] }
 0x351   : > { %v3533_v60 = vsel %vm3421_vm6, %v2055_v36, -inf  ;;  %v3590_v23 = vsel %vm3421_vm6, %v2464_v2, -inf  ;;  %v1325_v37 = vcombine.low %v10428_v42, %v10427_v40  ;;  %v3587_v15 = vsel %vm3421_vm6, %v2328_v10, -inf  ;;  %v10432_v35 = vld [vmem:[#allocation28_spill] sm:$0xff]  ;;  %v10437_v2 = vld [vmem:[#allocation93_spill] sm:$0xff]  ;;  %v10444_v42 = vld [vmem:[#allocation90_spill] sm:$0xff] }
 0x352   : > { %3546 = vmax.xlane.f32.xlu1 %v3545_v59  ;;  %v1357_v59 = vcombine.low %v10426_v53, %v10425_v57  ;;  %v10436_v50 = vld [vmem:[#allocation92_spill] sm:$0xff]  ;;  %v10441_v53 = vld [vmem:[#allocation66_spill] sm:$0xff]  ;;  %v10443_v40 = vld [vmem:[#allocation89_spill] sm:$0xff] }
 0x353   : > { %3501 = vmax.xlane.f32.xlu0 %v3500_v17  ;;  %v2056_v17 = vcombine.high %v2004_v43, %v2036_v31  ;;  %v10433_v31 = vcombine.high %v10431_v24, %v10432_v35  ;;  %v10434_v43 = vld [vmem:[#allocation69_spill] sm:$0xff]  ;;  %v8502_v22 = vrot.slane %v1325_v37, %v7128_v48  ;;  %v1869_v37 = vcombine.low %v10444_v42, %v10443_v40  ;;  %v10448_v35 = vld [vmem:[#allocation63_spill] sm:$0xff] }
 0x354   : > { %v8496_v29 = vrot.slane %v1357_v59, %v7128_v48  ;;  %v10442_v59 = vld [vmem:[#allocation67_spill] sm:$0xff] }
 0x355   : > { %v3581_v63 = vsel %vm3421_vm6, %v2056_v17, -inf  ;;  %v10438_v17 = vld [vmem:[#allocation45_spill] sm:$0xff]  ;;  %v8548_v42 = vrot.slane %v1869_v37, %v7128_v48 }
 0x356   : > { %3438 = vmax.xlane.f32.xlu1 %v3437_v25  ;;  %v10430_v25 = vld [vmem:[#allocation73_spill] sm:$0xff]  ;;  %v1377_v10 = vcombine.low %v8502_v22, %v8496_v29 }
 0x357   : > { %3549 = vmax.xlane.f32.xlu0 %v3548_v44  ;;  %v1629_v8 = vcombine.low %v10430_v25, %v10429_v13  ;;  %v3602_v44 = vsel %vm3421_vm6, %v10433_v31, -inf  ;;  %v10449_v31 = vld [vmem:[#allocation64_spill] sm:$0xff] }
 0x359   : > { %v8513_v57 = vrot.slane %v1629_v8, %v7128_v48  ;;  %v10450_v8 = vld [vmem:[#allocation84_spill] sm:$0xff] }
 0x35a   : > { %3486 = vmax.xlane.f32.xlu1 %v3485_v62  ;;  %v10435_v62 = vld [vmem:[#allocation70_spill] sm:$0xff] }
 0x35b   : > { %3585 = vmax.xlane.f32.xlu0 %v3584_v19  ;;  %v1597_v36 = vcombine.low %v10435_v62, %v10434_v43  ;;  %v3593_v19 = vsel %vm3421_vm6, %v2600_v5, -inf  ;;  %v10446_v5 = vld [vmem:[#allocation20_spill] sm:$0xff]  ;;  %v2173_v43 = vcombine.low %v10450_v8, %v7968_v3  ;;  %v3614_v62 = vsel %vm3421_vm6, %v1377_v10, -inf }
 0x35c   : > { %v10456_v3 = vld [vmem:[#allocation36_spill] sm:$0xff] }
 0x35d   : > { %v8524_v24 = vrot.slane %v1597_v36, %v7128_v48 }
 0x35e   : > { %3534 = vmax.xlane.f32.xlu1 %v3533_v60  ;;  %v1901_v60 = vcombine.low %v10437_v2, %v10436_v50  ;;  %v10451_v2 = vld [vmem:[#allocation86_spill] sm:$0xff] }
 0x35f   : > { %3591 = vmax.xlane.f32.xlu0 %v3590_v23  ;;  %v10439_v23 = vld [vmem:[#allocation44_spill] sm:$0xff] }
 0x360   : > { %v10440_v34 = vcombine.high %v10438_v17, %v10439_v23  ;;  %v8534_v50 = vrot.slane %v1901_v60, %v7128_v48  ;;  %v10452_v17 = vld [vmem:[#allocation87_spill] sm:$0xff] }
 0x361   : > { %v1765_v23 = vcombine.low %v10452_v17, %v10451_v2  ;;  %v10458_v60 = vld [vmem:[#allocation79_spill] sm:$0xff] }
 0x362   : > { %3582 = vmax.xlane.f32.xlu1 %v3581_v63  ;;  %v3608_v63 = vsel %vm3421_vm6, %v10440_v34, -inf  ;;  %v10453_v34 = vld [vmem:[#allocation12_spill] sm:$0xff] }
 0x363   : > { %3597 = vmax.xlane.f32.xlu0 %v3596_v39  ;;  %v1493_v39 = vcombine.low %v10442_v59, %v10441_v53  ;;  %v10455_v59 = vld [vmem:[#allocation37_spill] sm:$0xff]  ;;  %v8566_v8 = vrot.slane %v1765_v23, %v7128_v48 }
 0x364   : > { %v10457_v40 = vcombine.high %v10455_v59, %v10456_v3  ;;  %v10466_v59 = vld [vmem:[#allocation96_spill] sm:$0xff] }
 0x365   : > { %v8539_v36 = vrot.slane %v1493_v39, %v7128_v48  ;;  %v2445_v39 = vcombine.low %v8220_v16, %v8226_v61  ;;  %v2413_v16 = vcombine.low %v8149_v27, %v8152_v18  ;;  %v10462_v61 = vld [vmem:[#allocation54_spill] sm:$0xff] }
 0x366   : > { %3588 = vmax.xlane.f32.xlu1 %v3587_v15  ;;  %v10445_v15 = vld [vmem:[#allocation21_spill] sm:$0xff]  ;;  %v3605_v10 = vsel %vm3421_vm6, %v10457_v40, -inf  ;;  %v2717_v40 = vcombine.low %v8420_v41, %v8424_v9  ;;  %v2685_v41 = vcombine.low %v8383_v56, %v8386_v58 }
 0x367   : > { %3603 = vmax.xlane.f32.xlu0 %v3602_v44  ;;  %v10447_v13 = vcombine.high %v10445_v15, %v10446_v5  ;;  %v1461_v44 = vcombine.low %v10449_v31, %v10448_v35  ;;  %v10459_v15 = vld [vmem:[#allocation80_spill] sm:$0xff]  ;;  %v1921_v35 = vcombine.low %v8548_v42, %v8534_v50  ;;  %v8561_v31 = vrot.slane %v2173_v43, %v7128_v48 }
 0x368   : > { %v1733_v5 = vcombine.low %v10459_v15, %v10458_v60  ;;  %v8602_v9 = vrot.slane %v2413_v16, %v7128_v48  ;;  %v8620_v58 = vrot.slane %v2717_v40, %v7128_v48  ;;  %v10470_v16 = vld [vmem:[#allocation23_spill] sm:$0xff] }
 0x369   : > { %v3599_v25 = vsel %vm3421_vm6, %v10447_v13, -inf  ;;  %v8553_v13 = vrot.slane %v1461_v44, %v7128_v48  ;;  %v10460_v44 = vld [vmem:[#allocation99_spill] sm:$0xff]  ;;  %v3626_v27 = vsel %vm3421_vm6, %v1921_v35, -inf  ;;  %v10468_v35 = vld [vmem:[#allocation26_spill] sm:$0xff] }
 0x36a   : > { %3594 = vmax.xlane.f32.xlu1 %v3593_v19  ;;  %v1649_v19 = vcombine.low %v8524_v24, %v8513_v57  ;;  %v8582_v23 = vrot.slane %v1733_v5, %v7128_v48  ;;  %v2309_v5 = vcombine.low %v8087_v7, %v8090_v26 }
 0x36b   : > { %3609 = vmax.xlane.f32.xlu0 %v3608_v63  ;;  %v10454_v63 = vld [vmem:[#allocation53_spill] sm:$0xff]  ;;  %v1513_v37 = vcombine.low %v8553_v13, %v8539_v36 }
 0x36c   : > { %v2141_v53 = vcombine.low %v10454_v63, %v10453_v34  ;;  %v10465_v63 = vld [vmem:[#allocation97_spill] sm:$0xff]  ;;  %v1785_v15 = vcombine.low %v8582_v23, %v8566_v8 }
 0x36d   : > { %v2005_v3 = vcombine.low %v10466_v59, %v10465_v63  ;;  %v3617_v60 = vsel %vm3421_vm6, %v1513_v37, -inf  ;;  %v10471_v63 = vld [vmem:[#allocation43_spill] sm:$0xff]  ;;  %v10472_v59 = vld [vmem:[#allocation42_spill] sm:$0xff] }
 0x36e   : > { %3600 = vmax.xlane.f32.xlu1 %v3599_v25  ;;  %v3620_v25 = vsel %vm3421_vm6, %v1649_v19, -inf  ;;  %v10463_v19 = vld [vmem:[#allocation55_spill] sm:$0xff]  ;;  %v8577_v43 = vrot.slane %v2141_v53, %v7128_v48  ;;  %v8592_v53 = vrot.slane %v2445_v39, %v7128_v48 }
 0x36f   : > { %3615 = vmax.xlane.f32.xlu0 %v3614_v62  ;;  %v10461_v62 = vld [vmem:[#allocation98_spill] sm:$0xff]  ;;  %v10464_v17 = vcombine.high %v10462_v61, %v10463_v19  ;;  %v10467_v39 = vld [vmem:[#allocation27_spill] sm:$0xff]  ;;  %v8610_v37 = vrot.slane %v2005_v3, %v7128_v48  ;;  %v3623_v19 = vsel %vm3421_vm6, %v1785_v15, -inf  ;;  %v3261_v3 = vcombine.low %v10472_v59, %v10471_v63 }
 0x370   : > { %v2037_v2 = vcombine.low %v10461_v62, %v10460_v44  ;;  %v2989_v44 = vcombine.low %v10468_v35, %v10467_v39  ;;  %v2277_v62 = vcombine.low %v8033_v33, %v8036_v14  ;;  %v2465_v56 = vcombine.low %v8602_v9, %v8592_v53  ;;  %v10473_v15 = vld [vmem:[#allocation19_spill] sm:$0xff]  ;;  %v10475_v35 = vld [vmem:[#allocation40_spill] sm:$0xff] }
 0x371   : > { %v3611_v34 = vsel %vm3421_vm6, %v10464_v17, -inf  ;;  %v2581_v17 = vcombine.low %v8322_v55, %v8328_v52  ;;  %v8630_v33 = vrot.slane %v2685_v41, %v7128_v48 }
 0x372   : > { %3606 = vmax.xlane.f32.xlu1 %v3605_v10  ;;  %v2193_v10 = vcombine.low %v8577_v43, %v8561_v31  ;;  %v8638_v40 = vrot.slane %v2989_v44, %v7128_v48  ;;  %v3638_v55 = vsel %vm3421_vm6, %v2465_v56, -inf  ;;  %v10476_v44 = vld [vmem:[#allocation39_spill] sm:$0xff] }
 0x373   : > { %3621 = vmax.xlane.f32.xlu0 %v3620_v25  ;;  %v8605_v25 = vrot.slane %v2037_v2, %v7128_v48  ;;  %v10469_v2 = vld [vmem:[#allocation24_spill] sm:$0xff] }
 0x374   : > { %v3632_v7 = vsel %vm3421_vm6, %v2193_v10, -inf  ;;  %v2957_v61 = vcombine.low %v10470_v16, %v10469_v2  ;;  %v2737_v10 = vcombine.low %v8630_v33, %v8620_v58  ;;  %v10477_v2 = vld [vmem:[#allocation17_spill] sm:$0xff]  ;;  %v10478_v16 = vld [vmem:[#allocation16_spill] sm:$0xff] }
 0x375   : > { %v2057_v14 = vcombine.low %v8610_v37, %v8605_v25 }
 0x376   : > { %3612 = vmax.xlane.f32.xlu1 %v3611_v34  ;;  %v8633_v34 = vrot.slane %v2309_v5, %v7128_v48  ;;  %v10474_v5 = vld [vmem:[#allocation18_spill] sm:$0xff]  ;;  %v8653_v39 = vrot.slane %v2957_v61, %v7128_v48  ;;  %v3644_v61 = vsel %vm3421_vm6, %v2737_v10, -inf }
 0x377   : > { %3627 = vmax.xlane.f32.xlu0 %v3626_v27  ;;  %v2549_v27 = vcombine.low %v8265_v46, %v8268_v4  ;;  %v2853_v41 = vcombine.low %v10474_v5, %v10473_v15  ;;  %v3229_v46 = vcombine.low %v10476_v44, %v10475_v35  ;;  %v10479_v15 = vld [vmem:[#allocation35_spill] sm:$0xff]  ;;  %v10480_v5 = vld [vmem:[#allocation34_spill] sm:$0xff] }
 0x378   : > { %v8587_v18 = vpop.xlane.xlu0 %3459  ;;  %v3009_v59 = vcombine.low %v8653_v39, %v8638_v40  ;;  %v3125_v35 = vcombine.low %v10480_v5, %v10479_v15 }
 0x37a   : > { %3618 = vmax.xlane.f32.xlu1 %v3617_v60  ;;  %v8648_v60 = vrot.slane %v2277_v62, %v7128_v48  ;;  %v8663_v62 = vrot.slane %v2581_v17, %v7128_v48  ;;  %v8679_v17 = vrot.slane %v2853_v41, %v7128_v48  ;;  %v3650_v41 = vsel %vm3421_vm6, %v3009_v59, -inf }
 0x37b   : > { %3633 = vmax.xlane.f32.xlu0 %v3632_v7  ;;  %v3629_v7 = vsel %vm3421_vm6, %v2057_v14, -inf  ;;  %v8676_v14 = vrot.slane %v3261_v3, %v7128_v48  ;;  %v10481_v3 = vld [vmem:[#allocation32_spill] sm:$0xff]  ;;  %v8709_v59 = vrot.slane %v3125_v35, %v7128_v48 }
 0x37c   : > { %v8615_v26 = vpop.xlane.xlu0 %3465  ;;  %v2329_v56 = vcombine.low %v8648_v60, %v8633_v34 }
 0x37e   : > { %3624 = vmax.xlane.f32.xlu1 %v3623_v19  ;;  %v2821_v19 = vcombine.low %v10478_v16, %v10477_v2  ;;  %v3635_v10 = vsel %vm3421_vm6, %v2329_v56, -inf  ;;  %v10482_v2 = vld [vmem:[#allocation31_spill] sm:$0xff]  ;;  %v10484_v56 = vld [vmem:[#allocation52_spill] sm:$0xff] }
 0x37f   : > { %3639 = vmax.xlane.f32.xlu0 %v3638_v55  ;;  %v8673_v55 = vrot.slane %v2549_v27, %v7128_v48  ;;  %v8689_v27 = vrot.slane %v3229_v46, %v7128_v48  ;;  %v3093_v16 = vcombine.low %v10482_v2, %v10481_v3  ;;  %v3397_v1 = vcombine.low %v10485_v21, %v10484_v56  ;;  %v10486_v2 = vld [vmem:[#allocation48_spill] sm:$0xff] }
 0x380   : > { %v8643_v52 = vpop.xlane.xlu0 %3507  ;;  %v8699_v5 = vrot.slane %v2821_v19, %v7128_v48  ;;  %v3365_v51 = vcombine.low %v10487_v20, %v10486_v2  ;;  %v1378_v21 = vcombine.high %v8502_v22, %v8496_v29  ;;  %v1650_v29 = vcombine.high %v8524_v24, %v8513_v57 }
 0x381   : > { %v8657_v4 = vpop.xlane.xlu1 %3456  ;;  %v3281_v15 = vcombine.low %v8689_v27, %v8676_v14  ;;  %v8719_v56 = vrot.slane %v3093_v16, %v7128_v48  ;;  %v8727_v20 = vrot.slane %v3397_v1, %v7128_v48 }
 0x382   : > { %3630 = vmax.xlane.f32.xlu1 %v3629_v7  ;;  %v2601_v7 = vcombine.low %v8673_v55, %v8663_v62  ;;  %v2873_v3 = vcombine.low %v8699_v5, %v8679_v17  ;;  %v8735_v22 = vrot.slane %v3365_v51, %v7128_v48  ;;  %v1514_v51 = vcombine.high %v8553_v13, %v8539_v36 }
 0x383   : > { %3645 = vmax.xlane.f32.xlu0 %v3644_v61  ;;  %v3656_v19 = vsel %vm3421_vm6, %v3281_v15, -inf  ;;  %v3662_v15 = vsel %vm3421_vm6, %v1378_v21, -inf  ;;  %v2466_v13 = vcombine.high %v8602_v9, %v8592_v53  ;;  %v2330_v9 = vcombine.high %v8648_v60, %v8633_v34 }
 0x384   : > { %v8668_v63 = vpop.xlane.xlu0 %3513  ;;  %v3647_v35 = vsel %vm3421_vm6, %v2873_v3, -inf  ;;  %v3417_v1 = vcombine.low %v8735_v22, %v8727_v20  ;;  %v3282_v60 = vcombine.high %v8689_v27, %v8676_v14  ;;  %v3146_v14 = vcombine.high %v8719_v56, %v8709_v59  ;;  %v10494_v27 = vld [vmem:[#allocation65_spill] sm:$0xff] }
 0x385   : > { %v8683_v44 = vpop.xlane.xlu1 %3462 }
 0x386   : > { %3636 = vmax.xlane.f32.xlu1 %v3635_v10  ;;  %v3641_v10 = vsel %vm3421_vm6, %v2601_v7, -inf  ;;  %v3659_v48 = vsel %vm3421_vm6, %v3417_v1, -inf }
 0x387   : > { %3651 = vmax.xlane.f32.xlu0 %v3650_v41 }
 0x388   : > { %v8694_v61 = vpop.xlane.xlu0 %3555 }
 0x389   : > { %10483 = vst [vmem:[#allocation81_spill] sm:$0xff] %v8694_v61  ;;  %v8703_v46 = vpop.xlane.xlu1 %3468 }
 0x38a   : > { %3642 = vmax.xlane.f32.xlu1 %v3641_v10  ;;  %v3145_v10 = vcombine.low %v8719_v56, %v8709_v59 }
 0x38b   : > { %3657 = vmax.xlane.f32.xlu0 %v3656_v19  ;;  %v3668_v19 = vsel %vm3421_vm6, %v1650_v29, -inf }
 0x38c   : > { %v8714_v41 = vpop.xlane.xlu0 %3561  ;;  %v3653_v3 = vsel %vm3421_vm6, %v3145_v10, -inf }
 0x38d   : > { %10488 = vst [vmem:[#allocation85_spill] sm:$0xff] %v8714_v41  ;;  %v8721_v7 = vpop.xlane.xlu1 %3504  ;;  %v10526_v41 = vld [vmem:[#allocation49_spill] sm:$0xff] }
 0x38e   : > { %3648 = vmax.xlane.f32.xlu1 %v3647_v35  ;;  %v1922_v35 = vcombine.high %v8548_v42, %v8534_v50  ;;  %v3665_v50 = vsel %vm3421_vm6, %v1514_v51, -inf  ;;  %v1786_v42 = vcombine.high %v8582_v23, %v8566_v8  ;;  %v2738_v23 = vcombine.high %v8630_v33, %v8620_v58 }
 0x38f   : > { %3663 = vmax.xlane.f32.xlu0 %v3662_v15  ;;  %v2194_v15 = vcombine.high %v8577_v43, %v8561_v31  ;;  %v2058_v43 = vcombine.high %v8610_v37, %v8605_v25  ;;  %v3010_v37 = vcombine.high %v8653_v39, %v8638_v40  ;;  %v3683_v58 = vsel %vm3421_vm6, %v2330_v9, -inf }
 0x390   : > { %v8730_v2 = vpop.xlane.xlu0 %3426  ;;  %v3674_v24 = vsel %vm3421_vm6, %v1922_v35, -inf  ;;  %v3671_v31 = vsel %vm3421_vm6, %v1786_v42, -inf  ;;  %v2602_v33 = vcombine.high %v8673_v55, %v8663_v62  ;;  %v2874_v39 = vcombine.high %v8699_v5, %v8679_v17 }
 0x391   : > { %v8737_v16 = vpop.xlane.xlu1 %3510  ;;  %v3677_v53 = vsel %vm3421_vm6, %v2058_v43, -inf  ;;  %v3701_v43 = vsel %vm3421_vm6, %v3146_v14, -inf  ;;  %v3728_v14 = vsel %vm3421_vm6, %v2195_v12, -inf  ;;  %v10516_v12 = vld [vmem:[#allocation100_spill] sm:$0xff] }
 0x392   : > { %3654 = vmax.xlane.f32.xlu1 %v3653_v3  ;;  %v3680_v3 = vsel %vm3421_vm6, %v2194_v15, -inf  ;;  %v3689_v40 = vsel %vm3421_vm6, %v2602_v33, -inf  ;;  %v3695_v42 = vsel %vm3421_vm6, %v2874_v39, -inf  ;;  %v10504_v33 = vld [vmem:[#allocation94_spill] sm:$0xff]  ;;  %v10509_v39 = vld [vmem:[#allocation68_spill] sm:$0xff] }
 0x393   : > { %3669 = vmax.xlane.f32.xlu0 %v3668_v19  ;;  %v3686_v19 = vsel %vm3421_vm6, %v2466_v13, -inf }
 0x394   : > { %v8743_v21 = vpop.xlane.xlu0 %3429 }
 0x395   : > { %v8747_v57 = vpop.xlane.xlu1 %3516 }
 0x396   : > { %3660 = vmax.xlane.f32.xlu1 %v3659_v48  ;;  %v3692_v48 = vsel %vm3421_vm6, %v2738_v23, -inf  ;;  %v10498_v23 = vld [vmem:[#allocation83_spill] sm:$0xff] }
 0x397   : > { %3675 = vmax.xlane.f32.xlu0 %v3674_v24  ;;  %v3698_v24 = vsel %vm3421_vm6, %v3010_v37, -inf }
 0x398   : > { %v8753_v10 = vpop.xlane.xlu0 %3435 }
 0x399   : > { %v8757_v29 = vpop.xlane.xlu1 %3552 }
 0x39a   : > { %10489 = vst [vmem:[#allocation82_spill] sm:$0xff] %v8757_v29  ;;  %3666 = vmax.xlane.f32.xlu1 %v3665_v50  ;;  %v3704_v50 = vsel %vm3421_vm6, %v3282_v60, -inf }
 0x39b   : > { %3681 = vmax.xlane.f32.xlu0 %v3680_v3  ;;  %v10495_v3 = vld [vmem:[#allocation62_spill] sm:$0xff] }
 0x39c   : > { %v8763_v36 = vpop.xlane.xlu0 %3471  ;;  %v10496_v13 = vcombine.low %v10494_v27, %v10495_v3 }
 0x39d   : > { %v8767_v1 = vpop.xlane.xlu1 %3558 }
 0x39e   : > { %10490 = vst [vmem:[#allocation76_spill] sm:$0xff] %v8767_v1  ;;  %3672 = vmax.xlane.f32.xlu1 %v3671_v31  ;;  %v3710_v31 = vsel %vm3421_vm6, %v10496_v13, -inf  ;;  %v10530_v1 = vld [vmem:[#allocation22_spill] sm:$0xff] }
 0x39f   : > { %3687 = vmax.xlane.f32.xlu0 %v3686_v19  ;;  %v3418_v19 = vcombine.high %v8735_v22, %v8727_v20 }
 0x3a0   : > { %v8773_v8 = vpop.xlane.xlu0 %3477 }
 0x3a1   : > { %v8777_v35 = vpop.xlane.xlu1 %3564  ;;  %v3707_v37 = vsel %vm3421_vm6, %v3418_v19, -inf }
 0x3a2   : > { %10491 = vst [vmem:[#allocation74_spill] sm:$0xff] %v8777_v35  ;;  %3678 = vmax.xlane.f32.xlu1 %v3677_v53  ;;  %v10499_v53 = vld [vmem:[#allocation78_spill] sm:$0xff] }
 0x3a3   : > { %3693 = vmax.xlane.f32.xlu0 %v3692_v48  ;;  %v10500_v59 = vcombine.low %v10498_v23, %v10499_v53  ;;  %v10527_v35 = vld [vmem:[#allocation46_spill] sm:$0xff] }
 0x3a4   : > { %v8783_v25 = vpop.xlane.xlu0 %3483 }
 0x3a5   : > { %v8787_v51 = vpop.xlane.xlu1 %3423  ;;  %v3716_v56 = vsel %vm3421_vm6, %v10500_v59, -inf }
 0x3a6   : > { %3684 = vmax.xlane.f32.xlu1 %v3683_v58  ;;  %v10503_v58 = vld [vmem:[#allocation95_spill] sm:$0xff] }
 0x3a7   : > { %3699 = vmax.xlane.f32.xlu0 %v3698_v24  ;;  %v10505_v24 = vcombine.low %v10503_v58, %v10504_v33 }
 0x3a8   : > { %v8793_v34 = vpop.xlane.xlu0 %3519 }
 0x3a9   : > { %10492 = vst [vmem:[#allocation77_spill] sm:$0xff] %v8793_v34  ;;  %v8797_v15 = vpop.xlane.xlu1 %3432  ;;  %v3722_v60 = vsel %vm3421_vm6, %v10505_v24, -inf }
 0x3aa   : > { %3690 = vmax.xlane.f32.xlu1 %v3689_v40  ;;  %v10508_v40 = vld [vmem:[#allocation71_spill] sm:$0xff] }
 0x3ab   : > { %3705 = vmax.xlane.f32.xlu0 %v3704_v50  ;;  %v10510_v50 = vcombine.low %v10508_v40, %v10509_v39 }
 0x3ac   : > { %v8803_v62 = vpop.xlane.xlu0 %3525 }
 0x3ad   : > { %10493 = vst [vmem:[#allocation75_spill] sm:$0xff] %v8803_v62  ;;  %v8805_v55 = vpop.xlane.xlu1 %3474  ;;  %v10533_v62 = vld [vmem:[#allocation41_spill] sm:$0xff] }
 0x3ae   : > { %3696 = vmax.xlane.f32.xlu1 %v3695_v42  ;;  %v3713_v42 = vsel %vm3421_vm6, %v10510_v50, -inf }
 0x3af   : > { %3711 = vmax.xlane.f32.xlu0 %v3710_v31  ;;  %v10512_v31 = vld [vmem:[#allocation91_spill] sm:$0xff] }
 0x3b0   : > { %v8814_v17 = vpop.xlane.xlu0 %3531 }
 0x3b1   : > { %10497 = vst [vmem:[#allocation13_spill] sm:$0xff] %v8814_v17  ;;  %v8816_v5 = vpop.xlane.xlu1 %3480 }
 0x3b2   : > { %3702 = vmax.xlane.f32.xlu1 %v3701_v43  ;;  %v10513_v43 = vld [vmem:[#allocation88_spill] sm:$0xff] }
 0x3b3   : > { %3717 = vmax.xlane.f32.xlu0 %v3716_v56  ;;  %v10514_v19 = vcombine.low %v10512_v31, %v10513_v43 }
 0x3b4   : > { %v8825_v9 = vpop.xlane.xlu0 %3567 }
 0x3b5   : > { %10501 = vst [vmem:[#allocation14_spill] sm:$0xff] %v8825_v9  ;;  %v8827_v48 = vpop.xlane.xlu1 %3522  ;;  %v3719_v59 = vsel %vm3421_vm6, %v10514_v19, -inf  ;;  %v10523_v9 = vld [vmem:[#allocation30_spill] sm:$0xff] }
 0x3b6   : > { %10502 = vst [vmem:[#allocation15_spill] sm:$0xff] %v8827_v48  ;;  %3708 = vmax.xlane.f32.xlu1 %v3707_v37  ;;  %v3734_v37 = vsel %vm3421_vm6, %v2467_v6, -inf  ;;  %v10521_v6 = vcombine.low %v8182_v54, %v8163_v49 }
 0x3b7   : > { %3723 = vmax.xlane.f32.xlu0 %v3722_v60  ;;  %v10517_v60 = vld [vmem:[#allocation50_spill] sm:$0xff] }
 0x3b8   : > { %v8834_v20 = vpop.xlane.xlu0 %3573  ;;  %v10518_v50 = vcombine.low %v10516_v12, %v10517_v60 }
 0x3b9   : > { %10506 = vst [vmem:[#allocation60_spill] sm:$0xff] %v8834_v20  ;;  %v8836_v22 = vpop.xlane.xlu1 %3528  ;;  %v10522_v20 = vld [vmem:[#allocation33_spill] sm:$0xff] }
 0x3ba   : > { %10507 = vst [vmem:[#allocation61_spill] sm:$0xff] %v8836_v22  ;;  %3714 = vmax.xlane.f32.xlu1 %v3713_v42  ;;  %v3725_v42 = vsel %vm3421_vm6, %v10518_v50, -inf  ;;  %v10524_v50 = vcombine.low %v10522_v20, %v10523_v9  ;;  %v10534_v22 = vld [vmem:[#allocation38_spill] sm:$0xff] }
 0x3bb   : > { %3729 = vmax.xlane.f32.xlu0 %v3728_v14  ;;  %v10519_v14 = vcombine.low %v8448_v32, %v8444_v47 }
 0x3bc   : > { %v8846_v13 = vpop.xlane.xlu0 %3579 }
 0x3bd   : > { %10511 = vst [vmem:[#allocation56_spill] sm:$0xff] %v8846_v13  ;;  %v8852_v56 = vpop.xlane.xlu1 %3570  ;;  %v3740_v19 = vsel %vm3421_vm6, %v10519_v14, -inf  ;;  %v10525_v14 = vcombine.low %v8397_v28, %v8379_v11 }
 0x3be   : > { %3720 = vmax.xlane.f32.xlu1 %v3719_v59  ;;  %10515 = vst [vmem:[#allocation57_spill] sm:$0xff] %v8852_v56 }
 0x3bf   : > { %3735 = vmax.xlane.f32.xlu0 %v3734_v37  ;;  %v3731_v37 = vsel %vm3421_vm6, %v10521_v6, -inf  ;;  %v10528_v6 = vcombine.low %v10526_v41, %v10527_v35 }
 0x3c0   : > { %v8858_v24 = vpop.xlane.xlu0 %3441 }
 0x3c1   : > { %v8870_v13 = vpop.xlane.xlu1 %3576 }
 0x3c2   : > { %3726 = vmax.xlane.f32.xlu1 %v3725_v42  ;;  %10520 = vst [vmem:[#allocation72_spill] sm:$0xff] %v8870_v13  ;;  %v3746_v42 = vsel %vm3421_vm6, %v10524_v50, -inf  ;;  %v10529_v50 = vld [vmem:[#allocation25_spill] sm:$0xff] }
 0x3c3   : > { %3741 = vmax.xlane.f32.xlu0 %v3740_v19  ;;  %v3737_v19 = vsel %vm3421_vm6, %v10525_v14, -inf  ;;  %v10531_v29 = vcombine.low %v10529_v50, %v10530_v1  ;;  %v10532_v14 = vcombine.high %v10494_v27, %v10495_v3  ;;  %v10538_v27 = vld [vmem:[#allocation59_spill] sm:$0xff]  ;;  %v10539_v3 = vld [vmem:[#allocation58_spill] sm:$0xff] }
 0x3c4   : > { %v8868_v59 = vpop.xlane.xlu0 %3447 }
 0x3c5   : > { %v8886_v13 = vpop.xlane.xlu1 %3444 }
 0x3c6   : > { %3732 = vmax.xlane.f32.xlu1 %v3731_v37  ;;  %v3752_v37 = vsel %vm3421_vm6, %v10528_v6, -inf  ;;  %v10535_v6 = vcombine.low %v10533_v62, %v10534_v22 }
 0x3c7   : > { %3747 = vmax.xlane.f32.xlu0 %v3746_v42  ;;  %v3743_v42 = vsel %vm3421_vm6, %v10531_v29, -inf  ;;  %v10537_v29 = vcombine.high %v10498_v23, %v10499_v53  ;;  %v10542_v53 = vcombine.high %v10508_v40, %v10509_v39  ;;  %v10545_v40 = vcombine.high %v8287_v0, %v8273_v30 }
 0x3c8   : > { %v8880_v56 = vpop.xlane.xlu0 %3489  ;;  %v10548_v0 = vcombine.high %v8182_v54, %v8163_v49  ;;  %v10551_v49 = vcombine.high %v10526_v41, %v10527_v35  ;;  %v10553_v41 = vcombine.high %v10533_v62, %v10534_v22 }
 0x3c9   : > { %v3782_v39 = vsel %vm3421_vm6, %v10545_v40, -inf }
 0x3ca   : > { %3738 = vmax.xlane.f32.xlu1 %v3737_v19  ;;  %v3758_v19 = vsel %vm3421_vm6, %v10532_v14, -inf  ;;  %v10540_v14 = vcombine.low %v10538_v27, %v10539_v3  ;;  %v3800_v54 = vsel %vm3421_vm6, %v10551_v49, -inf  ;;  %v3797_v35 = vsel %vm3421_vm6, %v10553_v41, -inf }
 0x3cb   : > { %3753 = vmax.xlane.f32.xlu0 %v3752_v37  ;;  %v3749_v37 = vsel %vm3421_vm6, %v10535_v6, -inf  ;;  %v10541_v6 = vcombine.high %v10503_v58, %v10504_v33  ;;  %v10544_v33 = vcombine.high %v10512_v31, %v10513_v43  ;;  %v10547_v31 = vcombine.high %v8448_v32, %v8444_v47 }
 0x3cc   : > { %v8892_v61 = vpop.xlane.xlu0 %3495  ;;  %v10550_v32 = vcombine.high %v8397_v28, %v8379_v11 }
 0x3cd   : > { %v3788_v43 = vsel %vm3421_vm6, %v10547_v31, -inf }
 0x3ce   : > { %3744 = vmax.xlane.f32.xlu1 %v3743_v42  ;;  %v3764_v42 = vsel %vm3421_vm6, %v10537_v29, -inf  ;;  %v3761_v29 = vsel %vm3421_vm6, %v10542_v53, -inf }
 0x3cf   : > { %v8902_v17 = vpop.xlane.xlu1 %3450  ;;  %3759 = vmax.xlane.f32.xlu0 %v3758_v19  ;;  %v3755_v19 = vsel %vm3421_vm6, %v10540_v14, -inf }
 0x3d0   : > { %v8908_v34 = vpop.xlane.xlu0 %3537 }
 0x3d1   : > { %10536 = vst [vmem:[#allocation73_spill] sm:$0xff] %v8908_v34 }
 0x3d2   : > { %3750 = vmax.xlane.f32.xlu1 %v3749_v37  ;;  %v3770_v37 = vsel %vm3421_vm6, %v10541_v6, -inf  ;;  %v3767_v6 = vsel %vm3421_vm6, %v10544_v33, -inf  ;;  %v3785_v33 = vsel %vm3421_vm6, %v10550_v32, -inf }
 0x3d3   : > { %v8914_v48 = vpop.xlane.xlu1 %3492  ;;  %3765 = vmax.xlane.f32.xlu0 %v3764_v42  ;;  %v10543_v42 = vcombine.high %v8028_v45, %v8012_v38  ;;  %v10546_v45 = vcombine.high %v10516_v12, %v10517_v60  ;;  %v10549_v12 = vcombine.high %v10522_v20, %v10523_v9  ;;  %v10552_v20 = vcombine.high %v10529_v50, %v10530_v1 }
 0x3d4   : > { %v8926_v23 = vpop.xlane.xlu0 %3543  ;;  %v10555_v1 = vcombine.high %v10538_v27, %v10539_v3  ;;  %v3979_v3 = vld [vmem:[%s10130_s6] sm:$0xff] }
 0x3d5   : > { %v3776_v14 = vsel %vm3421_vm6, %v10543_v42, -inf  ;;  %v3773_v53 = vsel %vm3421_vm6, %v10546_v45, -inf  ;;  %v3779_v42 = vsel %vm3421_vm6, %v10548_v0, -inf  ;;  %v3794_v60 = vsel %vm3421_vm6, %v10549_v12, -inf  ;;  %v3806_v0 = vld [vmem:[%s10129_s5] sm:$0xff] }
 0x3d6   : > { %3756 = vmax.xlane.f32.xlu1 %v3755_v19  ;;  %v3791_v40 = vsel %vm3421_vm6, %v10552_v20, -inf  ;;  %v3803_v50 = vsel %vm3421_vm6, %v10555_v1, -inf }
 0x3d7   : > { %v8924_v34 = vpop.xlane.xlu1 %3498  ;;  %3771 = vmax.xlane.f32.xlu0 %v3770_v37 }
 0x3da   : > { %3762 = vmax.xlane.f32.xlu1 %v3761_v29 }
 0x3db   : > { %v8936_v19 = vpop.xlane.xlu1 %3540  ;;  %3777 = vmax.xlane.f32.xlu0 %v3776_v14 }
 0x3dc   : > { %v8938_v58 = vpop.xlane.xlu0 %3453 }
 0x3de   : > { %3768 = vmax.xlane.f32.xlu1 %v3767_v6 }
 0x3df   : > { %v8948_v37 = vpop.xlane.xlu1 %3546  ;;  %3783 = vmax.xlane.f32.xlu0 %v3782_v39 }
 0x3e0   : > { %v8950_v38 = vpop.xlane.xlu0 %3501 }
 0x3e2   : > { %3774 = vmax.xlane.f32.xlu1 %v3773_v53 }
 0x3e3   : > { %v8960_v29 = vpop.xlane.xlu1 %3438  ;;  %3789 = vmax.xlane.f32.xlu0 %v3788_v43 }
 0x3e4   : > { %v8962_v30 = vpop.xlane.xlu0 %3549 }
 0x3e6   : > { %3780 = vmax.xlane.f32.xlu1 %v3779_v42 }
 0x3e7   : > { %v8972_v14 = vpop.xlane.xlu1 %3486  ;;  %3795 = vmax.xlane.f32.xlu0 %v3794_v60 }
 0x3e8   : > { %v8974_v47 = vpop.xlane.xlu0 %3585 }
 0x3ea   : > { %3786 = vmax.xlane.f32.xlu1 %v3785_v33 }
 0x3eb   : > { %v8984_v6 = vpop.xlane.xlu1 %3534  ;;  %3801 = vmax.xlane.f32.xlu0 %v3800_v54 }
 0x3ec   : > { %v8986_v9 = vpop.xlane.xlu0 %3591 }
 0x3ee   : > { %3792 = vmax.xlane.f32.xlu1 %v3791_v40 }
 0x3ef   : > { %v8992_v11 = vpop.xlane.xlu1 %3582 }
 0x3f0   : > { %v8994_v28 = vpop.xlane.xlu0 %3597 }
 0x3f2   : > { %3798 = vmax.xlane.f32.xlu1 %v3797_v35 }
 0x3f3   : > { %v9000_v39 = vpop.xlane.xlu1 %3588 }
 0x3f4   : > { %v9002_v45 = vpop.xlane.xlu0 %3603 }
 0x3f5   : > { %10554 = vst [vmem:[#allocation29_spill] sm:$0xff] %v9002_v45 }
 0x3f6   : > { %3804 = vmax.xlane.f32.xlu1 %v3803_v50 }
 0x3f7   : > { %v9008_v53 = vpop.xlane.xlu1 %3594 }
 0x3f8   : > { %v9010_v31 = vpop.xlane.xlu0 %3609 }
 0x3f9   : > { %10556 = vst [vmem:[#allocation28_spill] sm:$0xff] %v9010_v31 }
 0x3fb   : > { %v9012_v43 = vpop.xlane.xlu1 %3600 }
 0x3fc   : > { %v9014_v62 = vpop.xlane.xlu0 %3615 }
 0x3fd   : > { %10557 = vst [vmem:[#allocation69_spill] sm:$0xff] %v9014_v62 }
 0x3ff   : > { %v9016_v22 = vpop.xlane.xlu1 %3606 }
 0x400   : > { %v9021_v42 = vpop.xlane.xlu0 %3621 }
 0x401   : > { %10558 = vst [vmem:[#allocation70_spill] sm:$0xff] %v9021_v42  ;;  %3809 = vperm.xlu0 %6231, %v3806_v0  }
 0x403   : > { %v9023_v27 = vpop.xlane.xlu1 %3612 }
 0x404   : > { %10559 = vst [vmem:[#allocation92_spill] sm:$0xff] %v9023_v27  ;;  %v9028_v12 = vpop.xlane.xlu0 %3627 }
 0x405   : > { %10560 = vst [vmem:[#allocation93_spill] sm:$0xff] %v9028_v12 }
 0x407   : > { %v9030_v60 = vpop.xlane.xlu1 %3618  ;;  %3982 = vperm.xlu1 %6232, %v3979_v3  }
 0x408   : > { %10561 = vst [vmem:[#allocation45_spill] sm:$0xff] %v9030_v60  ;;  %v9032_v32 = vpop.xlane.xlu0 %3633 }
 0x409   : > { %10562 = vst [vmem:[#allocation44_spill] sm:$0xff] %v9032_v32 }
 0x40b   : > { %v9034_v33 = vpop.xlane.xlu1 %3624 }
 0x40c   : > { %10563 = vst [vmem:[#allocation66_spill] sm:$0xff] %v9034_v33  ;;  %v9036_v49 = vpop.xlane.xlu0 %3639 }
 0x40d   : > { %10564 = vst [vmem:[#allocation67_spill] sm:$0xff] %v9036_v49 }
 0x40f   : > { %v9038_v54 = vpop.xlane.xlu1 %3630 }
 0x410   : > { %10565 = vst [vmem:[#allocation89_spill] sm:$0xff] %v9038_v54  ;;  %v9040_v20 = vpop.xlane.xlu0 %3645 }
 0x411   : > { %10566 = vst [vmem:[#allocation90_spill] sm:$0xff] %v9040_v20 }
 0x413   : > { %v9042_v40 = vpop.xlane.xlu1 %3636 }
 0x414   : > { %10567 = vst [vmem:[#allocation21_spill] sm:$0xff] %v9042_v40  ;;  %v9044_v41 = vpop.xlane.xlu0 %3651 }
 0x415   : > { %10568 = vst [vmem:[#allocation20_spill] sm:$0xff] %v9044_v41 }
 0x417   : > { %v9046_v35 = vpop.xlane.xlu1 %3642 }
 0x418   : > { %10569 = vst [vmem:[#allocation63_spill] sm:$0xff] %v9046_v35  ;;  %v9048_v1 = vpop.xlane.xlu0 %3657 }
 0x419   : > { %10570 = vst [vmem:[#allocation64_spill] sm:$0xff] %v9048_v1 }
 0x41b   : > { %v9050_v50 = vpop.xlane.xlu1 %3648 }
 0x41c   : > { %10571 = vst [vmem:[#allocation84_spill] sm:$0xff] %v9050_v50  ;;  %v9052_v0 = vpop.xlane.xlu0 %3663 }
 0x41d   : > { %10572 = vst [vmem:[#allocation86_spill] sm:$0xff] %v9052_v0 }
 0x41f   : > { %v9054_v3 = vpop.xlane.xlu1 %3654 }
 0x420   : > { %10573 = vst [vmem:[#allocation87_spill] sm:$0xff] %v9054_v3  ;;  %v9056_v32 = vpop.xlane.xlu0 %3669 }
 0x421   : > { %10574 = vst [vmem:[#allocation12_spill] sm:$0xff] %v9056_v32 }
 0x423   : > { %v9058_v49 = vpop.xlane.xlu1 %3660 }
 0x424   : > { %10575 = vst [vmem:[#allocation53_spill] sm:$0xff] %v9058_v49  ;;  %v9060_v12 = vpop.xlane.xlu0 %3675 }
 0x425   : > { %10576 = vst [vmem:[#allocation37_spill] sm:$0xff] %v9060_v12 }
 0x427   : > { %v9062_v20 = vpop.xlane.xlu1 %3666 }
 0x428   : > { %10577 = vst [vmem:[#allocation36_spill] sm:$0xff] %v9062_v20  ;;  %v9064_v40 = vpop.xlane.xlu0 %3681 }
 0x429   : > { %10578 = vst [vmem:[#allocation79_spill] sm:$0xff] %v9064_v40 }
 0x42b   : > { %v9066_v41 = vpop.xlane.xlu1 %3672 }
 0x42c   : > { %10579 = vst [vmem:[#allocation80_spill] sm:$0xff] %v9066_v41  ;;  %v9068_v35 = vpop.xlane.xlu0 %3687 }
 0x42d   : > { %10580 = vst [vmem:[#allocation99_spill] sm:$0xff] %v9068_v35 }
 0x42f   : > { %v9070_v1 = vpop.xlane.xlu1 %3678 }
 0x430   : > { %10581 = vst [vmem:[#allocation98_spill] sm:$0xff] %v9070_v1  ;;  %v9072_v50 = vpop.xlane.xlu0 %3693 }
 0x431   : > { %10582 = vst [vmem:[#allocation54_spill] sm:$0xff] %v9072_v50 }
 0x433   : > { %v9074_v0 = vpop.xlane.xlu1 %3684 }
 0x434   : > { %10583 = vst [vmem:[#allocation55_spill] sm:$0xff] %v9074_v0  ;;  %v9076_v3 = vpop.xlane.xlu0 %3699 }
 0x435   : > { %10584 = vst [vmem:[#allocation97_spill] sm:$0xff] %v9076_v3 }
 0x437   : > { %v9078_v32 = vpop.xlane.xlu1 %3690 }
 0x438   : > { %10585 = vst [vmem:[#allocation96_spill] sm:$0xff] %v9078_v32  ;;  %v9080_v49 = vpop.xlane.xlu0 %3705 }
 0x439   : > { %10586 = vst [vmem:[#allocation27_spill] sm:$0xff] %v9080_v49 }
 0x43b   : > { %v9082_v12 = vpop.xlane.xlu1 %3696 }
 0x43c   : > { %10587 = vst [vmem:[#allocation26_spill] sm:$0xff] %v9082_v12  ;;  %v9084_v20 = vpop.xlane.xlu0 %3711 }
 0x43d   : > { %10588 = vst [vmem:[#allocation24_spill] sm:$0xff] %v9084_v20 }
 0x43f   : > { %v9086_v40 = vpop.xlane.xlu1 %3702 }
 0x440   : > { %10589 = vst [vmem:[#allocation23_spill] sm:$0xff] %v9086_v40  ;;  %v9088_v41 = vpop.xlane.xlu0 %3717 }
 0x441   : > { %10590 = vst [vmem:[#allocation43_spill] sm:$0xff] %v9088_v41 }
 0x443   : > { %v9090_v35 = vpop.xlane.xlu1 %3708 }
 0x444   : > { %10591 = vst [vmem:[#allocation42_spill] sm:$0xff] %v9090_v35  ;;  %v9092_v1 = vpop.xlane.xlu0 %3723 }
 0x445   : > { %10592 = vst [vmem:[#allocation19_spill] sm:$0xff] %v9092_v1 }
 0x447   : > { %v9094_v50 = vpop.xlane.xlu1 %3714 }
 0x448   : > { %10593 = vst [vmem:[#allocation18_spill] sm:$0xff] %v9094_v50  ;;  %v9096_v0 = vpop.xlane.xlu0 %3729 }
 0x449   : > { %10594 = vst [vmem:[#allocation40_spill] sm:$0xff] %v9096_v0 }
 0x44b   : > { %v9098_v3 = vpop.xlane.xlu1 %3720 }
 0x44c   : > { %10595 = vst [vmem:[#allocation39_spill] sm:$0xff] %v9098_v3  ;;  %v9100_v32 = vpop.xlane.xlu0 %3735 }
 0x44d   : > { %10596 = vst [vmem:[#allocation17_spill] sm:$0xff] %v9100_v32 }
 0x44f   : > { %v9102_v49 = vpop.xlane.xlu1 %3726 }
 0x450   : > { %10597 = vst [vmem:[#allocation16_spill] sm:$0xff] %v9102_v49  ;;  %v9104_v12 = vpop.xlane.xlu0 %3741 }
 0x451   : > { %10598 = vst [vmem:[#allocation35_spill] sm:$0xff] %v9104_v12 }
 0x453   : > { %v9106_v20 = vpop.xlane.xlu1 %3732 }
 0x454   : > { %10599 = vst [vmem:[#allocation34_spill] sm:$0xff] %v9106_v20  ;;  %v9108_v40 = vpop.xlane.xlu0 %3747 }
 0x455   : > { %10600 = vst [vmem:[#allocation32_spill] sm:$0xff] %v9108_v40 }
 0x457   : > { %v9110_v41 = vpop.xlane.xlu1 %3738 }
 0x458   : > { %10601 = vst [vmem:[#allocation31_spill] sm:$0xff] %v9110_v41  ;;  %v9112_v35 = vpop.xlane.xlu0 %3753 }
 0x459   : > { %10602 = vst [vmem:[#allocation52_spill] sm:$0xff] %v9112_v35 }
 0x45b   : > { %v9114_v1 = vpop.xlane.xlu1 %3744 }
 0x45c   : > { %10603 = vst [vmem:[#allocation51_spill] sm:$0xff] %v9114_v1  ;;  %v9116_v50 = vpop.xlane.xlu0 %3759 }
 0x45d   : > { %10604 = vst [vmem:[#allocation48_spill] sm:$0xff] %v9116_v50 }
 0x45f   : > { %v9118_v0 = vpop.xlane.xlu1 %3750 }
 0x460   : > { %10605 = vst [vmem:[#allocation47_spill] sm:$0xff] %v9118_v0  ;;  %v9120_v3 = vpop.xlane.xlu0 %3765 }
 0x461   : > { %10606 = vst [vmem:[#allocation65_spill] sm:$0xff] %v9120_v3 }
 0x463   : > { %v9122_v32 = vpop.xlane.xlu1 %3756 }
 0x464   : > { %10607 = vst [vmem:[#allocation62_spill] sm:$0xff] %v9122_v32  ;;  %v9124_v49 = vpop.xlane.xlu0 %3771 }
 0x465   : > { %10608 = vst [vmem:[#allocation83_spill] sm:$0xff] %v9124_v49 }
 0x467   : > { %v9126_v12 = vpop.xlane.xlu1 %3762 }
 0x468   : > { %10609 = vst [vmem:[#allocation78_spill] sm:$0xff] %v9126_v12  ;;  %v9128_v20 = vpop.xlane.xlu0 %3777 }
 0x469   : > { %10610 = vst [vmem:[#allocation95_spill] sm:$0xff] %v9128_v20 }
 0x46b   : > { %v9130_v40 = vpop.xlane.xlu1 %3768 }
 0x46c   : > { %10611 = vst [vmem:[#allocation94_spill] sm:$0xff] %v9130_v40  ;;  %v9132_v41 = vpop.xlane.xlu0 %3783  ;;  %v10621_v40 = vld [vmem:[#allocation8_spill] sm:$0xff] }
 0x46d   : > { %10612 = vst [vmem:[#allocation71_spill] sm:$0xff] %v9132_v41 }
 0x46f   : > { %v9134_v35 = vpop.xlane.xlu1 %3774 }
 0x470   : > { %10613 = vst [vmem:[#allocation68_spill] sm:$0xff] %v9134_v35  ;;  %v9136_v1 = vpop.xlane.xlu0 %3789 }
 0x471   : > { %10614 = vst [vmem:[#allocation91_spill] sm:$0xff] %v9136_v1 }
 0x473   : > { %v9138_v50 = vpop.xlane.xlu1 %3780 }
 0x474   : > { %10615 = vst [vmem:[#allocation88_spill] sm:$0xff] %v9138_v50  ;;  %v9140_v0 = vpop.xlane.xlu0 %3795 }
 0x475   : > { %10616 = vst [vmem:[#allocation100_spill] sm:$0xff] %v9140_v0 }
 0x477   : > { %v9142_v3 = vpop.xlane.xlu1 %3786 }
 0x478   : > { %10617 = vst [vmem:[#allocation50_spill] sm:$0xff] %v9142_v3  ;;  %v9146_v49 = vpop.xlane.xlu0 %3801 }
 0x479   : > { %10619 = vst [vmem:[#allocation30_spill] sm:$0xff] %v9146_v49 }
 0x47b   : > { %v9144_v32 = vpop.xlane.xlu1 %3792 }
 0x47c   : > { %10618 = vst [vmem:[#allocation33_spill] sm:$0xff] %v9144_v32 }
 0x47f   : > { %v9148_v12 = vpop.xlane.xlu1 %3798 }
 0x480   : > { %10620 = vst [vmem:[#allocation49_spill] sm:$0xff] %v9148_v12  ;;  %v9150_v20 = vpop.permute.xlu0 %3809 }
 0x481   : > { %v9154_v41 = vrot.slane %v9150_v20, %v10621_v40 }
 0x483   : > { %v9156_v35 = vpop.xlane.xlu1 %3804  ;;  %v3852_v0 = vmul.f32 %v9154_v41, %v8730_v2  ;;  %v3851_v49 = vmul.f32 %v9154_v41, %v8787_v51  ;;  %v3854_v12 = vmul.f32 %v9154_v41, %v8797_v15  ;;  %v3853_v3 = vmul.f32 %v9154_v41, %v8743_v21 }
 0x484   : > { %10622 = vst [vmem:[#allocation46_spill] sm:$0xff] %v9156_v35  ;;  %v3856_v35 = vmul.f32 %v9154_v41, %v8960_v29  ;;  %v3855_v50 = vmul.f32 %v9154_v41, %v8753_v10  ;;  %v3858_v21 = vmul.f32 %v9154_v41, %v8886_v13 }
 0x487   : > { %v9158_v1 = vpop.permute.xlu1 %3982 }
 0x488   : > { %v9164_v32 = vrot.slane %v9158_v1, %v10621_v40 }
 0x48a   : > { %v4025_v2 = vadd.f32 %v9164_v32, %v3852_v0  ;;  %v4024_v40 = vadd.f32 %v9164_v32, %v3851_v49  ;;  %v4027_v54 = vadd.f32 %v9164_v32, %v3854_v12  ;;  %v4026_v51 = vadd.f32 %v9164_v32, %v3853_v3 }
 0x48b   : > { %v4029_v42 = vadd.f32 %v9164_v32, %v3856_v35  ;;  %v4028_v15 = vadd.f32 %v9164_v32, %v3855_v50  ;;  %v3857_v12 = vmul.f32 %v9154_v41, %v8858_v24  ;;  %v3860_v35 = vmul.f32 %v9154_v41, %v8902_v17 }
 0x48c   : > { %vm4153_vm14 = vcmp.ge.f32.partialorder %v4025_v2, 0.0  ;;  %v4281_v29 = vmul.f32 0.3, %v4025_v2  ;;  %vm4152_vm12 = vcmp.ge.f32.partialorder %v4024_v40, 0.0  ;;  %v4280_v33 = vmul.f32 0.3, %v4024_v40 }
 0x48d   : > { %vm4155_vm3 = vcmp.ge.f32.partialorder %v4027_v54, 0.0  ;;  %v4283_v10 = vmul.f32 0.3, %v4027_v54  ;;  %vm4154_vm15 = vcmp.ge.f32.partialorder %v4026_v51, 0.0  ;;  %v4282_v0 = vmul.f32 0.3, %v4026_v51 }
 0x48e   : > { %v4409_v49 = vsel %vm4153_vm14, %v4025_v2, %v4281_v29  ;;  %v4408_v62 = vsel %vm4152_vm12, %v4024_v40, %v4280_v33  ;;  %v4285_v60 = vmul.f32 0.3, %v4029_v42  ;;  %v4031_v13 = vadd.f32 %v9164_v32, %v3858_v21 }
 0x48f   : > { %v4537_v50 = vand.u32 2147483647, %v4409_v49  ;;  %v4536_v3 = vand.u32 2147483647, %v4408_v62  ;;  %v4411_v31 = vsel %vm4155_vm3, %v4027_v54, %v4283_v10  ;;  %v4410_v27 = vsel %vm4154_vm15, %v4026_v51, %v4282_v0 }
 0x490   : > { %vm4157_vm4 = vcmp.ge.f32.partialorder %v4029_v42, 0.0  ;;  %v4030_v45 = vadd.f32 %v9164_v32, %v3857_v12  ;;  %vm4156_vm1 = vcmp.ge.f32.partialorder %v4028_v15, 0.0  ;;  %v4284_v33 = vmul.f32 0.3, %v4028_v15 }
 0x491   : > { %4796 = vperm.xlu0 %6231, %v4537_v50   ;;  %4793 = vperm.xlu1 %6232, %v4536_v3   ;;  %v4033_v2 = vadd.f32 %v9164_v32, %v3860_v35  ;;  %v3859_v24 = vmul.f32 %v9154_v41, %v8868_v59  ;;  %v3862_v17 = vmul.f32 %v9154_v41, %v8657_v4  ;;  %v4539_v62 = vand.u32 2147483647, %v4411_v31 }
 0x492   : > { %v4538_v40 = vand.u32 2147483647, %v4410_v27  ;;  %v4413_v21 = vsel %vm4157_vm4, %v4029_v42, %v4285_v60  ;;  %v4287_v54 = vmul.f32 0.3, %v4031_v13  ;;  %v4412_v51 = vsel %vm4156_vm1, %v4028_v15, %v4284_v33 }
 0x493   : > { %vm4159_vm9 = vcmp.ge.f32.partialorder %v4031_v13, 0.0  ;;  %v4286_v29 = vmul.f32 0.3, %v4030_v45  ;;  %v4032_v10 = vadd.f32 %v9164_v32, %v3859_v24  ;;  %vm4158_vm7 = vcmp.ge.f32.partialorder %v4030_v45, 0.0 }
 0x494   : > { %v3861_v0 = vmul.f32 %v9154_v41, %v8938_v58  ;;  %v4541_v49 = vand.u32 2147483647, %v4413_v21  ;;  %v4289_v59 = vmul.f32 0.3, %v4033_v2  ;;  %v4035_v12 = vadd.f32 %v9164_v32, %v3862_v17  ;;  %v10623_v17 = vld [vmem:[#allocation9_spill] sm:$0xff] }
 0x495   : > { %4802 = vperm.xlu0 %6231, %v4539_v62   ;;  %4799 = vperm.xlu1 %6232, %v4538_v40   ;;  %v3864_v4 = vmul.f32 %v9154_v41, %v8683_v44  ;;  %v4540_v31 = vand.u32 2147483647, %v4412_v51  ;;  %v4415_v42 = vsel %vm4159_vm9, %v4031_v13, %v4287_v54  ;;  %vm4161_vm13 = vcmp.ge.f32.partialorder %v4033_v2, 0.0 }
 0x496   : > { %v4034_v27 = vadd.f32 %v9164_v32, %v3861_v0  ;;  %v4414_v60 = vsel %vm4158_vm7, %v4030_v45, %v4286_v29  ;;  %v4288_v15 = vmul.f32 0.3, %v4032_v10  ;;  %v3863_v35 = vmul.f32 %v9154_v41, %v8587_v18 }
 0x497   : > { %vm4160_vm5 = vcmp.ge.f32.partialorder %v4032_v10, 0.0  ;;  %v4037_v58 = vadd.f32 %v9164_v32, %v3864_v4  ;;  %v4543_v50 = vand.u32 2147483647, %v4415_v42  ;;  %v4417_v3 = vsel %vm4161_vm13, %v4033_v2, %v4289_v59 }
 0x498   : > { %v4291_v33 = vmul.f32 0.3, %v4035_v12  ;;  %v4036_v44 = vadd.f32 %v9164_v32, %v3863_v35  ;;  %v4542_v24 = vand.u32 2147483647, %v4414_v60  ;;  %vm4163_vm10 = vcmp.ge.f32.partialorder %v4035_v12, 0.0 }
 0x499   : > { %4808 = vperm.xlu0 %6231, %v4541_v49   ;;  %4805 = vperm.xlu1 %6232, %v4540_v31   ;;  %v4290_v13 = vmul.f32 0.3, %v4034_v27  ;;  %v9208_v45 = vrot.slane %v9150_v20, %v10623_v17  ;;  %v4416_v62 = vsel %vm4160_vm5, %v4032_v10, %v4288_v15  ;;  %vm4162_vm0 = vcmp.ge.f32.partialorder %v4034_v27, 0.0 }
 0x49a   : > { %v3866_v18 = vmul.f32 %v9154_v41, %v8703_v46  ;;  %v9214_v40 = vrot.slane %v9158_v1, %v10623_v17  ;;  %v4545_v2 = vand.u32 2147483647, %v4417_v3  ;;  %vm4165_vm2 = vcmp.ge.f32.partialorder %v4037_v58, 0.0 }
 0x49b   : > { %v3865_v21 = vmul.f32 %v9154_v41, %v8615_v26  ;;  %v4419_v54 = vsel %vm4163_vm10, %v4035_v12, %v4291_v33  ;;  %v4293_v51 = vmul.f32 0.3, %v4037_v58  ;;  %v4292_v29 = vmul.f32 0.3, %v4036_v44 }
 0x49c   : > { %v4039_v10 = vadd.f32 %v9164_v32, %v3866_v18  ;;  %v4544_v0 = vand.u32 2147483647, %v4416_v62  ;;  %v4418_v49 = vsel %vm4162_vm0, %v4034_v27, %v4290_v13  ;;  %vm4164_vm8 = vcmp.ge.f32.partialorder %v4036_v44, 0.0 }
 0x49d   : > { %4814 = vperm.xlu0 %6231, %v4543_v50   ;;  %4811 = vperm.xlu1 %6232, %v4542_v24   ;;  %v4038_v46 = vadd.f32 %v9164_v32, %v3865_v21  ;;  %v4547_v59 = vand.u32 2147483647, %v4419_v54  ;;  %v3868_v4 = vmul.f32 %v9208_v45, %v8805_v55  ;;  %v3867_v31 = vmul.f32 %v9208_v45, %v8763_v36 }
 0x49e   : > { %v4546_v26 = vand.u32 2147483647, %v4418_v49  ;;  %v4421_v41 = vsel %vm4165_vm2, %v4037_v58, %v4293_v51  ;;  %v4420_v12 = vsel %vm4164_vm8, %v4036_v44, %v4292_v29  ;;  %v4295_v42 = vmul.f32 0.3, %v4039_v10 }
 0x49f   : > { %vm4167_vm6 = vcmp.ge.f32.partialorder %v4039_v10, 0.0  ;;  %v4294_v60 = vmul.f32 0.3, %v4038_v46  ;;  %v4041_v27 = vadd.f32 %v9214_v40, %v3868_v4  ;;  %v4040_v32 = vadd.f32 %v9214_v40, %v3867_v31 }
 0x4a0   : > { %vm4166_vm11 = vcmp.ge.f32.partialorder %v4038_v46, 0.0  ;;  %v3870_v15 = vmul.f32 %v9208_v45, %v8816_v5  ;;  %v3869_v36 = vmul.f32 %v9208_v45, %v8773_v8  ;;  %v4549_v55 = vand.u32 2147483647, %v4421_v41 }
 0x4a1   : > { %4820 = vperm.xlu0 %6231, %v4545_v2   ;;  %4817 = vperm.xlu1 %6232, %v4544_v0   ;;  %v4548_v35 = vand.u32 2147483647, %v4420_v12  ;;  %v4423_v58 = vsel %vm4167_vm6, %v4039_v10, %v4295_v42  ;;  %v4422_v3 = vsel %vm4166_vm11, %v4038_v46, %v4294_v60  ;;  %v4297_v33 = vmul.f32 0.3, %v4041_v27 }
 0x4a2   : > { %v4043_v50 = vadd.f32 %v9214_v40, %v3870_v15  ;;  %v4296_v44 = vmul.f32 0.3, %v4040_v32  ;;  %v4042_v24 = vadd.f32 %v9214_v40, %v3869_v36  ;;  %vm4169_vm14 = vcmp.ge.f32.partialorder %v4041_v27, 0.0 }
 0x4a3   : > { %vm4168_vm12 = vcmp.ge.f32.partialorder %v4040_v32, 0.0  ;;  %v3872_v5 = vmul.f32 %v9208_v45, %v8972_v14  ;;  %v4551_v13 = vand.u32 2147483647, %v4423_v58  ;;  %v3871_v8 = vmul.f32 %v9208_v45, %v8783_v25 }
 0x4a4   : > { %v4550_v17 = vand.u32 2147483647, %v4422_v3  ;;  %vm4171_vm3 = vcmp.ge.f32.partialorder %v4043_v50, 0.0  ;;  %v4299_v62 = vmul.f32 0.3, %v4043_v50  ;;  %v4425_v2 = vsel %vm4169_vm14, %v4041_v27, %v4297_v33 }
 0x4a5   : > { %4826 = vperm.xlu0 %6231, %v4547_v59   ;;  %4823 = vperm.xlu1 %6232, %v4546_v26   ;;  %v4045_v18 = vadd.f32 %v9214_v40, %v3872_v5  ;;  %v4424_v21 = vsel %vm4168_vm12, %v4040_v32, %v4296_v44  ;;  %v4298_v54 = vmul.f32 0.3, %v4042_v24  ;;  %v4044_v51 = vadd.f32 %v9214_v40, %v3871_v8 }
 0x4a6   : > { %vm4170_vm15 = vcmp.ge.f32.partialorder %v4042_v24, 0.0  ;;  %v3874_v14 = vmul.f32 %v9208_v45, %v8914_v48  ;;  %v4553_v29 = vand.u32 2147483647, %v4425_v2  ;;  %v4552_v10 = vand.u32 2147483647, %v4424_v21  ;;  %v10624_v21 = vld [vmem:[#allocation10_spill] sm:$0xff] }
 0x4a7   : > { %v4427_v0 = vsel %vm4171_vm3, %v4043_v50, %v4299_v62  ;;  %v3873_v25 = vmul.f32 %v9208_v45, %v8880_v56  ;;  %v4426_v49 = vsel %vm4170_vm15, %v4042_v24, %v4298_v54  ;;  %v4301_v46 = vmul.f32 0.3, %v4045_v18 }
 0x4a8   : > { %v4300_v59 = vmul.f32 0.3, %v4044_v51  ;;  %v4047_v4 = vadd.f32 %v9214_v40, %v3874_v14  ;;  %vm4173_vm4 = vcmp.ge.f32.partialorder %v4045_v18, 0.0  ;;  %vm4172_vm1 = vcmp.ge.f32.partialorder %v4044_v51, 0.0 }
 0x4a9   : > { %4832 = vperm.xlu0 %6231, %v4549_v55   ;;  %4829 = vperm.xlu1 %6232, %v4548_v35   ;;  %v4046_v31 = vadd.f32 %v9214_v40, %v3873_v25  ;;  %v3876_v26 = vmul.f32 %v9208_v45, %v8924_v34  ;;  %v3875_v48 = vmul.f32 %v9208_v45, %v8892_v61  ;;  %v4555_v41 = vand.u32 2147483647, %v4427_v0 }
 0x4aa   : > { %v4554_v12 = vand.u32 2147483647, %v4426_v49  ;;  %v4429_v42 = vsel %vm4173_vm4, %v4045_v18, %v4301_v46  ;;  %v4428_v60 = vsel %vm4172_vm1, %v4044_v51, %v4300_v59  ;;  %v4303_v27 = vmul.f32 0.3, %v4047_v4  ;;  %v10625_v59 = vld [vmem:[#allocation15_spill] sm:$0xff] }
 0x4ab   : > { %v4049_v56 = vadd.f32 %v9214_v40, %v3876_v26  ;;  %v4048_v32 = vadd.f32 %v9214_v40, %v3875_v48  ;;  %vm4175_vm9 = vcmp.ge.f32.partialorder %v4047_v4, 0.0  ;;  %v4302_v15 = vmul.f32 0.3, %v4046_v31  ;;  %v10626_v26 = vld [vmem:[#allocation77_spill] sm:$0xff] }
 0x4ac   : > { %vm4174_vm7 = vcmp.ge.f32.partialorder %v4046_v31, 0.0  ;;  %v3878_v34 = vmul.f32 %v9208_v45, %v8721_v7  ;;  %v4557_v36 = vand.u32 2147483647, %v4429_v42  ;;  %v4556_v55 = vand.u32 2147483647, %v4428_v60  ;;  %v10627_v60 = vld [vmem:[#allocation61_spill] sm:$0xff] }
 0x4ad   : > { %4838 = vperm.xlu0 %6231, %v4551_v13   ;;  %4835 = vperm.xlu1 %6232, %v4550_v17   ;;  %vm4177_vm13 = vcmp.ge.f32.partialorder %v4049_v56, 0.0  ;;  %v3877_v61 = vmul.f32 %v9208_v45, %v8950_v38  ;;  %v4431_v35 = vsel %vm4175_vm9, %v4047_v4, %v4303_v27  ;;  %v4305_v58 = vmul.f32 0.3, %v4049_v56 }
 0x4ae   : > { %v4304_v50 = vmul.f32 0.3, %v4048_v32  ;;  %v4051_v3 = vadd.f32 %v9214_v40, %v3878_v34  ;;  %v4430_v33 = vsel %vm4174_vm7, %v4046_v31, %v4302_v15  ;;  %vm4176_vm5 = vcmp.ge.f32.partialorder %v4048_v32, 0.0  ;;  %v10628_v34 = vld [vmem:[#allocation75_spill] sm:$0xff] }
 0x4af   : > { %v4050_v44 = vadd.f32 %v9214_v40, %v3877_v61  ;;  %v3880_v24 = vmul.f32 %v9208_v45, %v8737_v16  ;;  %v4559_v7 = vand.u32 2147483647, %v4431_v35  ;;  %v3879_v38 = vmul.f32 %v9208_v45, %v8643_v52 }
 0x4b0   : > { %v4558_v13 = vand.u32 2147483647, %v4430_v33  ;;  %v4433_v8 = vsel %vm4177_vm13, %v4049_v56, %v4305_v58  ;;  %v4432_v17 = vsel %vm4176_vm5, %v4048_v32, %v4304_v50  ;;  %v4307_v62 = vmul.f32 0.3, %v4051_v3 }
 0x4b1   : > { %4844 = vperm.xlu0 %6231, %v4553_v29   ;;  %4841 = vperm.xlu1 %6232, %v4552_v10   ;;  %v4053_v5 = vadd.f32 %v9214_v40, %v3880_v24  ;;  %vm4179_vm10 = vcmp.ge.f32.partialorder %v4051_v3, 0.0  ;;  %v4306_v18 = vmul.f32 0.3, %v4050_v44  ;;  %v4052_v2 = vadd.f32 %v9214_v40, %v3879_v38 }
 0x4b2   : > { %v3882_v16 = vmul.f32 %v9208_v45, %v8747_v57  ;;  %v9268_v54 = vrot.slane %v9150_v20, %v10624_v21  ;;  %vm4178_vm0 = vcmp.ge.f32.partialorder %v4050_v44, 0.0  ;;  %v3881_v52 = vmul.f32 %v9208_v45, %v8668_v63 }
 0x4b3   : > { %v9274_v51 = vrot.slane %v9158_v1, %v10624_v21  ;;  %v4561_v14 = vand.u32 2147483647, %v4433_v8  ;;  %v4309_v29 = vmul.f32 0.3, %v4053_v5  ;;  %v4560_v0 = vand.u32 2147483647, %v4432_v17 }
 0x4b4   : > { %v4055_v10 = vadd.f32 %v9214_v40, %v3882_v16  ;;  %v4435_v57 = vsel %vm4179_vm10, %v4051_v3, %v4307_v62  ;;  %vm4181_vm2 = vcmp.ge.f32.partialorder %v4053_v5, 0.0  ;;  %v4054_v25 = vadd.f32 %v9214_v40, %v3881_v52  ;;  %v10630_v21 = vld [vmem:[#allocation73_spill] sm:$0xff] }
 0x4b5   : > { %4850 = vperm.xlu0 %6231, %v4555_v41   ;;  %4847 = vperm.xlu1 %6232, %v4554_v12   ;;  %v4434_v49 = vsel %vm4178_vm0, %v4050_v44, %v4306_v18  ;;  %v4308_v46 = vmul.f32 0.3, %v4052_v2  ;;  %vm4180_vm8 = vcmp.ge.f32.partialorder %v4052_v2, 0.0  ;;  %v3884_v63 = vmul.f32 %v9268_v54, %v10625_v59 }
 0x4b6   : > { %v4563_v45 = vand.u32 2147483647, %v4435_v57  ;;  %v4437_v4 = vsel %vm4181_vm2, %v4053_v5, %v4309_v29  ;;  %v4311_v31 = vmul.f32 0.3, %v4055_v10  ;;  %v3883_v48 = vmul.f32 %v9268_v54, %v10626_v26 }
 0x4b7   : > { %v4562_v41 = vand.u32 2147483647, %v4434_v49  ;;  %vm4183_vm6 = vcmp.ge.f32.partialorder %v4055_v10, 0.0  ;;  %v4310_v12 = vmul.f32 0.3, %v4054_v25  ;;  %v4057_v56 = vadd.f32 %v9274_v51, %v3884_v63 }
 0x4b8   : > { %v4436_v40 = vsel %vm4180_vm8, %v4052_v2, %v4308_v46  ;;  %vm4182_vm11 = vcmp.ge.f32.partialorder %v4054_v25, 0.0  ;;  %v4056_v42 = vadd.f32 %v9274_v51, %v3883_v48  ;;  %v3886_v27 = vmul.f32 %v9268_v54, %v10627_v60 }
 0x4b9   : > { %4856 = vperm.xlu0 %6231, %v4557_v36   ;;  %4853 = vperm.xlu1 %6232, %v4556_v55   ;;  %v4565_v32 = vand.u32 2147483647, %v4437_v4  ;;  %v4439_v15 = vsel %vm4183_vm6, %v4055_v10, %v4311_v31  ;;  %v3885_v36 = vmul.f32 %v9268_v54, %v10628_v34  ;;  %v4564_v55 = vand.u32 2147483647, %v4436_v40  ;;  %v10631_v31 = vld [vmem:[#allocation82_spill] sm:$0xff]  ;;  %v10632_v34 = vld [vmem:[#allocation76_spill] sm:$0xff] }
 0x4ba   : > { %v4438_v61 = vsel %vm4182_vm11, %v4054_v25, %v4310_v12  ;;  %v4313_v35 = vmul.f32 0.3, %v4057_v56  ;;  %v4059_v58 = vadd.f32 %v9274_v51, %v3886_v27  ;;  %vm4185_vm14 = vcmp.ge.f32.partialorder %v4057_v56, 0.0 }
 0x4bb   : > { %v4312_v50 = vmul.f32 0.3, %v4056_v42  ;;  %v4058_v3 = vadd.f32 %v9274_v51, %v3885_v36  ;;  %vm4184_vm12 = vcmp.ge.f32.partialorder %v4056_v42, 0.0  ;;  %v3888_v33 = vmul.f32 %v9268_v54, %v8984_v6 }
 0x4bc   : > { %v4567_v44 = vand.u32 2147483647, %v4439_v15  ;;  %v4566_v24 = vand.u32 2147483647, %v4438_v61  ;;  %v4441_v38 = vsel %vm4185_vm14, %v4057_v56, %v4313_v35  ;;  %vm4187_vm3 = vcmp.ge.f32.partialorder %v4059_v58, 0.0 }
 0x4bd   : > { %4862 = vperm.xlu0 %6231, %v4559_v7   ;;  %4859 = vperm.xlu1 %6232, %v4558_v13   ;;  %v10629_v7 = vld [vmem:[#allocation13_spill] sm:$0xff]  ;;  %v4315_v13 = vmul.f32 0.3, %v4059_v58  ;;  %v4061_v8 = vadd.f32 %v9274_v51, %v3888_v33  ;;  %v4440_v17 = vsel %vm4184_vm12, %v4056_v42, %v4312_v50  ;;  %v4314_v62 = vmul.f32 0.3, %v4058_v3 }
 0x4be   : > { %v3887_v5 = vmul.f32 %v9268_v54, %v10629_v7  ;;  %v3890_v2 = vmul.f32 %v9268_v54, %v8936_v19  ;;  %vm4186_vm15 = vcmp.ge.f32.partialorder %v4058_v3, 0.0  ;;  %v4569_v6 = vand.u32 2147483647, %v4441_v38  ;;  %v10634_v7 = vld [vmem:[#allocation74_spill] sm:$0xff]  ;;  %v10635_v38 = vld [vmem:[#allocation11_spill] sm:$0xff] }
 0x4bf   : > { %v3889_v52 = vmul.f32 %v9268_v54, %v10630_v21  ;;  %v4443_v29 = vsel %vm4187_vm3, %v4059_v58, %v4315_v13  ;;  %vm4189_vm4 = vcmp.ge.f32.partialorder %v4061_v8, 0.0  ;;  %v4317_v10 = vmul.f32 0.3, %v4061_v8 }
 0x4c0   : > { %v4060_v18 = vadd.f32 %v9274_v51, %v3887_v5  ;;  %v4063_v16 = vadd.f32 %v9274_v51, %v3890_v2  ;;  %v3892_v19 = vmul.f32 %v9268_v54, %v8948_v37  ;;  %v4571_v49 = vand.u32 2147483647, %v4443_v29 }
 0x4c1   : > { %4868 = vperm.xlu0 %6231, %v4561_v14   ;;  %4865 = vperm.xlu1 %6232, %v4560_v0   ;;  %v4568_v14 = vand.u32 2147483647, %v4440_v17  ;;  %v4442_v0 = vsel %vm4186_vm15, %v4058_v3, %v4314_v62  ;;  %v4062_v25 = vadd.f32 %v9274_v51, %v3889_v52  ;;  %v3891_v63 = vmul.f32 %v9268_v54, %v8926_v23  ;;  %v10636_v62 = vld [vmem:[#allocation85_spill] sm:$0xff] }
 0x4c2   : > { %v4316_v57 = vmul.f32 0.3, %v4060_v18  ;;  %vm4188_vm1 = vcmp.ge.f32.partialorder %v4060_v18, 0.0  ;;  %v4319_v46 = vmul.f32 0.3, %v4063_v16  ;;  %v4065_v59 = vadd.f32 %v9274_v51, %v3892_v19 }
 0x4c3   : > { %v4445_v4 = vsel %vm4189_vm4, %v4061_v8, %v4317_v10  ;;  %vm4191_vm9 = vcmp.ge.f32.partialorder %v4063_v16, 0.0  ;;  %v3894_v26 = vmul.f32 %v9268_v54, %v10631_v31  ;;  %v4064_v37 = vadd.f32 %v9274_v51, %v3891_v63  ;;  %v10640_v31 = vld [vmem:[#allocation60_spill] sm:$0xff] }
 0x4c4   : > { %v4444_v48 = vsel %vm4188_vm1, %v4060_v18, %v4316_v57  ;;  %v3893_v12 = vmul.f32 %v9268_v54, %v8962_v30  ;;  %vm4190_vm7 = vcmp.ge.f32.partialorder %v4062_v25, 0.0  ;;  %v4447_v56 = vsel %vm4191_vm9, %v4063_v16, %v4319_v46  ;;  %v10637_v57 = vld [vmem:[#allocation57_spill] sm:$0xff] }
 0x4c5   : > { %4874 = vperm.xlu0 %6231, %v4563_v45   ;;  %4871 = vperm.xlu1 %6232, %v4562_v41   ;;  %v4570_v45 = vand.u32 2147483647, %v4442_v0  ;;  %v4318_v41 = vmul.f32 0.3, %v4062_v25  ;;  %v4321_v40 = vmul.f32 0.3, %v4065_v59  ;;  %v4067_v23 = vadd.f32 %v9274_v51, %v3894_v26 }
 0x4c6   : > { %v4066_v42 = vadd.f32 %v9274_v51, %v3893_v12  ;;  %v4573_v60 = vand.u32 2147483647, %v4445_v4  ;;  %v4572_v27 = vand.u32 2147483647, %v4444_v48  ;;  %vm4193_vm13 = vcmp.ge.f32.partialorder %v4065_v59, 0.0 }
 0x4c7   : > { %v4320_v15 = vmul.f32 0.3, %v4064_v37  ;;  %v3896_v36 = vmul.f32 %v9268_v54, %v10632_v34  ;;  %v4575_v30 = vand.u32 2147483647, %v4447_v56  ;;  %vm4192_vm5 = vcmp.ge.f32.partialorder %v4064_v37, 0.0 }
 0x4c8   : > { %v4449_v35 = vsel %vm4193_vm13, %v4065_v59, %v4321_v40  ;;  %v4323_v58 = vmul.f32 0.3, %v4067_v23  ;;  %v4322_v50 = vmul.f32 0.3, %v4066_v42  ;;  %vm4195_vm10 = vcmp.ge.f32.partialorder %v4067_v23, 0.0  ;;  %v10639_v59 = vld [vmem:[#allocation72_spill] sm:$0xff] }
 0x4c9   : > { %4880 = vperm.xlu0 %6231, %v4565_v32   ;;  %4877 = vperm.xlu1 %6232, %v4564_v55   ;;  %v4446_v32 = vsel %vm4190_vm7, %v4062_v25, %v4318_v41  ;;  %v10633_v55 = vld [vmem:[#allocation81_spill] sm:$0xff]  ;;  %v4069_v3 = vadd.f32 %v9274_v51, %v3896_v36  ;;  %vm4194_vm0 = vcmp.ge.f32.partialorder %v4066_v42, 0.0  ;;  %v3898_v5 = vmul.f32 %v9268_v54, %v10634_v7 }
 0x4ca   : > { %v3895_v61 = vmul.f32 %v9268_v54, %v10633_v55  ;;  %v4574_v33 = vand.u32 2147483647, %v4446_v32  ;;  %v9324_v13 = vrot.slane %v9150_v20, %v10635_v38  ;;  %v9328_v8 = vrot.slane %v9158_v1, %v10635_v38  ;;  %v10642_v55 = vld [vmem:[#allocation56_spill] sm:$0xff] }
 0x4cb   : > { %v4577_v17 = vand.u32 2147483647, %v4449_v35  ;;  %v3897_v18 = vmul.f32 %v9268_v54, %v10636_v62  ;;  %v4451_v2 = vsel %vm4195_vm10, %v4067_v23, %v4323_v58  ;;  %v4325_v16 = vmul.f32 0.3, %v4069_v3 }
 0x4cc   : > { %v4071_v21 = vadd.f32 %v9274_v51, %v3898_v5  ;;  %vm4197_vm2 = vcmp.ge.f32.partialorder %v4069_v3, 0.0  ;;  %v4579_v10 = vand.u32 2147483647, %v4451_v2  ;;  %v3900_v25 = vmul.f32 %v9324_v13, %v10637_v57 }
 0x4cd   : > { %4886 = vperm.xlu0 %6231, %v4567_v44   ;;  %4883 = vperm.xlu1 %6232, %v4566_v24   ;;  %v4068_v44 = vadd.f32 %v9274_v51, %v3895_v61  ;;  %v4448_v24 = vsel %vm4192_vm5, %v4064_v37, %v4320_v15  ;;  %v4070_v29 = vadd.f32 %v9274_v51, %v3897_v18  ;;  %v10641_v37 = vld [vmem:[#allocation7_spill] sm:$0xff] }
 0x4ce   : > { %v4576_v52 = vand.u32 2147483647, %v4448_v24  ;;  %v4453_v19 = vsel %vm4197_vm2, %v4069_v3, %v4325_v16  ;;  %v4327_v54 = vmul.f32 0.3, %v4071_v21  ;;  %v3902_v63 = vmul.f32 %v9324_v13, %v10639_v59 }
 0x4cf   : > { %vm4196_vm8 = vcmp.ge.f32.partialorder %v4068_v44, 0.0  ;;  %v4326_v4 = vmul.f32 0.3, %v4070_v29  ;;  %v4073_v51 = vadd.f32 %v9328_v8, %v3900_v25  ;;  %v3901_v26 = vmul.f32 %v9324_v13, %v10640_v31 }
 0x4d0   : > { %vm4199_vm6 = vcmp.ge.f32.partialorder %v4071_v21, 0.0  ;;  %vm4198_vm11 = vcmp.ge.f32.partialorder %v4070_v29, 0.0  ;;  %v4075_v41 = vadd.f32 %v9328_v8, %v3902_v63  ;;  %v3829_v12 = vsub.s32 4, %v10641_v37 }
 0x4d1   : > { %4892 = vperm.xlu0 %6231, %v4569_v6   ;;  %4889 = vperm.xlu1 %6232, %v4568_v14   ;;  %v4450_v6 = vsel %vm4194_vm0, %v4066_v42, %v4322_v50  ;;  %v4324_v14 = vmul.f32 0.3, %v4068_v44  ;;  %v4074_v56 = vadd.f32 %v9328_v8, %v3901_v26  ;;  %v3833_v40 = vsub.s32 5, %v10641_v37 }
 0x4d2   : > { %v4578_v0 = vand.u32 2147483647, %v4450_v6  ;;  %v3837_v23 = vsub.s32 6, %v10641_v37  ;;  %v4581_v42 = vand.u32 2147483647, %v4453_v19  ;;  %v4454_v32 = vsel %vm4198_vm11, %v4070_v29, %v4326_v4 }
 0x4d3   : > { %vm4201_vm14 = vcmp.ge.f32.partialorder %v4073_v51, 0.0  ;;  %v3904_v15 = vmul.f32 %v9324_v13, %v8992_v11  ;;  %v4329_v34 = vmul.f32 0.3, %v4073_v51  ;;  %v3903_v61 = vmul.f32 %v9324_v13, %v10642_v55 }
 0x4d4   : > { %vm4203_vm3 = vcmp.ge.f32.partialorder %v4075_v41, 0.0  ;;  %v4330_v35 = vmul.f32 0.3, %v4074_v56  ;;  %v3841_v50 = vsub.s32 7, %v10641_v37  ;;  %v9356_v3 = vrot.slane %v9150_v20, %v3829_v12 }
 0x4d5   : > { %4898 = vperm.xlu0 %6231, %v4571_v49   ;;  %4895 = vperm.xlu1 %6232, %v4570_v45   ;;  %v10638_v49 = vld [vmem:[#allocation14_spill] sm:$0xff]  ;;  %v4452_v45 = vsel %vm4196_vm8, %v4068_v44, %v4324_v14  ;;  %v4077_v58 = vadd.f32 %v9328_v8, %v3904_v15  ;;  %vm4202_vm15 = vcmp.ge.f32.partialorder %v4074_v56, 0.0  ;;  %v4076_v11 = vadd.f32 %v9328_v8, %v3903_v61 }
 0x4d6   : > { %v3899_v46 = vmul.f32 %v9324_v13, %v10638_v49  ;;  %v9365_v44 = vrot.slane %v9150_v20, %v3837_v23  ;;  %v4582_v7 = vand.u32 2147483647, %v4454_v32  ;;  %v4457_v5 = vsel %vm4201_vm14, %v4073_v51, %v4329_v34  ;;  %v10645_v32 = vld [vmem:[#allocation92_spill] sm:$0xff] }
 0x4d7   : > { %v3906_v62 = vmul.f32 %v9324_v13, %v9000_v39  ;;  %v4458_v18 = vsel %vm4202_vm15, %v4074_v56, %v4330_v35  ;;  %vm4205_vm4 = vcmp.ge.f32.partialorder %v4077_v58, 0.0  ;;  %v4333_v2 = vmul.f32 0.3, %v4077_v58 }
 0x4d8   : > { %v4072_v48 = vadd.f32 %v9328_v8, %v3899_v46  ;;  %v3905_v6 = vmul.f32 %v9324_v13, %v8974_v47  ;;  %v4332_v16 = vmul.f32 0.3, %v4076_v11  ;;  %v3907_v14 = vmul.f32 %v9324_v13, %v8986_v9 }
 0x4d9   : > { %4904 = vperm.xlu0 %6231, %v4573_v60   ;;  %4901 = vperm.xlu1 %6232, %v4572_v27   ;;  %v4580_v60 = vand.u32 2147483647, %v4452_v45  ;;  %v4455_v27 = vsel %vm4199_vm6, %v4071_v21, %v4327_v54  ;;  %v4079_v21 = vadd.f32 %v9328_v8, %v3906_v62  ;;  %v4585_v29 = vand.u32 2147483647, %v4457_v5 }
 0x4da   : > { %v4328_v36 = vmul.f32 0.3, %v4072_v48  ;;  %vm4200_vm12 = vcmp.ge.f32.partialorder %v4072_v48, 0.0  ;;  %v4583_v24 = vand.u32 2147483647, %v4455_v27  ;;  %vm4204_vm1 = vcmp.ge.f32.partialorder %v4076_v11, 0.0 }
 0x4db   : > { %v4078_v39 = vadd.f32 %v9328_v8, %v3905_v6  ;;  %v9384_v47 = vrot.slane %v9158_v1, %v3829_v12  ;;  %v9389_v25 = vrot.slane %v9158_v1, %v3833_v40  ;;  %v4586_v19 = vand.u32 2147483647, %v4458_v18 }
 0x4dc   : > { %v4456_v38 = vsel %vm4200_vm12, %v4072_v48, %v4328_v36  ;;  %v4461_v54 = vsel %vm4205_vm4, %v4077_v58, %v4333_v2  ;;  %v4460_v49 = vsel %vm4204_vm1, %v4076_v11, %v4332_v16  ;;  %vm4207_vm9 = vcmp.ge.f32.partialorder %v4079_v21, 0.0  ;;  %v10643_v48 = vld [vmem:[#allocation29_spill] sm:$0xff] }
 0x4dd   : > { %4910 = vperm.xlu0 %6231, %v4575_v30   ;;  %4907 = vperm.xlu1 %6232, %v4574_v33   ;;  %v4331_v30 = vmul.f32 0.3, %v4075_v41  ;;  %v9360_v33 = vrot.slane %v9150_v20, %v3833_v40  ;;  %v3910_v46 = vmul.f32 %v9324_v13, %v9012_v43  ;;  %vm4206_vm7 = vcmp.ge.f32.partialorder %v4078_v39, 0.0 }
 0x4de   : > { %v4334_v59 = vmul.f32 0.3, %v4078_v39  ;;  %v3909_v63 = vmul.f32 %v9324_v13, %v8994_v28  ;;  %v3912_v45 = vmul.f32 %v9324_v13, %v9016_v22  ;;  %v9406_v28 = vrot.slane %v9158_v1, %v3837_v23  ;;  %v10646_v23 = vld [vmem:[#allocation28_spill] sm:$0xff] }
 0x4df   : > { %v4083_v31 = vadd.f32 %v9328_v8, %v3910_v46  ;;  %v4589_v22 = vand.u32 2147483647, %v4461_v54  ;;  %v4588_v12 = vand.u32 2147483647, %v4460_v49  ;;  %v10644_v56 = vlaneseq }
 0x4e0   : > { %v4082_v26 = vadd.f32 %v9328_v8, %v3909_v63  ;;  %v4085_v43 = vadd.f32 %v9328_v8, %v3912_v45  ;;  %v3914_v15 = vmul.f32 %v9324_v13, %v10645_v32  ;;  %v3913_v55 = vmul.f32 %v9324_v13, %v10646_v23 }
 0x4e1   : > { %4916 = vperm.xlu0 %6231, %v4577_v17   ;;  %4913 = vperm.xlu1 %6232, %v4576_v52   ;;  %v4459_v17 = vsel %vm4203_vm3, %v4075_v41, %v4331_v30  ;;  %v3908_v52 = vmul.f32 %v9324_v13, %v9008_v53  ;;  %v4080_v53 = vadd.f32 %v9328_v8, %v3907_v14  ;;  %v9409_v40 = vand.u32 127, %v10644_v56  ;;  %v10648_v14 = vld [vmem:[#allocation69_spill] sm:$0xff] }
 0x4e2   : > { %v4587_v9 = vand.u32 2147483647, %v4459_v17  ;;  %v3911_v41 = vmul.f32 %v9324_v13, %v10643_v48  ;;  %v4339_v30 = vmul.f32 0.3, %v4083_v31  ;;  %vm4211_vm10 = vcmp.ge.f32.partialorder %v4083_v31, 0.0  ;;  %v10651_v48 = vld [vmem:[#allocation89_spill] sm:$0xff] }
 0x4e3   : > { %v4081_v57 = vadd.f32 %v9328_v8, %v3908_v52  ;;  %v4336_v51 = vmul.f32 0.3, %v4080_v53  ;;  %vm4208_vm5 = vcmp.ge.f32.partialorder %v4080_v53, 0.0  ;;  %v4338_v61 = vmul.f32 0.3, %v4082_v26 }
 0x4e4   : > { %v4084_v27 = vadd.f32 %v9328_v8, %v3911_v41  ;;  %v4341_v35 = vmul.f32 0.3, %v4085_v43  ;;  %v4087_v58 = vadd.f32 %v9328_v8, %v3914_v15  ;;  %vm4210_vm0 = vcmp.ge.f32.partialorder %v4082_v26, 0.0 }
 0x4e5   : > { %4922 = vperm.xlu0 %6231, %v4579_v10   ;;  %4919 = vperm.xlu1 %6232, %v4578_v0   ;;  %v4584_v10 = vand.u32 2147483647, %v4456_v38  ;;  %v9381_v0 = vrot.slane %v9150_v20, %v3841_v50  ;;  %v4335_v20 = vmul.f32 0.3, %v4079_v21  ;;  %vm4209_vm13 = vcmp.ge.f32.partialorder %v4081_v57, 0.0 }
 0x4e6   : > { %v4337_v4 = vmul.f32 0.3, %v4081_v57  ;;  %v4464_v36 = vsel %vm4208_vm5, %v4080_v53, %v4336_v51  ;;  %vm4213_vm2 = vcmp.ge.f32.partialorder %v4085_v43, 0.0  ;;  %v4340_v13 = vmul.f32 0.3, %v4084_v27 }
 0x4e7   : > { %v4592_v17 = vand.u32 2147483647, %v4464_v36  ;;  %v4467_v62 = vsel %vm4211_vm10, %v4083_v31, %v4339_v30  ;;  %vm4212_vm8 = vcmp.ge.f32.partialorder %v4084_v27, 0.0  ;;  %v5182_v18 = vadd.s32 4294967288, %v9409_v40 }
 0x4e8   : > { %v4465_v34 = vsel %vm4209_vm13, %v4081_v57, %v4337_v4  ;;  %v4466_v2 = vsel %vm4210_vm0, %v4082_v26, %v4338_v61  ;;  %v4469_v6 = vsel %vm4213_vm2, %v4085_v43, %v4341_v35  ;;  %v4343_v16 = vmul.f32 0.3, %v4087_v58 }
 0x4e9   : > { %4928 = vperm.xlu0 %6231, %v4581_v42   ;;  %4925 = vperm.xlu1 %6232, %v4580_v60   ;;  %v4463_v42 = vsel %vm4207_vm9, %v4079_v21, %v4335_v20  ;;  %v4462_v60 = vsel %vm4206_vm7, %v4078_v39, %v4334_v59  ;;  %v4593_v38 = vand.u32 2147483647, %v4465_v34  ;;  %v10647_v21 = vld [vmem:[#allocation45_spill] sm:$0xff]  ;;  %v4468_v57 = vsel %vm4212_vm8, %v4084_v27, %v4340_v13 }
 0x4ea   : > { %v4591_v11 = vand.u32 2147483647, %v4463_v42  ;;  %v4590_v5 = vand.u32 2147483647, %v4462_v60  ;;  %vm4215_vm6 = vcmp.ge.f32.partialorder %v4087_v58, 0.0  ;;  %v9440_v59 = vsub.s32 %v5182_v18, %v10641_v37  ;;  %v10652_v42 = vld [vmem:[#allocation93_spill] sm:$0xff] }
 0x4eb   : > { %v4594_v20 = vand.u32 2147483647, %v4466_v2  ;;  %v4597_v46 = vand.u32 2147483647, %v4469_v6  ;;  %v9444_v63 = vsub.s32 %v9409_v40, %v10641_v37  ;;  %v4596_v45 = vand.u32 2147483647, %v4468_v57 }
 0x4ec   : > { %v4471_v4 = vsel %vm4215_vm6, %v4087_v58, %v4343_v16  ;;  %v5196_v31 = vadd.s32 4294967272, %v9409_v40  ;;  %v5189_v43 = vadd.s32 4294967280, %v9409_v40  ;;  %v3920_v41 = vmul.f32 %v9356_v3, %v10651_v48  ;;  %v10655_v16 = vld [vmem:[#allocation63_spill] sm:$0xff] }
 0x4ed   : > { %4934 = vperm.xlu0 %6231, %v4583_v24   ;;  %4931 = vperm.xlu1 %6232, %v4582_v7   ;;  %v4086_v24 = vadd.f32 %v9328_v8, %v3913_v55  ;;  %v9424_v7 = vrot.slane %v9158_v1, %v3841_v50  ;;  %v3916_v8 = vmul.f32 %v9356_v3, %v10647_v21  ;;  %v10649_v50 = vld [vmem:[#allocation66_spill] sm:$0xff]  ;;  %v4599_v32 = vand.u32 2147483647, %v4471_v4 }
 0x4ee   : > { %v3915_v1 = vmul.f32 %v9356_v3, %v10648_v14  ;;  %v3919_v60 = vmul.f32 %v9356_v3, %v10652_v42  ;;  %v4093_v27 = vadd.f32 %v9384_v47, %v3920_v41  ;;  %v9454_v34 = vsub.s32 %v5196_v31, %v10641_v37  ;;  %v10656_v14 = vld [vmem:[#allocation67_spill] sm:$0xff]  ;;  %v10657_v41 = vld [vmem:[#allocation84_spill] sm:$0xff] }
 0x4ef   : > { %v4342_v52 = vmul.f32 0.3, %v4086_v24  ;;  %vm4214_vm11 = vcmp.ge.f32.partialorder %v4086_v24, 0.0  ;;  %v4089_v53 = vadd.f32 %v9384_v47, %v3916_v8  ;;  %v9459_v23 = vsub.s32 %v5189_v43, %v10641_v37 }
 0x4f0   : > { %v4092_v36 = vadd.f32 %v9384_v47, %v3919_v60  ;;  %v5210_v55 = vadd.s32 4294967256, %v9409_v40  ;;  %v5203_v61 = vadd.s32 4294967264, %v9409_v40  ;;  %v5224_v13 = vadd.s32 4294967240, %v9409_v40 }
 0x4f1   : > { %4940 = vperm.xlu0 %6231, %v4585_v29   ;;  %4937 = vperm.xlu1 %6232, %v4584_v10   ;;  %v3918_v29 = vmul.f32 %v9356_v3, %v10649_v50  ;;  %v10650_v10 = vld [vmem:[#allocation70_spill] sm:$0xff]  ;;  %v4470_v51 = vsel %vm4214_vm11, %v4086_v24, %v4342_v52  ;;  %vm4217_vm14 = vcmp.ge.f32.partialorder %v4089_v53, 0.0  ;;  %v4345_v26 = vmul.f32 0.3, %v4089_v53  ;;  %v10653_v24 = vld [vmem:[#allocation21_spill] sm:$0xff] }
 0x4f2   : > { %v3917_v39 = vmul.f32 %v9356_v3, %v10650_v10  ;;  %v4598_v15 = vand.u32 2147483647, %v4470_v51  ;;  %vm4221_vm4 = vcmp.ge.f32.partialorder %v4093_v27, 0.0  ;;  %v4348_v2 = vmul.f32 0.3, %v4092_v36 }
 0x4f3   : > { %v4091_v54 = vadd.f32 %v9384_v47, %v3918_v29  ;;  %v4473_v30 = vsel %vm4217_vm14, %v4089_v53, %v4345_v26  ;;  %v3924_v21 = vmul.f32 %v9356_v3, %v10655_v16  ;;  %v9473_v8 = vsub.s32 %v5210_v55, %v10641_v37 }
 0x4f4   : > { %v4090_v49 = vadd.f32 %v9384_v47, %v3917_v39  ;;  %vm4220_vm1 = vcmp.ge.f32.partialorder %v4092_v36, 0.0  ;;  %v4601_v50 = vand.u32 2147483647, %v4473_v30  ;;  %v9479_v10 = vsub.s32 %v5203_v61, %v10641_v37  ;;  %v10659_v61 = vld [vmem:[#allocation87_spill] sm:$0xff] }
 0x4f5   : > { %4946 = vperm.xlu0 %6231, %v4587_v9   ;;  %4943 = vperm.xlu1 %6232, %v4586_v19   ;;  %v4595_v9 = vand.u32 2147483647, %v4467_v62  ;;  %v4088_v19 = vadd.f32 %v9384_v47, %v3915_v1  ;;  %vm4219_vm3 = vcmp.ge.f32.partialorder %v4091_v54, 0.0  ;;  %v10654_v62 = vld [vmem:[#allocation44_spill] sm:$0xff]  ;;  %v3923_v1 = vmul.f32 %v9356_v3, %v10656_v14 }
 0x4f6   : > { %v4346_v56 = vmul.f32 0.3, %v4090_v49  ;;  %vm4218_vm15 = vcmp.ge.f32.partialorder %v4090_v49, 0.0  ;;  %v3921_v18 = vmul.f32 %v9356_v3, %v10654_v62  ;;  %v4097_v39 = vadd.f32 %v9384_v47, %v3924_v21 }
 0x4f7   : > { %vm4216_vm12 = vcmp.ge.f32.partialorder %v4088_v19, 0.0  ;;  %v5238_v4 = vadd.s32 4294967224, %v9409_v40  ;;  %v5231_v51 = vadd.s32 4294967232, %v9409_v40  ;;  %v5252_v42 = vadd.s32 4294967208, %v9409_v40 }
 0x4f8   : > { %v4094_v52 = vadd.f32 %v9384_v47, %v3921_v18  ;;  %v4353_v48 = vmul.f32 0.3, %v4097_v39  ;;  %vm4225_vm13 = vcmp.ge.f32.partialorder %v4097_v39, 0.0  ;;  %v5245_v55 = vadd.s32 4294967216, %v9409_v40 }
 0x4f9   : > { %4952 = vperm.xlu0 %6231, %v4589_v22   ;;  %4949 = vperm.xlu1 %6232, %v4588_v12   ;;  %v4344_v22 = vmul.f32 0.3, %v4088_v19  ;;  %v4347_v12 = vmul.f32 0.3, %v4091_v54  ;;  %v9504_v30 = vsub.s32 %v5238_v4, %v10641_v37  ;;  %v9525_v21 = vsub.s32 %v5252_v42, %v10641_v37 }
 0x4fa   : > { %vm4222_vm7 = vcmp.ge.f32.partialorder %v4094_v52, 0.0  ;;  %vm5187_vm6 = vcmask 130112   ;;  %vm5194_vm14 = vcmask 195712  }
 0x4fb   : > { %v4472_v35 = vsel %vm4216_vm12, %v4088_v19, %v4344_v22  ;;  %v4475_v58 = vsel %vm4219_vm3, %v4091_v54, %v4347_v12  ;;  %v4096_v19 = vadd.f32 %v9384_v47, %v3923_v1  ;;  %v4476_v54 = vsel %vm4220_vm1, %v4092_v36, %v4348_v2 }
 0x4fc   : > { %v4600_v29 = vand.u32 2147483647, %v4472_v35  ;;  %v4603_v57 = vand.u32 2147483647, %v4475_v58  ;;  %v3926_v22 = vmul.f32 %v9356_v3, %v10657_v41  ;;  %v4604_v12 = vand.u32 2147483647, %v4476_v54 }
 0x4fd   : > { %4958 = vperm.xlu0 %6231, %v4591_v11   ;;  %4955 = vperm.xlu1 %6232, %v4590_v5   ;;  %v4474_v11 = vsel %vm4218_vm15, %v4090_v49, %v4346_v56  ;;  %v3922_v5 = vmul.f32 %v9356_v3, %v10653_v24  ;;  %v9485_v49 = vsub.s32 %v5224_v13, %v10641_v37  ;;  %v4352_v56 = vmul.f32 0.3, %v4096_v19  ;;  %v10660_v13 = vld [vmem:[#allocation20_spill] sm:$0xff]  ;;  %v10661_v54 = vld [vmem:[#allocation53_spill] sm:$0xff] }
 0x4fe   : > { %v4602_v53 = vand.u32 2147483647, %v4474_v11  ;;  %vm4224_vm5 = vcmp.ge.f32.partialorder %v4096_v19, 0.0  ;;  %v3928_v35 = vmul.f32 %v9356_v3, %v10659_v61  ;;  %v9514_v24 = vsub.s32 %v5231_v51, %v10641_v37  ;;  %v10662_v51 = vld [vmem:[#allocation64_spill] sm:$0xff] }
 0x4ff   : > { %v4095_v6 = vadd.f32 %v9384_v47, %v3922_v5  ;;  %v9516_v5 = vsel %vm4225_vm13, %v4097_v39, %v4353_v48  ;;  %v4480_v18 = vsel %vm4224_vm5, %v4096_v19, %v4352_v56  ;;  %v5266_v2 = vadd.s32 4294967192, %v9409_v40 }
 0x500   : > { %v4609_v1 = vand.u32 2147483647, %v9516_v5  ;;  %v5280_v19 = vadd.s32 4294967176, %v9409_v40  ;;  %v3929_v48 = vmul.f32 %v9356_v3, %v10662_v51  ;;  %vm5208_vm1 = vcmask 326912  }
 0x501   : > { %4964 = vperm.xlu0 %6231, %v4593_v38   ;;  %4961 = vperm.xlu1 %6232, %v4592_v17   ;;  %v4349_v38 = vmul.f32 0.3, %v4093_v27  ;;  %v5217_v17 = vadd.s32 4294967248, %v9409_v40  ;;  %vm4223_vm9 = vcmp.ge.f32.partialorder %v4095_v6, 0.0  ;;  %vm10275_vm5 = vcmask 392512  }
 0x505   : > { %4970 = vperm.xlu0 %6231, %v4595_v9   ;;  %4967 = vperm.xlu1 %6232, %v4594_v20   ;;  %v4477_v9 = vsel %vm4221_vm4, %v4093_v27, %v4349_v38  ;;  %v9488_v20 = vsub.s32 %v5217_v17, %v10641_v37  ;;  %v4099_v27 = vadd.f32 %v9384_v47, %v3926_v22  ;;  %vm5201_vm4 = vcmask 261312  }
 0x506   : > { %v4605_v43 = vand.u32 2147483647, %v4477_v9  ;;  %v3927_v17 = vmul.f32 %v9356_v3, %v10660_v13  ;;  %v10665_v13 = vld [vmem:[#allocation80_spill] sm:$0xff] }
 0x507   : > { %vm4227_vm10 = vcmp.ge.f32.partialorder %v4099_v27, 0.0 }
 0x508   : > { %v4100_v14 = vadd.f32 %v9384_v47, %v3927_v17  ;;  %v3934_v17 = vmul.f32 %v9360_v33, %v10665_v13 }
 0x509   : > { %4976 = vperm.xlu0 %6231, %v4597_v46   ;;  %4973 = vperm.xlu1 %6232, %v4596_v45   ;;  %v4351_v46 = vmul.f32 0.3, %v4095_v6  ;;  %v4350_v45 = vmul.f32 0.3, %v4094_v52 }
 0x50a   : > { %v4356_v22 = vmul.f32 0.3, %v4100_v14  ;;  %vm4228_vm8 = vcmp.ge.f32.partialorder %v4100_v14, 0.0 }
 0x50b   : > { %v4479_v60 = vsel %vm4223_vm9, %v4095_v6, %v4351_v46  ;;  %v4478_v36 = vsel %vm4222_vm7, %v4094_v52, %v4350_v45  ;;  %v4101_v6 = vadd.f32 %v9384_v47, %v3928_v35  ;;  %v4355_v52 = vmul.f32 0.3, %v4099_v27 }
 0x50c   : > { %v4607_v62 = vand.u32 2147483647, %v4479_v60  ;;  %v4606_v16 = vand.u32 2147483647, %v4478_v36  ;;  %v3930_v46 = vmul.f32 %v9356_v3, %v10661_v54  ;;  %v9541_v45 = vsub.s32 %v5266_v2, %v10641_v37  ;;  %v10667_v54 = vld [vmem:[#allocation98_spill] sm:$0xff] }
 0x50d   : > { %4982 = vperm.xlu0 %6231, %v4599_v32   ;;  %4979 = vperm.xlu1 %6232, %v4598_v15   ;;  %v10658_v32 = vld [vmem:[#allocation90_spill] sm:$0xff]  ;;  %v4357_v4 = vmul.f32 0.3, %v4101_v6  ;;  %v4483_v41 = vsel %vm4227_vm10, %v4099_v27, %v4355_v52  ;;  %vm4229_vm2 = vcmp.ge.f32.partialorder %v4101_v6, 0.0  ;;  %v5273_v27 = vadd.s32 4294967184, %v9409_v40 }
 0x50e   : > { %v3925_v15 = vmul.f32 %v9356_v3, %v10658_v32  ;;  %v4103_v56 = vadd.f32 %v9384_v47, %v3930_v46  ;;  %v9557_v3 = vsub.s32 %v5280_v19, %v10641_v37  ;;  %v3936_v46 = vmul.f32 %v9360_v33, %v10667_v54 }
 0x50f   : > { %v4485_v35 = vsel %vm4229_vm2, %v4101_v6, %v4357_v4  ;;  %v9579_v51 = vsub.s32 %v5273_v27, %v10641_v37  ;;  %vm10274_vm2 = vcmask 458112  }
 0x510   : > { %v9492_v31 = vpop.permute.xlu0 %4796  ;;  %v9494_v26 = vpop.permute.xlu1 %4793  ;;  %v4098_v38 = vadd.f32 %v9384_v47, %v3925_v15  ;;  %vm4231_vm11 = vcmp.ge.f32.partialorder %v4103_v56, 0.0  ;;  %v4613_v19 = vand.u32 2147483647, %v4485_v35 }
 0x511   : > { %4988 = vperm.xlu0 %6231, %v4601_v50   ;;  %4985 = vperm.xlu1 %6232, %v4600_v29   ;;  %v9530_v50 = vsub.s32 %v5245_v55, %v10641_v37  ;;  %v5259_v29 = vadd.s32 4294967200, %v9409_v40  ;;  %v10664_v55 = vld [vmem:[#allocation86_spill] sm:$0xff]  ;;  %v10666_v40 = vld [vmem:[#allocation12_spill] sm:$0xff]  ;;  %v5181_v27 = vrot.slane %v9494_v26, %v9444_v63 }
 0x512   : > { %v4354_v9 = vmul.f32 0.3, %v4098_v38  ;;  %vm4226_vm0 = vcmp.ge.f32.partialorder %v4098_v38, 0.0  ;;  %v3931_v61 = vmul.f32 %v9360_v33, %v10664_v55  ;;  %v3933_v52 = vmul.f32 %v9360_v33, %v10666_v40  ;;  %v10668_v55 = vld [vmem:[#allocation37_spill] sm:$0xff] }
 0x513   : > { %v9547_v42 = vsub.s32 %v5259_v29, %v10641_v37  ;;  %v5186_v37 = vrot.slane %v9492_v31, %v9440_v59 }
 0x514   : > { %v9509_v58 = vpop.permute.xlu0 %4802  ;;  %v9511_v11 = vpop.permute.xlu1 %4799  ;;  %v4482_v36 = vsel %vm4226_vm0, %v4098_v38, %v4354_v9  ;;  %v4484_v38 = vsel %vm4228_vm8, %v4100_v14, %v4356_v22  ;;  %v4104_v2 = vadd.f32 %v9389_v25, %v3931_v61  ;;  %v4106_v14 = vadd.f32 %v9389_v25, %v3933_v52 }
 0x515   : > { %4994 = vperm.xlu0 %6231, %v4603_v57   ;;  %4991 = vperm.xlu1 %6232, %v4602_v53   ;;  %v4608_v53 = vand.u32 2147483647, %v4480_v18  ;;  %v4359_v18 = vmul.f32 0.3, %v4103_v56  ;;  %v4610_v29 = vand.u32 2147483647, %v4482_v36  ;;  %v3935_v61 = vmul.f32 %v9360_v33, %v10668_v55 }
 0x516   : > { %v4612_v4 = vand.u32 2147483647, %v4484_v38  ;;  %vm4232_vm15 = vcmp.ge.f32.partialorder %v4104_v2, 0.0  ;;  %v4360_v22 = vmul.f32 0.3, %v4104_v2  ;;  %vm4234_vm7 = vcmp.ge.f32.partialorder %v4106_v14, 0.0 }
 0x517   : > { %v4362_v13 = vmul.f32 0.3, %v4106_v14  ;;  %v4108_v38 = vadd.f32 %v9389_v25, %v3935_v61  ;;  %v10671_v61 = vld [vmem:[#allocation96_spill] sm:$0xff] }
 0x518   : > { %v9533_v39 = vpop.permute.xlu0 %4808  ;;  %v9535_v57 = vpop.permute.xlu1 %4805 }
 0x519   : > { %5000 = vperm.xlu0 %6231, %v4605_v43   ;;  %4997 = vperm.xlu1 %6232, %v4604_v12   ;;  %v4102_v43 = vadd.f32 %v9384_v47, %v3929_v48  ;;  %v10663_v12 = vld [vmem:[#allocation36_spill] sm:$0xff]  ;;  %v4611_v47 = vand.u32 2147483647, %v4483_v41  ;;  %v4487_v41 = vsel %vm4231_vm11, %v4103_v56, %v4359_v18  ;;  %vm4236_vm10 = vcmp.ge.f32.partialorder %v4108_v38, 0.0 }
 0x51a   : > { %v3932_v60 = vmul.f32 %v9360_v33, %v10663_v12  ;;  %v4109_v12 = vadd.f32 %v9389_v25, %v3936_v46  ;;  %v4615_v18 = vand.u32 2147483647, %v4487_v41  ;;  %v4488_v46 = vsel %vm4232_vm15, %v4104_v2, %v4360_v22 }
 0x51b   : > { %vm4230_vm12 = vcmp.ge.f32.partialorder %v4102_v43, 0.0  ;;  %vm10272_vm11 = vcmask 523712  }
 0x51c   : > { %v9552_v32 = vpop.permute.xlu0 %4814  ;;  %v9554_v15 = vpop.permute.xlu1 %4811  ;;  %v4105_v5 = vadd.f32 %v9389_v25, %v3932_v60  ;;  %v4365_v26 = vmul.f32 0.3, %v4109_v12  ;;  %vm4237_vm13 = vcmp.ge.f32.partialorder %v4109_v12, 0.0 }
 0x51d   : > { %5006 = vperm.xlu0 %6231, %v4607_v62   ;;  %5003 = vperm.xlu1 %6232, %v4606_v16   ;;  %v4358_v62 = vmul.f32 0.3, %v4102_v43  ;;  %v4107_v16 = vadd.f32 %v9389_v25, %v3934_v17  ;;  %v10670_v17 = vld [vmem:[#allocation79_spill] sm:$0xff] }
 0x51e   : > { %vm4233_vm3 = vcmp.ge.f32.partialorder %v4105_v5, 0.0  ;;  %v4361_v48 = vmul.f32 0.3, %v4105_v5 }
 0x51f   : > { %v4486_v60 = vsel %vm4230_vm12, %v4102_v43, %v4358_v62  ;;  %v4363_v36 = vmul.f32 0.3, %v4107_v16  ;;  %v3937_v43 = vmul.f32 %v9360_v33, %v10670_v17  ;;  %vm4235_vm9 = vcmp.ge.f32.partialorder %v4107_v16, 0.0 }
 0x520   : > { %v9571_v6 = vpop.permute.xlu0 %4820  ;;  %v9573_v9 = vpop.permute.xlu1 %4817  ;;  %v4614_v40 = vand.u32 2147483647, %v4486_v60  ;;  %v5193_v62 = vrot.slane %v9511_v11, %v9459_v23  ;;  %v4489_v54 = vsel %vm4233_vm3, %v4105_v5, %v4361_v48  ;;  %v9613_v60 = vsel %vm4234_vm7, %v4106_v14, %v4362_v13  ;;  %v10672_v48 = vld [vmem:[#allocation99_spill] sm:$0xff] }
 0x521   : > { %5012 = vperm.xlu0 %6231, %v4609_v1   ;;  %5009 = vperm.xlu1 %6232, %v4608_v53   ;;  %v10669_v1 = vld [vmem:[#allocation55_spill] sm:$0xff]  ;;  %v4110_v52 = vadd.f32 %v9389_v25, %v3937_v43  ;;  %v9610_v41 = vsel %vm4235_vm9, %v4107_v16, %v4363_v36  ;;  %v3940_v11 = vmul.f32 %v9360_v33, %v10671_v61  ;;  %v4364_v5 = vmul.f32 0.3, %v4108_v38 }
 0x522   : > { %v3938_v53 = vmul.f32 %v9360_v33, %v10669_v1  ;;  %v3939_v22 = vmul.f32 %v9360_v33, %v10672_v48  ;;  %v5200_v1 = vrot.slane %v9509_v58, %v9454_v34  ;;  %v5207_v36 = vrot.slane %v9535_v57, %v9479_v10 }
 0x523   : > { %v4366_v16 = vmul.f32 0.3, %v4110_v52  ;;  %vm4238_vm8 = vcmp.ge.f32.partialorder %v4110_v52, 0.0  ;;  %v4617_v58 = vand.u32 2147483647, %v4489_v54  ;;  %vm10270_vm3 = vcmask 589312  }
 0x524   : > { %v9591_v56 = vpop.permute.xlu0 %4826  ;;  %v9593_v35 = vpop.permute.xlu1 %4823  ;;  %v4111_v31 = vadd.f32 %v9389_v25, %v3938_v53  ;;  %v9621_v53 = vsel %vm4237_vm13, %v4109_v12, %v4365_v26  ;;  %v4616_v12 = vand.u32 2147483647, %v4488_v46  ;;  %v4619_v13 = vand.u32 2147483647, %v9610_v41  ;;  %v10673_v46 = vld [vmem:[#allocation26_spill] sm:$0xff] }
 0x525   : > { %5018 = vperm.xlu0 %6231, %v4611_v47   ;;  %5015 = vperm.xlu1 %6232, %v4610_v29   ;;  %v5188_v47 = vsel %vm5187_vm6, %v5186_v37, %v5181_v27  ;;  %v4618_v17 = vand.u32 2147483647, %v9613_v60  ;;  %v4621_v43 = vand.u32 2147483647, %v9621_v53  ;;  %v9636_v26 = vsel %vm4236_vm10, %v4108_v38, %v4364_v5 }
 0x526   : > { %v4367_v2 = vmul.f32 0.3, %v4111_v31  ;;  %vm4239_vm0 = vcmp.ge.f32.partialorder %v4111_v31, 0.0  ;;  %v5195_v14 = vsel %vm5194_vm14, %v5193_v62, %v5188_v47  ;;  %v9643_v54 = vsel %vm4238_vm8, %v4110_v52, %v4366_v16 }
 0x527   : > { %v5202_v57 = vsel %vm5201_vm4, %v5200_v1, %v5195_v14  ;;  %v5214_v41 = vrot.slane %v9533_v39, %v9473_v8  ;;  %v4622_v39 = vand.u32 2147483647, %v9643_v54  ;;  %v5221_v16 = vrot.slane %v9554_v15, %v9488_v20 }
 0x528   : > { %v9605_v29 = vpop.permute.xlu0 %4832  ;;  %v9607_v55 = vpop.permute.xlu1 %4829  ;;  %v9639_v62 = vsel %vm4239_vm0, %v4111_v31, %v4367_v2  ;;  %v5209_v31 = vsel %vm5208_vm1, %v5207_v36, %v5202_v57  ;;  %v4620_v2 = vand.u32 2147483647, %v9636_v26  ;;  %v10676_v57 = vld [vmem:[#allocation97_spill] sm:$0xff]  ;;  %vm10271_vm9 = vcmask 654912  }
 0x529   : > { %5024 = vperm.xlu0 %6231, %v4613_v19   ;;  %5021 = vperm.xlu1 %6232, %v4612_v4   ;;  %v4113_v19 = vadd.f32 %v9389_v25, %v3940_v11  ;;  %v4112_v4 = vadd.f32 %v9389_v25, %v3939_v22  ;;  %v4623_v48 = vand.u32 2147483647, %v9639_v62  ;;  %v10675_v22 = vld [vmem:[#allocation23_spill] sm:$0xff]  ;;  %vm5250_vm10 = vcmask 720512  }
 0x52a   : > { %v3944_v1 = vmul.f32 %v9360_v33, %v10675_v22 }
 0x52b   : > { %vm4241_vm12 = vcmp.ge.f32.partialorder %v4113_v19, 0.0  ;;  %v4369_v38 = vmul.f32 0.3, %v4113_v19  ;;  %v4368_v60 = vmul.f32 0.3, %v4112_v4  ;;  %vm4240_vm15 = vcmp.ge.f32.partialorder %v4112_v4, 0.0 }
 0x52c   : > { %v9628_v37 = vpop.permute.xlu0 %4838  ;;  %v9630_v27 = vpop.permute.xlu1 %4835 }
 0x52d   : > { %5030 = vperm.xlu0 %6231, %v4615_v18   ;;  %5027 = vperm.xlu1 %6232, %v4614_v40   ;;  %v3942_v18 = vmul.f32 %v9360_v33, %v10673_v46  ;;  %v10674_v40 = vld [vmem:[#allocation54_spill] sm:$0xff]  ;;  %v9667_v26 = vsel %vm4241_vm12, %v4113_v19, %v4369_v38  ;;  %v9670_v54 = vsel %vm4240_vm15, %v4112_v4, %v4368_v60  ;;  %vm5257_vm12 = vcmask 786112  }
 0x52e   : > { %v3941_v47 = vmul.f32 %v9360_v33, %v10674_v40  ;;  %v10677_v46 = vld [vmem:[#allocation42_spill] sm:$0xff]  ;;  %vm5264_vm15 = vcmask 851712  }
 0x52f   : > { %v4115_v52 = vadd.f32 %v9389_v25, %v3942_v18  ;;  %v3946_v18 = vmul.f32 %v9360_v33, %v10677_v46 }
 0x530   : > { %v4845_v61 = vpop.permute.xlu0 %4844  ;;  %v4842_v11 = vpop.permute.xlu1 %4841  ;;  %v4114_v5 = vadd.f32 %v9389_v25, %v3941_v47 }
 0x531   : > { %5036 = vperm.xlu0 %6231, %v4617_v58   ;;  %5033 = vperm.xlu1 %6232, %v4616_v12   ;;  %v5294_v14 = vrot.slane %v4845_v61, %v9440_v59  ;;  %v5290_v36 = vrot.slane %v4842_v11, %v9444_v63  ;;  %v3943_v58 = vmul.f32 %v9360_v33, %v10676_v57  ;;  %v4371_v47 = vmul.f32 0.3, %v4115_v52 }
 0x532   : > { %v5216_v12 = vsel %vm10275_vm5, %v5214_v41, %v5209_v31  ;;  %v4370_v61 = vmul.f32 0.3, %v4114_v5  ;;  %v4117_v11 = vadd.f32 %v9389_v25, %v3944_v1  ;;  %v5228_v41 = vrot.slane %v9552_v32, %v9485_v49 }
 0x533   : > { %v4116_v22 = vadd.f32 %v9389_v25, %v3943_v58  ;;  %vm4243_vm7 = vcmp.ge.f32.partialorder %v4115_v52, 0.0  ;;  %vm4242_vm13 = vcmp.ge.f32.partialorder %v4114_v5, 0.0  ;;  %v5223_v4 = vsel %vm10274_vm2, %v5221_v16, %v5216_v12 }
 0x534   : > { %v4851_v15 = vpop.permute.xlu0 %4850  ;;  %v4848_v40 = vpop.permute.xlu1 %4847  ;;  %v5295_v38 = vsel %vm5187_vm6, %v5294_v14, %v5290_v36  ;;  %v4625_v31 = vand.u32 2147483647, %v9667_v26  ;;  %v5235_v1 = vrot.slane %v9573_v9, %v9514_v24  ;;  %v4624_v57 = vand.u32 2147483647, %v9670_v54  ;;  %v10678_v54 = vld [vmem:[#allocation27_spill] sm:$0xff] }
 0x535   : > { %v5299_v19 = vrot.slane %v4848_v40, %v9459_v23  ;;  %5042 = vperm.xlu0 %6231, %v4619_v13   ;;  %5039 = vperm.xlu1 %6232, %v4618_v17   ;;  %v5304_v60 = vrot.slane %v4851_v15, %v9454_v34  ;;  %v4119_v13 = vadd.f32 %v9389_v25, %v3946_v18  ;;  %v4373_v14 = vmul.f32 0.3, %v4117_v11 }
 0x536   : > { %v9688_v46 = vsel %vm4243_vm7, %v4115_v52, %v4371_v47  ;;  %v9690_v16 = vsel %vm4242_vm13, %v4114_v5, %v4370_v61  ;;  %v4372_v36 = vmul.f32 0.3, %v4116_v22  ;;  %v5230_v12 = vsel %vm10272_vm11, %v5228_v41, %v5223_v4 }
 0x537   : > { %v5300_v32 = vsel %vm5194_vm14, %v5299_v19, %v5295_v38  ;;  %vm4245_vm0 = vcmp.ge.f32.partialorder %v4117_v11, 0.0  ;;  %vm4244_vm8 = vcmp.ge.f32.partialorder %v4116_v22, 0.0  ;;  %v5242_v9 = vrot.slane %v9571_v6, %v9504_v30  ;;  %v10679_v38 = vld [vmem:[#allocation18_spill] sm:$0xff] }
 0x538   : > { %v4857_v17 = vpop.permute.xlu0 %4856  ;;  %v4854_v58 = vpop.permute.xlu1 %4853  ;;  %v5305_v5 = vsel %vm5201_vm4, %v5304_v60, %v5300_v32  ;;  %v3945_v18 = vmul.f32 %v9360_v33, %v10678_v54  ;;  %v5237_v15 = vsel %vm10270_vm3, %v5235_v1, %v5230_v12  ;;  %v9706_v6 = vsel %vm4245_vm0, %v4117_v11, %v4373_v14  ;;  %v10682_v54 = vld [vmem:[#allocation43_spill] sm:$0xff] }
 0x539   : > { %v5309_v26 = vrot.slane %v4854_v58, %v9479_v10  ;;  %5048 = vperm.xlu0 %6231, %v4621_v43   ;;  %5045 = vperm.xlu1 %6232, %v4620_v2   ;;  %v5314_v52 = vrot.slane %v4857_v17, %v9473_v8  ;;  %v4627_v43 = vand.u32 2147483647, %v9688_v46  ;;  %v4626_v2 = vand.u32 2147483647, %v9690_v16 }
 0x53a   : > { %v9708_v61 = vsel %vm4244_vm8, %v4116_v22, %v4372_v36  ;;  %v4375_v41 = vmul.f32 0.3, %v4119_v13  ;;  %v4118_v19 = vadd.f32 %v9389_v25, %v3945_v18  ;;  %v5249_v33 = vrot.slane %v9593_v35, %v9530_v50  ;;  %v10680_v25 = vld [vmem:[#allocation24_spill] sm:$0xff] }
 0x53b   : > { %v5310_v53 = vsel %vm5208_vm1, %v5309_v26, %v5305_v5  ;;  %vm4247_vm7 = vcmp.ge.f32.partialorder %v4119_v13, 0.0  ;;  %v3948_v60 = vmul.f32 %v9365_v44, %v10679_v38  ;;  %v5244_v11 = vsel %vm10271_vm9, %v5242_v9, %v5237_v15  ;;  %v10681_v26 = vld [vmem:[#allocation39_spill] sm:$0xff] }
 0x53c   : > { %v4863_v40 = vpop.permute.xlu0 %4862  ;;  %v4860_v47 = vpop.permute.xlu1 %4859  ;;  %v5315_v1 = vsel %vm10275_vm5, %v5314_v52, %v5310_v53  ;;  %v3947_v32 = vmul.f32 %v9365_v44, %v10680_v25  ;;  %v5256_v35 = vrot.slane %v9591_v56, %v9525_v21  ;;  %vm10273_vm13 = vcmask 917312  }
 0x53d   : > { %v5319_v4 = vrot.slane %v4860_v47, %v9488_v20  ;;  %5054 = vperm.xlu0 %6231, %v4623_v48   ;;  %5051 = vperm.xlu1 %6232, %v4622_v39   ;;  %v5324_v22 = vrot.slane %v4863_v40, %v9485_v49  ;;  %v4629_v48 = vand.u32 2147483647, %v9706_v6  ;;  %v4121_v39 = vadd.f32 %v9406_v28, %v3948_v60 }
 0x53e   : > { %v4628_v46 = vand.u32 2147483647, %v9708_v61  ;;  %v9729_v16 = vsel %vm4247_vm7, %v4119_v13, %v4375_v41  ;;  %v4374_v14 = vmul.f32 0.3, %v4118_v19  ;;  %v4120_v36 = vadd.f32 %v9406_v28, %v3947_v32 }
 0x53f   : > { %v5320_v62 = vsel %vm10274_vm2, %v5319_v4, %v5315_v1  ;;  %v5251_v12 = vsel %vm5250_vm10, %v5249_v33, %v5244_v11  ;;  %vm4246_vm0 = vcmp.ge.f32.partialorder %v4118_v19, 0.0  ;;  %v3950_v9 = vmul.f32 %v9365_v44, %v10681_v26  ;;  %v10683_v11 = vld [vmem:[#allocation16_spill] sm:$0xff] }
 0x540   : > { %v4869_v17 = vpop.permute.xlu0 %4868  ;;  %v4866_v58 = vpop.permute.xlu1 %4865  ;;  %v5263_v52 = vrot.slane %v9607_v55, %v9547_v42  ;;  %v5325_v13 = vsel %vm10272_vm11, %v5324_v22, %v5320_v62  ;;  %v3949_v18 = vmul.f32 %v9365_v44, %v10682_v54  ;;  %v4631_v53 = vand.u32 2147483647, %v9729_v16 }
 0x541   : > { %v5329_v56 = vrot.slane %v4866_v58, %v9514_v24  ;;  %5060 = vperm.xlu0 %6231, %v4625_v31   ;;  %5057 = vperm.xlu1 %6232, %v4624_v57   ;;  %v5334_v5 = vrot.slane %v4869_v17, %v9504_v30  ;;  %v4377_v31 = vmul.f32 0.3, %v4121_v39  ;;  %v4123_v57 = vadd.f32 %v9406_v28, %v3950_v9  ;;  %v10684_v58 = vld [vmem:[#allocation19_spill] sm:$0xff] }
 0x542   : > { %v4502_v6 = vsel %vm4246_vm0, %v4118_v19, %v4374_v14  ;;  %vm4249_vm8 = vcmp.ge.f32.partialorder %v4121_v39, 0.0  ;;  %v4376_v61 = vmul.f32 0.3, %v4120_v36  ;;  %v4122_v55 = vadd.f32 %v9406_v28, %v3949_v18 }
 0x543   : > { %v5330_v15 = vsel %vm10270_vm3, %v5329_v56, %v5325_v13  ;;  %v5270_v41 = vrot.slane %v9605_v29, %v9541_v45  ;;  %v5258_v33 = vsel %vm5257_vm12, %v5256_v35, %v5251_v12  ;;  %vm4248_vm7 = vcmp.ge.f32.partialorder %v4120_v36, 0.0  ;;  %v10685_v12 = vld [vmem:[#allocation34_spill] sm:$0xff] }
 0x544   : > { %v4875_v40 = vpop.permute.xlu0 %4874  ;;  %v4872_v47 = vpop.permute.xlu1 %4871  ;;  %v5265_v38 = vsel %vm5264_vm15, %v5263_v52, %v5258_v33  ;;  %vm5278_vm3 = vcmask 982912   ;;  %v5335_v19 = vsel %vm10271_vm9, %v5334_v5, %v5330_v15  ;;  %v3952_v22 = vmul.f32 %v9365_v44, %v10683_v11 }
 0x545   : > { %v5339_v4 = vrot.slane %v4872_v47, %v9530_v50  ;;  %5066 = vperm.xlu0 %6231, %v4627_v43   ;;  %5063 = vperm.xlu1 %6232, %v4626_v2   ;;  %v5344_v60 = vrot.slane %v4875_v40, %v9525_v21  ;;  %vm5285_vm0 = vcmask 1048512   ;;  %v4630_v1 = vand.u32 2147483647, %v4502_v6 }
 0x546   : > { %v4505_v25 = vsel %vm4249_vm8, %v4121_v39, %v4377_v31  ;;  %v4379_v32 = vmul.f32 0.3, %v4123_v57  ;;  %v4504_v35 = vsel %vm4248_vm7, %v4120_v36, %v4376_v61  ;;  %v4378_v62 = vmul.f32 0.3, %v4122_v55  ;;  %v10686_v31 = vld [vmem:[#allocation40_spill] sm:$0xff] }
 0x547   : > { %v5340_v29 = vsel %vm5250_vm10, %v5339_v4, %v5335_v19  ;;  %v4125_v17 = vadd.f32 %v9406_v28, %v3952_v22  ;;  %v3951_v16 = vmul.f32 %v9365_v44, %v10684_v58  ;;  %vm4251_vm9 = vcmp.ge.f32.partialorder %v4123_v57, 0.0 }
 0x548   : > { %v4881_v43 = vpop.permute.xlu0 %4880  ;;  %v4878_v2 = vpop.permute.xlu1 %4877  ;;  %vm4250_vm11 = vcmp.ge.f32.partialorder %v4122_v55, 0.0  ;;  %v3954_v56 = vmul.f32 %v9365_v44, %v10685_v12  ;;  %v9764_v39 = vsel %vm10273_vm13, %v5270_v41, %v5265_v38  ;;  %v5345_v26 = vsel %vm5257_vm12, %v5344_v60, %v5340_v29  ;;  %v10687_v41 = vld [vmem:[#allocation31_spill] sm:$0xff]  ;;  %v10689_v12 = vld [vmem:[#allocation48_spill] sm:$0xff] }
 0x549   : > { %v5349_v14 = vrot.slane %v4878_v2, %v9547_v42  ;;  %5072 = vperm.xlu0 %6231, %v4629_v48   ;;  %5069 = vperm.xlu1 %6232, %v4628_v46   ;;  %v5354_v36 = vrot.slane %v4881_v43, %v9541_v45  ;;  %v4124_v9 = vadd.f32 %v9406_v28, %v3951_v16  ;;  %v4633_v5 = vand.u32 2147483647, %v4505_v25 }
 0x54a   : > { %v4632_v13 = vand.u32 2147483647, %v4504_v35  ;;  %v4127_v48 = vadd.f32 %v9406_v28, %v3954_v56  ;;  %v4507_v18 = vsel %vm4251_vm9, %v4123_v57, %v4379_v32  ;;  %v4506_v15 = vsel %vm4250_vm11, %v4122_v55, %v4378_v62  ;;  %v10688_v55 = vld [vmem:[#allocation17_spill] sm:$0xff] }
 0x54b   : > { %v5350_v52 = vsel %vm5264_vm15, %v5349_v14, %v5345_v26  ;;  %vm4253_vm8 = vcmp.ge.f32.partialorder %v4125_v17, 0.0  ;;  %v3953_v40 = vmul.f32 %v9365_v44, %v10686_v31  ;;  %v4381_v61 = vmul.f32 0.3, %v4125_v17  ;;  %v10691_v31 = vld [vmem:[#allocation65_spill] sm:$0xff] }
 0x54c   : > { %v4887_v46 = vpop.permute.xlu0 %4886  ;;  %v4884_v54 = vpop.permute.xlu1 %4883  ;;  %v3956_v33 = vmul.f32 %v9365_v44, %v10687_v41  ;;  %v5355_v4 = vsel %vm10273_vm13, %v5354_v36, %v5350_v52  ;;  %v4380_v38 = vmul.f32 0.3, %v4124_v9  ;;  %v3955_v60 = vmul.f32 %v9365_v44, %v10688_v55 }
 0x54d   : > { %v5364_v47 = vrot.slane %v4887_v46, %v9557_v3  ;;  %v5359_v6 = vrot.slane %v4884_v54, %v9579_v51  ;;  %5078 = vperm.xlu0 %6231, %v4631_v53   ;;  %5075 = vperm.xlu1 %6232, %v4630_v1   ;;  %v4126_v57 = vadd.f32 %v9406_v28, %v3953_v40  ;;  %vm4252_vm11 = vcmp.ge.f32.partialorder %v4124_v9, 0.0 }
 0x54e   : > { %v4383_v11 = vmul.f32 0.3, %v4127_v48  ;;  %v4129_v22 = vadd.f32 %v9406_v28, %v3956_v33  ;;  %v5284_v53 = vrot.slane %v9628_v37, %v9557_v3  ;;  %vm4255_vm9 = vcmp.ge.f32.partialorder %v4127_v48, 0.0 }
 0x54f   : > { %v5360_v19 = vsel %vm5278_vm3, %v5359_v6, %v5355_v4  ;;  %v4128_v32 = vadd.f32 %v9406_v28, %v3955_v60  ;;  %v4635_v35 = vand.u32 2147483647, %v4507_v18  ;;  %v4634_v62 = vand.u32 2147483647, %v4506_v15  ;;  %v10690_v18 = vld [vmem:[#allocation35_spill] sm:$0xff] }
 0x550   : > { %v9786_v29 = vsel %vm5285_vm0, %v5364_v47, %v5360_v19  ;;  %v4893_v1 = vpop.permute.xlu0 %4892  ;;  %v4890_v25 = vpop.permute.xlu1 %4889  ;;  %v4509_v58 = vsel %vm4253_vm8, %v4125_v17, %v4381_v61  ;;  %v4508_v16 = vsel %vm4252_vm11, %v4124_v9, %v4380_v38  ;;  %v4382_v14 = vmul.f32 0.3, %v4126_v57  ;;  %v10692_v38 = vld [vmem:[#allocation78_spill] sm:$0xff] }
 0x551   : > { %v5373_v43 = vrot.slane %v4893_v1, %v9440_v59  ;;  %v5369_v2 = vrot.slane %v4890_v25, %v9444_v63  ;;  %5084 = vperm.xlu0 %6231, %v4633_v5   ;;  %5081 = vperm.xlu1 %6232, %v4632_v13   ;;  %v3963_v56 = vmul.f32 %v9381_v0, %v10689_v12  ;;  %vm4254_vm7 = vcmp.ge.f32.partialorder %v4126_v57, 0.0 }
 0x552   : > { %v4511_v26 = vsel %vm4255_vm9, %v4127_v48, %v4383_v11  ;;  %v4385_v52 = vmul.f32 0.3, %v4129_v22  ;;  %vm4257_vm13 = vcmp.ge.f32.partialorder %v4129_v22, 0.0  ;;  %v4384_v5 = vmul.f32 0.3, %v4128_v32 }
 0x553   : > { %v5374_v36 = vsel %vm5187_vm6, %v5373_v43, %v5369_v2  ;;  %v4136_v13 = vadd.f32 %v9424_v7, %v3963_v56  ;;  %v3957_v17 = vmul.f32 %v9365_v44, %v10690_v18  ;;  %vm4256_vm8 = vcmp.ge.f32.partialorder %v4128_v32, 0.0 }
 0x554   : > { %v4899_v46 = vpop.permute.xlu0 %4898  ;;  %v4896_v54 = vpop.permute.xlu1 %4895  ;;  %v3965_v48 = vmul.f32 %v9381_v0, %v10691_v31  ;;  %v4637_v40 = vand.u32 2147483647, %v4509_v58  ;;  %v4636_v47 = vand.u32 2147483647, %v4508_v16  ;;  %v4510_v6 = vsel %vm4254_vm7, %v4126_v57, %v4382_v14 }
 0x555   : > { %v5383_v9 = vrot.slane %v4899_v46, %v9454_v34  ;;  %v5378_v15 = vrot.slane %v4896_v54, %v9459_v23  ;;  %5090 = vperm.xlu0 %6231, %v4635_v35   ;;  %5087 = vperm.xlu1 %6232, %v4634_v62   ;;  %v4130_v61 = vadd.f32 %v9406_v28, %v3957_v17  ;;  %v4639_v1 = vand.u32 2147483647, %v4511_v26  ;;  %v10693_v46 = vld [vmem:[#allocation83_spill] sm:$0xff]  ;;  %v10694_v17 = vld [vmem:[#allocation94_spill] sm:$0xff] }
 0x556   : > { %v4513_v33 = vsel %vm4257_vm13, %v4129_v22, %v4385_v52  ;;  %v4138_v4 = vadd.f32 %v9424_v7, %v3965_v48  ;;  %v3964_v55 = vmul.f32 %v9381_v0, %v10692_v38  ;;  %v4512_v25 = vsel %vm4256_vm8, %v4128_v32, %v4384_v5  ;;  %v10695_v48 = vld [vmem:[#allocation95_spill] sm:$0xff] }
 0x557   : > { %v5379_v41 = vsel %vm5194_vm14, %v5378_v15, %v5374_v36  ;;  %v4392_v43 = vmul.f32 0.3, %v4136_v13  ;;  %vm4264_vm11 = vcmp.ge.f32.partialorder %v4136_v13, 0.0  ;;  %v5277_v35 = vrot.slane %v9630_v27, %v9579_v51 }
 0x558   : > { %v4905_v60 = vpop.permute.xlu0 %4904  ;;  %v5384_v19 = vsel %vm5201_vm4, %v5383_v9, %v5379_v41  ;;  %v4902_v11 = vpop.permute.xlu1 %4901  ;;  %v4137_v22 = vadd.f32 %v9424_v7, %v3964_v55  ;;  %v4638_v62 = vand.u32 2147483647, %v4510_v6  ;;  %v4641_v58 = vand.u32 2147483647, %v4513_v33 }
 0x559   : > { %v5393_v2 = vrot.slane %v4905_v60, %v9473_v8  ;;  %v5388_v57 = vrot.slane %v4902_v11, %v9479_v10  ;;  %5096 = vperm.xlu0 %6231, %v4637_v40   ;;  %5093 = vperm.xlu1 %6232, %v4636_v47   ;;  %v4386_v16 = vmul.f32 0.3, %v4130_v61  ;;  %v4640_v12 = vand.u32 2147483647, %v4512_v25  ;;  %v10696_v40 = vld [vmem:[#allocation68_spill] sm:$0xff] }
 0x55a   : > { %vm4258_vm13 = vcmp.ge.f32.partialorder %v4130_v61, 0.0  ;;  %v4394_v32 = vmul.f32 0.3, %v4138_v4  ;;  %v4520_v52 = vsel %vm4264_vm11, %v4136_v13, %v4392_v43  ;;  %vm4266_vm9 = vcmp.ge.f32.partialorder %v4138_v4, 0.0 }
 0x55b   : > { %v5389_v14 = vsel %vm5208_vm1, %v5388_v57, %v5384_v19  ;;  %v3967_v54 = vmul.f32 %v9381_v0, %v10693_v46  ;;  %v4393_v18 = vmul.f32 0.3, %v4137_v22  ;;  %v3966_v9 = vmul.f32 %v9381_v0, %v10694_v17 }
 0x55c   : > { %v4911_v56 = vpop.permute.xlu0 %4910  ;;  %v5394_v36 = vsel %vm10275_vm5, %v5393_v2, %v5389_v14  ;;  %v4908_v26 = vpop.permute.xlu1 %4907  ;;  %v4514_v15 = vsel %vm4258_vm13, %v4130_v61, %v4386_v16  ;;  %v3969_v13 = vmul.f32 %v9381_v0, %v10695_v48  ;;  %v3968_v47 = vmul.f32 %v9381_v0, %v10696_v40  ;;  %v10699_v16 = vld [vmem:[#allocation71_spill] sm:$0xff] }
 0x55d   : > { %v5403_v5 = vrot.slane %v4911_v56, %v9485_v49  ;;  %v5398_v27 = vrot.slane %v4908_v26, %v9488_v20  ;;  %5102 = vperm.xlu0 %6231, %v4639_v1   ;;  %5099 = vperm.xlu1 %6232, %v4638_v62   ;;  %v4140_v31 = vadd.f32 %v9424_v7, %v3967_v54  ;;  %vm4265_vm7 = vcmp.ge.f32.partialorder %v4137_v22, 0.0  ;;  %v10701_v26 = vld [vmem:[#allocation88_spill] sm:$0xff] }
 0x55e   : > { %v4522_v41 = vsel %vm4266_vm9, %v4138_v4, %v4394_v32  ;;  %v4139_v33 = vadd.f32 %v9424_v7, %v3966_v9  ;;  %v5279_v38 = vsel %vm5278_vm3, %v5277_v35, %v9764_v39  ;;  %vm10697_vm8 = vcmask 523712  }
 0x55f   : > { %v5399_v6 = vsel %vm10274_vm2, %v5398_v27, %v5394_v36  ;;  %v4142_v19 = vadd.f32 %v9424_v7, %v3969_v13  ;;  %v4141_v11 = vadd.f32 %v9424_v7, %v3968_v47  ;;  %v4648_v4 = vand.u32 2147483647, %v4520_v52  ;;  %v10703_v13 = vld [vmem:[#allocation50_spill] sm:$0xff] }
 0x560   : > { %v4917_v55 = vpop.permute.xlu0 %4916  ;;  %v5404_v61 = vsel %vm10697_vm8, %v5403_v5, %v5399_v6  ;;  %v4914_v60 = vpop.permute.xlu1 %4913  ;;  %v4642_v43 = vand.u32 2147483647, %v4514_v15  ;;  %v4650_v2 = vand.u32 2147483647, %v4522_v41  ;;  %v4521_v57 = vsel %vm4265_vm7, %v4137_v22, %v4393_v18  ;;  %v10702_v18 = vld [vmem:[#allocation51_spill] sm:$0xff] }
 0x561   : > { %v5413_v1 = vrot.slane %v4917_v55, %v9504_v30  ;;  %v5408_v25 = vrot.slane %v4914_v60, %v9514_v24  ;;  %5108 = vperm.xlu0 %6231, %v4641_v58   ;;  %5105 = vperm.xlu1 %6232, %v4640_v12   ;;  %vm4268_vm11 = vcmp.ge.f32.partialorder %v4140_v31, 0.0  ;;  %v4396_v39 = vmul.f32 0.3, %v4140_v31 }
 0x562   : > { %vm5840_vm13 = vcmask 1041409   ;;  %vm10698_vm9 = vcmask 589312   ;;  %vm4267_vm8 = vcmp.ge.f32.partialorder %v4139_v33, 0.0  ;;  %v4395_v62 = vmul.f32 0.3, %v4139_v33 }
 0x563   : > { %v5409_v35 = vsel %vm10698_vm9, %v5408_v25, %v5404_v61  ;;  %v3971_v14 = vmul.f32 %v9381_v0, %v10699_v16  ;;  %vm10700_vm2 = vcmask 654912   ;;  %v4398_v58 = vmul.f32 0.3, %v4142_v19  ;;  %v10705_v16 = vld [vmem:[#allocation32_spill] sm:$0xff] }
 0x564   : > { %v4923_v32 = vpop.permute.xlu0 %4922  ;;  %v5414_v56 = vsel %vm10700_vm2, %v5413_v1, %v5409_v35  ;;  %v4920_v36 = vpop.permute.xlu1 %4919  ;;  %v4397_v12 = vmul.f32 0.3, %v4141_v11  ;;  %v3970_v52 = vmul.f32 %v9381_v0, %v10701_v26  ;;  %vm4270_vm7 = vcmp.ge.f32.partialorder %v4142_v19, 0.0 }
 0x565   : > { %v5423_v22 = vrot.slane %v4923_v32, %v9525_v21  ;;  %v5418_v46 = vrot.slane %v4920_v36, %v9530_v50  ;;  %5129 = vperm.xlu0 %6231, %v4648_v4   ;;  %5111 = vperm.xlu1 %6232, %v4642_v43   ;;  %vm4269_vm9 = vcmp.ge.f32.partialorder %v4141_v11, 0.0  ;;  %v4649_v54 = vand.u32 2147483647, %v4521_v57 }
 0x566   : > { %vm5842_vm5 = vcmask 1042434   ;;  %v4524_v5 = vsel %vm4268_vm11, %v4140_v31, %v4396_v39  ;;  %v4144_v27 = vadd.f32 %v9424_v7, %v3971_v14  ;;  %v3958_v17 = vmul.f32 %v9365_v44, %v10702_v18 }
 0x567   : > { %v5419_v9 = vsel %vm5250_vm10, %v5418_v46, %v5414_v56  ;;  %v4523_v15 = vsel %vm4267_vm8, %v4139_v33, %v4395_v62  ;;  %v4143_v48 = vadd.f32 %v9424_v7, %v3970_v52  ;;  %v3972_v40 = vmul.f32 %v9381_v0, %v10703_v13  ;;  %v10706_v56 = vld [vmem:[#allocation91_spill] sm:$0xff] }
 0x568   : > { %v4929_v47 = vpop.permute.xlu0 %4928  ;;  %v5424_v6 = vsel %vm5257_vm12, %v5423_v22, %v5419_v9  ;;  %v4926_v41 = vpop.permute.xlu1 %4925  ;;  %v4526_v55 = vsel %vm4270_vm7, %v4142_v19, %v4398_v58  ;;  %v4525_v31 = vsel %vm4269_vm9, %v4141_v11, %v4397_v12  ;;  %v4131_v61 = vadd.f32 %v9406_v28, %v3958_v17 }
 0x569   : > { %v5286_v60 = vsel %vm5285_vm0, %v5284_v53, %v5279_v38  ;;  %v5433_v33 = vrot.slane %v4929_v47, %v9541_v45  ;;  %v5428_v1 = vrot.slane %v4926_v41, %v9547_v42  ;;  %5135 = vperm.xlu0 %6231, %v4650_v2   ;;  %5132 = vperm.xlu1 %6232, %v4649_v54   ;;  %v4652_v25 = vand.u32 2147483647, %v4524_v5 }
 0x56a   : > { %v4651_v4 = vand.u32 2147483647, %v4523_v15  ;;  %vm4272_vm2 = vcmp.ge.f32.partialorder %v4144_v27, 0.0  ;;  %v4400_v43 = vmul.f32 0.3, %v4144_v27  ;;  %v4145_v19 = vadd.f32 %v9424_v7, %v3972_v40  ;;  %v10707_v15 = vld [vmem:[#allocation47_spill] sm:$0xff] }
 0x56b   : > { %v5429_v11 = vsel %vm5264_vm15, %v5428_v1, %v5424_v6  ;;  %v4654_v57 = vand.u32 2147483647, %v4526_v55  ;;  %v4653_v39 = vand.u32 2147483647, %v4525_v31  ;;  %v4399_v35 = vmul.f32 0.3, %v4143_v48 }
 0x56c   : > { %v4935_v37 = vpop.permute.xlu0 %4934  ;;  %vm10704_vm11 = vcmask 917312   ;;  %v4932_v38 = vpop.permute.xlu1 %4931  ;;  %vm4271_vm8 = vcmp.ge.f32.partialorder %v4143_v48, 0.0  ;;  %v4387_v62 = vmul.f32 0.3, %v4131_v61  ;;  %v3959_v2 = vmul.f32 %v9365_v44, %v10705_v16 }
 0x56d   : > { %v5434_v53 = vsel %vm10704_vm11, %v5433_v33, %v5429_v11  ;;  %v5443_v14 = vrot.slane %v4935_v37, %v9557_v3  ;;  %v5438_v32 = vrot.slane %v4932_v38, %v9579_v51  ;;  %5141 = vperm.xlu0 %6231, %v4652_v25   ;;  %5138 = vperm.xlu1 %6232, %v4651_v4   ;;  %vm4259_vm7 = vcmp.ge.f32.partialorder %v4131_v61, 0.0  ;;  %v10710_v38 = vld [vmem:[#allocation100_spill] sm:$0xff] }
 0x56e   : > { %v3973_v36 = vmul.f32 %v9381_v0, %v10706_v56  ;;  %v5841_v58 = vsel %vm5840_vm13, %v9786_v29, %v5286_v60  ;;  %v4528_v12 = vsel %vm4272_vm2, %v4144_v27, %v4400_v43  ;;  %v4401_v26 = vmul.f32 0.3, %v4145_v19  ;;  %v10708_v29 = vld [vmem:[#allocation33_spill] sm:$0xff]  ;;  %v10711_v56 = vld [vmem:[#allocation46_spill] sm:$0xff] }
 0x56f   : > { %v4132_v52 = vadd.f32 %v9406_v28, %v3959_v2  ;;  %v5439_v22 = vsel %vm5278_vm3, %v5438_v32, %v5434_v53  ;;  %v4527_v46 = vsel %vm4271_vm8, %v4143_v48, %v4399_v35  ;;  %vm4273_vm9 = vcmp.ge.f32.partialorder %v4145_v19, 0.0 }
 0x570   : > { %v4146_v54 = vadd.f32 %v9424_v7, %v3973_v36  ;;  %v5444_v5 = vsel %vm5285_vm0, %v5443_v14, %v5439_v22  ;;  %v4941_v18 = vpop.permute.xlu0 %4940  ;;  %v4938_v17 = vpop.permute.xlu1 %4937  ;;  %v4515_v9 = vsel %vm4259_vm7, %v4131_v61, %v4387_v62  ;;  %v3960_v13 = vmul.f32 %v9365_v44, %v10707_v15  ;;  %v10713_v15 = vld [vmem:[#allocation49_spill] sm:$0xff] }
 0x571   : > { %v3974_v27 = vmul.f32 %v9381_v0, %v10708_v29  ;;  %v9883_v40 = vsel %vm5842_vm5, %v5444_v5, %v5841_v58  ;;  %v5452_v47 = vrot.slane %v4941_v18, %v9440_v59  ;;  %v5448_v48 = vrot.slane %v4938_v17, %v9444_v63  ;;  %5147 = vperm.xlu0 %6231, %v4654_v57  }
 0x572   : > { %5144 = vperm.xlu1 %6232, %v4653_v39   ;;  %v4656_v6 = vand.u32 2147483647, %v4528_v12  ;;  %v4655_v41 = vand.u32 2147483647, %v4527_v46  ;;  %v4529_v55 = vsel %vm4273_vm9, %v4145_v19, %v4401_v26  ;;  %v4388_v31 = vmul.f32 0.3, %v4132_v52 }
 0x573   : > { %v4133_v61 = vadd.f32 %v9406_v28, %v3960_v13  ;;  %v5453_v60 = vsel %vm5187_vm6, %v5452_v47, %v5448_v48  ;;  %vm4260_vm13 = vcmp.ge.f32.partialorder %v4132_v52, 0.0  ;;  %v4402_v33 = vmul.f32 0.3, %v4146_v54  ;;  %v10709_v39 = vld [vmem:[#allocation52_spill] sm:$0xff] }
 0x574   : > { %v4147_v1 = vadd.f32 %v9424_v7, %v3974_v27  ;;  %v4947_v25 = vpop.permute.xlu0 %4946  ;;  %v4944_v4 = vpop.permute.xlu1 %4943  ;;  %v4643_v43 = vand.u32 2147483647, %v4515_v9  ;;  %vm4274_vm5 = vcmp.ge.f32.partialorder %v4146_v54, 0.0  ;;  %v4657_v19 = vand.u32 2147483647, %v4529_v55 }
 0x575   : > { %v5462_v11 = vrot.slane %v4947_v25, %v9454_v34  ;;  %v5457_v57 = vrot.slane %v4944_v4, %v9459_v23  ;;  %5153 = vperm.xlu0 %6231, %v4656_v6   ;;  %v3961_v35 = vmul.f32 %v9365_v44, %v10709_v39  ;;  %v4516_v37 = vsel %vm4260_vm13, %v4132_v52, %v4388_v31 }
 0x576   : > { %5150 = vperm.xlu1 %6232, %v4655_v41   ;;  %vm4261_vm2 = vcmp.ge.f32.partialorder %v4133_v61, 0.0  ;;  %v4389_v53 = vmul.f32 0.3, %v4133_v61  ;;  %v3975_v62 = vmul.f32 %v9381_v0, %v10710_v38  ;;  %v4530_v2 = vsel %vm4274_vm5, %v4146_v54, %v4402_v33  ;;  %v10712_v54 = vld [vmem:[#allocation62_spill] sm:$0xff] }
 0x577   : > { %v5458_v16 = vsel %vm5194_vm14, %v5457_v57, %v5453_v60  ;;  %v4403_v14 = vmul.f32 0.3, %v4147_v1  ;;  %v4134_v32 = vadd.f32 %v9406_v28, %v3961_v35  ;;  %v3978_v36 = vmul.f32 %v9381_v0, %v10711_v56 }
 0x578   : > { %v4953_v58 = vpop.permute.xlu0 %4952  ;;  %v5463_v12 = vsel %vm5201_vm4, %v5462_v11, %v5458_v16  ;;  %v4950_v26 = vpop.permute.xlu1 %4949  ;;  %vm4275_vm11 = vcmp.ge.f32.partialorder %v4147_v1, 0.0  ;;  %v4148_v52 = vadd.f32 %v9424_v7, %v3975_v62  ;;  %v3962_v5 = vmul.f32 %v9365_v44, %v10712_v54 }
 0x579   : > { %v5472_v22 = vrot.slane %v4953_v58, %v9473_v8  ;;  %v5467_v46 = vrot.slane %v4950_v26, %v9479_v10  ;;  %5114 = vperm.xlu0 %6231, %v4643_v43   ;;  %v4644_v18 = vand.u32 2147483647, %v4516_v37  ;;  %v4658_v17 = vand.u32 2147483647, %v4530_v2 }
 0x57a   : > { %5156 = vperm.xlu1 %6232, %v4657_v19   ;;  %v4517_v9 = vsel %vm4261_vm2, %v4133_v61, %v4389_v53  ;;  %v3976_v13 = vmul.f32 %v9381_v0, %v10713_v15  ;;  %v4531_v27 = vsel %vm4275_vm11, %v4147_v1, %v4403_v14  ;;  %v4390_v47 = vmul.f32 0.3, %v4134_v32 }
 0x57b   : > { %v5468_v29 = vsel %vm5208_vm1, %v5467_v46, %v5463_v12  ;;  %v4135_v48 = vadd.f32 %v9406_v28, %v3962_v5  ;;  %vm10714_vm8 = vcmask 392512   ;;  %vm4262_vm7 = vcmp.ge.f32.partialorder %v4134_v32, 0.0  ;;  %v10715_v28 = vld [vmem:[#allocation30_spill] sm:$0xff] }
 0x57c   : > { %v4959_v6 = vpop.permute.xlu0 %4958  ;;  %v5473_v41 = vsel %vm10714_vm8, %v5472_v22, %v5468_v29  ;;  %v4956_v55 = vpop.permute.xlu1 %4955  ;;  %v4404_v31 = vmul.f32 0.3, %v4148_v52  ;;  %v4149_v44 = vadd.f32 %v9424_v7, %v3976_v13  ;;  %vm4276_vm9 = vcmp.ge.f32.partialorder %v4148_v52, 0.0 }
 0x57d   : > { %v5482_v60 = vrot.slane %v4959_v6, %v9485_v49  ;;  %v5477_v61 = vrot.slane %v4956_v55, %v9488_v20  ;;  %5117 = vperm.xlu0 %6231, %v4644_v18   ;;  %v4645_v33 = vand.u32 2147483647, %v4517_v9  ;;  %v4659_v1 = vand.u32 2147483647, %v4531_v27 }
 0x57e   : > { %5159 = vperm.xlu1 %6232, %v4658_v17   ;;  %v4151_v25 = vadd.f32 %v9424_v7, %v3978_v36  ;;  %v3977_v4 = vmul.f32 %v9381_v0, %v10715_v28  ;;  %vm10716_vm13 = vcmask 458112   ;;  %v4518_v11 = vsel %vm4262_vm7, %v4134_v32, %v4390_v47 }
 0x57f   : > { %v5478_v43 = vsel %vm10716_vm13, %v5477_v61, %v5473_v41  ;;  %vm4263_vm5 = vcmp.ge.f32.partialorder %v4135_v48, 0.0  ;;  %v4391_v57 = vmul.f32 0.3, %v4135_v48  ;;  %vm10717_vm2 = vcmask 523712  }
 0x580   : > { %v4965_v19 = vpop.permute.xlu0 %4964  ;;  %v5483_v39 = vsel %vm10717_vm2, %v5482_v60, %v5478_v43  ;;  %v4962_v35 = vpop.permute.xlu1 %4961  ;;  %v4532_v37 = vsel %vm4276_vm9, %v4148_v52, %v4404_v31  ;;  %v4405_v53 = vmul.f32 0.3, %v4149_v44  ;;  %v4150_v38 = vadd.f32 %v9424_v7, %v3977_v4 }
 0x581   : > { %v5492_v62 = vrot.slane %v4965_v19, %v9504_v30  ;;  %v5487_v16 = vrot.slane %v4962_v35, %v9514_v24  ;;  %5120 = vperm.xlu0 %6231, %v4645_v33   ;;  %vm4277_vm11 = vcmp.ge.f32.partialorder %v4149_v44, 0.0  ;;  %vm10718_vm8 = vcmask 589312  }
 0x582   : > { %5162 = vperm.xlu1 %6232, %v4659_v1   ;;  %v4646_v2 = vand.u32 2147483647, %v4518_v11  ;;  %v4660_v14 = vand.u32 2147483647, %v4532_v37  ;;  %v4519_v32 = vsel %vm4263_vm5, %v4135_v48, %v4391_v57  ;;  %vm10719_vm7 = vcmask 654912  }
 0x583   : > { %v5488_v0 = vsel %vm10718_vm8, %v5487_v16, %v5483_v39  ;;  %v4533_v12 = vsel %vm4277_vm11, %v4149_v44, %v4405_v53  ;;  %v4407_v26 = vmul.f32 0.3, %v4151_v25  ;;  %v4406_v7 = vmul.f32 0.3, %v4150_v38 }
 0x584   : > { %v4971_v56 = vpop.permute.xlu0 %4970  ;;  %v5493_v36 = vsel %vm10719_vm7, %v5492_v62, %v5488_v0  ;;  %v4968_v58 = vpop.permute.xlu1 %4967  ;;  %vm4279_vm9 = vcmp.ge.f32.partialorder %v4151_v25, 0.0  ;;  %vm4278_vm13 = vcmp.ge.f32.partialorder %v4150_v38, 0.0  ;;  %v4647_v54 = vand.u32 2147483647, %v4519_v32 }
 0x585   : > { %v5502_v52 = vrot.slane %v4971_v56, %v9525_v21  ;;  %v5497_v22 = vrot.slane %v4968_v58, %v9530_v50  ;;  %5123 = vperm.xlu0 %6231, %v4646_v2   ;;  %v4661_v5 = vand.u32 2147483647, %v4533_v12  ;;  %v4535_v15 = vsel %vm4279_vm9, %v4151_v25, %v4407_v26 }
 0x586   : > { %5165 = vperm.xlu1 %6232, %v4660_v14   ;;  %v4534_v13 = vsel %vm4278_vm13, %v4150_v38, %v4406_v7  ;;  %v4663_v48 = vand.u32 2147483647, %v4535_v15  ;;  %vm10720_vm5 = vcmask 917312   ;;  %vm5844_vm2 = vcmask 1043459  }
 0x587   : > { %v5498_v46 = vsel %vm5250_vm10, %v5497_v22, %v5493_v36  ;;  %v4662_v6 = vand.u32 2147483647, %v4534_v13  ;;  %vm10721_vm11 = vcmask 392512   ;;  %vm10722_vm8 = vcmask 458112  }
 0x588   : > { %v4977_v18 = vpop.permute.xlu0 %4976  ;;  %v5503_v17 = vsel %vm5257_vm12, %v5502_v52, %v5498_v46  ;;  %v4974_v9 = vpop.permute.xlu1 %4973  ;;  %vm10723_vm7 = vcmask 523712   ;;  %vm10724_vm9 = vcmask 589312   ;;  %vm10725_vm13 = vcmask 654912  }
 0x589   : > { %v5512_v29 = vrot.slane %v4977_v18, %v9541_v45  ;;  %v5507_v27 = vrot.slane %v4974_v9, %v9547_v42  ;;  %5126 = vperm.xlu0 %6231, %v4647_v54  }
 0x58a   : > { %5168 = vperm.xlu1 %6232, %v4661_v5  }
 0x58b   : > { %v5508_v47 = vsel %vm5264_vm15, %v5507_v27, %v5503_v17 }
 0x58c   : > { %v4983_v41 = vpop.permute.xlu0 %4982  ;;  %v5513_v55 = vsel %vm10720_vm5, %v5512_v29, %v5508_v47  ;;  %v4980_v31 = vpop.permute.xlu1 %4979 }
 0x58d   : > { %v5522_v44 = vrot.slane %v4983_v41, %v9557_v3  ;;  %v5517_v60 = vrot.slane %v4980_v31, %v9579_v51  ;;  %5174 = vperm.xlu0 %6231, %v4663_v48  }
 0x58e   : > { %5171 = vperm.xlu1 %6232, %v4662_v6  }
 0x58f   : > { %v5518_v61 = vsel %vm5278_vm3, %v5517_v60, %v5513_v55 }
 0x590   : > { %v5523_v33 = vsel %vm5285_vm0, %v5522_v44, %v5518_v61  ;;  %v4989_v1 = vpop.permute.xlu0 %4988  ;;  %v4986_v25 = vpop.permute.xlu1 %4985 }
 0x591   : > { %v5845_v28 = vsel %vm5844_vm2, %v5523_v33, %v9883_v40  ;;  %v5531_v4 = vrot.slane %v4989_v1, %v9440_v59  ;;  %v5527_v43 = vrot.slane %v4986_v25, %v9444_v63  ;;  %vm5846_vm2 = vcmask 1044484  }
 0x593   : > { %v5532_v11 = vsel %vm5187_vm6, %v5531_v4, %v5527_v43 }
 0x594   : > { %v4995_v57 = vpop.permute.xlu0 %4994  ;;  %v4992_v19 = vpop.permute.xlu1 %4991 }
 0x595   : > { %v5541_v39 = vrot.slane %v4995_v57, %v9454_v34  ;;  %v5536_v35 = vrot.slane %v4992_v19, %v9459_v23 }
 0x597   : > { %v5537_v37 = vsel %vm5194_vm14, %v5536_v35, %v5532_v11 }
 0x598   : > { %v5001_v53 = vpop.permute.xlu0 %5000  ;;  %v5542_v38 = vsel %vm5201_vm4, %v5541_v39, %v5537_v37  ;;  %v4998_v62 = vpop.permute.xlu1 %4997 }
 0x599   : > { %v5551_v40 = vrot.slane %v5001_v53, %v9473_v8  ;;  %v5546_v16 = vrot.slane %v4998_v62, %v9479_v10 }
 0x59b   : > { %v5547_v0 = vsel %vm5208_vm1, %v5546_v16, %v5542_v38 }
 0x59c   : > { %v5007_v2 = vpop.permute.xlu0 %5006  ;;  %v5552_v14 = vsel %vm10721_vm11, %v5551_v40, %v5547_v0  ;;  %v5004_v32 = vpop.permute.xlu1 %5003 }
 0x59d   : > { %v5561_v56 = vrot.slane %v5007_v2, %v9485_v49  ;;  %v5556_v36 = vrot.slane %v5004_v32, %v9488_v20 }
 0x59f   : > { %v5557_v58 = vsel %vm10722_vm8, %v5556_v36, %v5552_v14 }
 0x5a0   : > { %v5013_v12 = vpop.permute.xlu0 %5012  ;;  %v5562_v26 = vsel %vm10723_vm7, %v5561_v56, %v5557_v58  ;;  %v5010_v7 = vpop.permute.xlu1 %5009 }
 0x5a1   : > { %v5571_v52 = vrot.slane %v5013_v12, %v9504_v30  ;;  %v5566_v22 = vrot.slane %v5010_v7, %v9514_v24 }
 0x5a3   : > { %v5567_v46 = vsel %vm10724_vm9, %v5566_v22, %v5562_v26 }
 0x5a4   : > { %v5019_v54 = vpop.permute.xlu0 %5018  ;;  %v5572_v5 = vsel %vm10725_vm13, %v5571_v52, %v5567_v46  ;;  %v5016_v18 = vpop.permute.xlu1 %5015 }
 0x5a5   : > { %v5581_v17 = vrot.slane %v5019_v54, %v9525_v21  ;;  %v5576_v9 = vrot.slane %v5016_v18, %v9530_v50 }
 0x5a7   : > { %v5577_v15 = vsel %vm5250_vm10, %v5576_v9, %v5572_v5 }
 0x5a8   : > { %v5025_v13 = vpop.permute.xlu0 %5024  ;;  %v5582_v29 = vsel %vm5257_vm12, %v5581_v17, %v5577_v15  ;;  %v5022_v27 = vpop.permute.xlu1 %5021 }
 0x5a9   : > { %v5591_v47 = vrot.slane %v5025_v13, %v9541_v45  ;;  %v5586_v48 = vrot.slane %v5022_v27, %v9547_v42 }
 0x5ab   : > { %v5587_v6 = vsel %vm5264_vm15, %v5586_v48, %v5582_v29 }
 0x5ac   : > { %v5031_v41 = vpop.permute.xlu0 %5030  ;;  %v5592_v55 = vsel %vm10720_vm5, %v5591_v47, %v5587_v6  ;;  %v5028_v31 = vpop.permute.xlu1 %5027 }
 0x5ad   : > { %v5601_v44 = vrot.slane %v5031_v41, %v9557_v3  ;;  %v5596_v60 = vrot.slane %v5028_v31, %v9579_v51 }
 0x5af   : > { %v5597_v61 = vsel %vm5278_vm3, %v5596_v60, %v5592_v55 }
 0x5b0   : > { %v5602_v33 = vsel %vm5285_vm0, %v5601_v44, %v5597_v61  ;;  %v5037_v1 = vpop.permute.xlu0 %5036  ;;  %v5034_v25 = vpop.permute.xlu1 %5033 }
 0x5b1   : > { %v5847_v4 = vsel %vm5846_vm2, %v5602_v33, %v5845_v28  ;;  %v5610_v43 = vrot.slane %v5037_v1, %v9440_v59  ;;  %v5606_v11 = vrot.slane %v5034_v25, %v9444_v63  ;;  %vm5848_vm2 = vcmask 1045509  }
 0x5b3   : > { %v5611_v57 = vsel %vm5187_vm6, %v5610_v43, %v5606_v11 }
 0x5b4   : > { %v5043_v19 = vpop.permute.xlu0 %5042  ;;  %v5040_v39 = vpop.permute.xlu1 %5039 }
 0x5b5   : > { %v5620_v35 = vrot.slane %v5043_v19, %v9454_v34  ;;  %v5615_v37 = vrot.slane %v5040_v39, %v9459_v23 }
 0x5b7   : > { %v5616_v53 = vsel %vm5194_vm14, %v5615_v37, %v5611_v57 }
 0x5b8   : > { %v5049_v38 = vpop.permute.xlu0 %5048  ;;  %v5621_v62 = vsel %vm5201_vm4, %v5620_v35, %v5616_v53  ;;  %v5046_v40 = vpop.permute.xlu1 %5045 }
 0x5b9   : > { %v5630_v28 = vrot.slane %v5049_v38, %v9473_v8  ;;  %v5625_v16 = vrot.slane %v5046_v40, %v9479_v10 }
 0x5bb   : > { %v5626_v0 = vsel %vm5208_vm1, %v5625_v16, %v5621_v62 }
 0x5bc   : > { %v5055_v2 = vpop.permute.xlu0 %5054  ;;  %v5631_v14 = vsel %vm10721_vm11, %v5630_v28, %v5626_v0  ;;  %v5052_v32 = vpop.permute.xlu1 %5051 }
 0x5bd   : > { %v5640_v56 = vrot.slane %v5055_v2, %v9485_v49  ;;  %v5635_v36 = vrot.slane %v5052_v32, %v9488_v20 }
 0x5bf   : > { %v5636_v58 = vsel %vm10722_vm8, %v5635_v36, %v5631_v14 }
 0x5c0   : > { %v5061_v12 = vpop.permute.xlu0 %5060  ;;  %v5641_v26 = vsel %vm10723_vm7, %v5640_v56, %v5636_v58  ;;  %v5058_v7 = vpop.permute.xlu1 %5057 }
 0x5c1   : > { %v5650_v52 = vrot.slane %v5061_v12, %v9504_v30  ;;  %v5645_v22 = vrot.slane %v5058_v7, %v9514_v24 }
 0x5c3   : > { %v5646_v46 = vsel %vm10724_vm9, %v5645_v22, %v5641_v26 }
 0x5c4   : > { %v5067_v54 = vpop.permute.xlu0 %5066  ;;  %v5651_v5 = vsel %vm10725_vm13, %v5650_v52, %v5646_v46  ;;  %v5064_v18 = vpop.permute.xlu1 %5063 }
 0x5c5   : > { %v5660_v17 = vrot.slane %v5067_v54, %v9525_v21  ;;  %v5655_v9 = vrot.slane %v5064_v18, %v9530_v50 }
 0x5c7   : > { %v5656_v15 = vsel %vm5250_vm10, %v5655_v9, %v5651_v5 }
 0x5c8   : > { %v5073_v13 = vpop.permute.xlu0 %5072  ;;  %v5661_v29 = vsel %vm5257_vm12, %v5660_v17, %v5656_v15  ;;  %v5070_v27 = vpop.permute.xlu1 %5069 }
 0x5c9   : > { %v5670_v47 = vrot.slane %v5073_v13, %v9541_v45  ;;  %v5665_v48 = vrot.slane %v5070_v27, %v9547_v42 }
 0x5cb   : > { %v5666_v6 = vsel %vm5264_vm15, %v5665_v48, %v5661_v29 }
 0x5cc   : > { %v5079_v41 = vpop.permute.xlu0 %5078  ;;  %v5671_v55 = vsel %vm10720_vm5, %v5670_v47, %v5666_v6  ;;  %v5076_v31 = vpop.permute.xlu1 %5075 }
 0x5cd   : > { %v5680_v44 = vrot.slane %v5079_v41, %v9557_v3  ;;  %v5675_v60 = vrot.slane %v5076_v31, %v9579_v51 }
 0x5cf   : > { %v5676_v61 = vsel %vm5278_vm3, %v5675_v60, %v5671_v55 }
 0x5d0   : > { %v5681_v33 = vsel %vm5285_vm0, %v5680_v44, %v5676_v61  ;;  %v5085_v1 = vpop.permute.xlu0 %5084  ;;  %v5082_v25 = vpop.permute.xlu1 %5081 }
 0x5d1   : > { %v10001_v43 = vsel %vm5848_vm2, %v5681_v33, %v5847_v4  ;;  %v5689_v56 = vrot.slane %v5085_v1, %v9440_v59  ;;  %v5685_v4 = vrot.slane %v5082_v25, %v9444_v63  ;;  %vm10736_vm2 = vcmask 917312  }
 0x5d3   : > { %v5690_v7 = vsel %vm5187_vm6, %v5689_v56, %v5685_v4 }
 0x5d4   : > { %v5091_v11 = vpop.permute.xlu0 %5090  ;;  %v5088_v57 = vpop.permute.xlu1 %5087 }
 0x5d5   : > { %v5694_v36 = vrot.slane %v5088_v57, %v9459_v23  ;;  %v5699_v52 = vrot.slane %v5091_v11, %v9454_v34 }
 0x5d7   : > { %v5695_v22 = vsel %vm5194_vm14, %v5694_v36, %v5690_v7 }
 0x5d8   : > { %v5097_v19 = vpop.permute.xlu0 %5096  ;;  %v5094_v39 = vpop.permute.xlu1 %5093  ;;  %v5700_v13 = vsel %vm5201_vm4, %v5699_v52, %v5695_v22 }
 0x5d9   : > { %v5704_v46 = vrot.slane %v5094_v39, %v9479_v10 }
 0x5db   : > { %v5705_v29 = vsel %vm5208_vm1, %v5704_v46, %v5700_v13 }
 0x5dc   : > { %v5103_v35 = vpop.permute.xlu0 %5102  ;;  %v5100_v37 = vpop.permute.xlu1 %5099 }
 0x5dd   : > { %v5714_v27 = vrot.slane %v5100_v37, %v9488_v20 }
 0x5e0   : > { %v5109_v53 = vpop.permute.xlu0 %5108  ;;  %v5106_v38 = vpop.permute.xlu1 %5105 }
 0x5e1   : > { %v5724_v44 = vrot.slane %v5106_v38, %v9514_v24 }
 0x5e4   : > { %v5130_v62 = vpop.permute.xlu0 %5129  ;;  %v5112_v40 = vpop.permute.xlu1 %5111 }
 0x5e5   : > { %v5764_v54 = vrot.slane %v5130_v62, %v9444_v63 }
 0x5e8   : > { %v5136_v28 = vpop.permute.xlu0 %5135  ;;  %v5133_v16 = vpop.permute.xlu1 %5132 }
 0x5e9   : > { %v5768_v26 = vrot.slane %v5133_v16, %v9440_v59  ;;  %v5773_v17 = vrot.slane %v5136_v28, %v9459_v23  ;;  %v5709_v59 = vrot.slane %v5097_v19, %v9473_v8  ;;  %v5734_v19 = vrot.slane %v5112_v40, %v9530_v50 }
 0x5eb   : > { %v5769_v9 = vsel %vm5187_vm6, %v5768_v26, %v5764_v54  ;;  %vm10726_vm6 = vmmov %vm10721_vm11 }
 0x5ec   : > { %v5142_v0 = vpop.permute.xlu0 %5141  ;;  %v5139_v2 = vpop.permute.xlu1 %5138  ;;  %v5774_v6 = vsel %vm5194_vm14, %v5773_v17, %v5769_v9  ;;  %v5710_v55 = vsel %vm10726_vm6, %v5709_v59, %v5705_v29  ;;  %vm10727_vm11 = vmmov %vm10722_vm8 }
 0x5ed   : > { %v5778_v15 = vrot.slane %v5139_v2, %v9454_v34  ;;  %v5783_v63 = vrot.slane %v5142_v0, %v9479_v10  ;;  %v5719_v34 = vrot.slane %v5103_v35, %v9485_v49  ;;  %v5715_v31 = vsel %vm10727_vm11, %v5714_v27, %v5710_v55  ;;  %vm10728_vm14 = vmmov %vm10726_vm6 }
 0x5ee   : > { %vm10730_vm8 = vmmov %vm10724_vm9  ;;  %vm5850_vm6 = vcmask 1046534  }
 0x5ef   : > { %v5779_v23 = vsel %vm5201_vm4, %v5778_v15, %v5774_v6  ;;  %vm10729_vm4 = vmmov %vm10723_vm7 }
 0x5f0   : > { %v5148_v14 = vpop.permute.xlu0 %5147  ;;  %v5784_v10 = vsel %vm5208_vm1, %v5783_v63, %v5779_v23  ;;  %v5720_v11 = vsel %vm10729_vm4, %v5719_v34, %v5715_v31  ;;  %vm10731_vm7 = vmmov %vm10727_vm11 }
 0x5f1   : > { %v5145_v32 = vpop.permute.xlu1 %5144  ;;  %v5793_v33 = vrot.slane %v5148_v14, %v9488_v20  ;;  %v5725_v57 = vsel %vm10730_vm8, %v5724_v44, %v5720_v11  ;;  %vm10732_vm1 = vmmov %vm10729_vm4 }
 0x5f2   : > { %v5788_v41 = vrot.slane %v5145_v32, %v9473_v8  ;;  %v5729_v8 = vrot.slane %v5109_v53, %v9504_v30  ;;  %vm10733_vm9 = vmmov %vm10725_vm13 }
 0x5f3   : > { %vm10734_vm13 = vmmov %vm10730_vm8 }
 0x5f4   : > { %v5154_v58 = vpop.permute.xlu0 %5153  ;;  %v5789_v1 = vsel %vm10728_vm14, %v5788_v41, %v5784_v10  ;;  %v5730_v28 = vsel %vm10733_vm9, %v5729_v8, %v5725_v57  ;;  %vm10735_vm5 = vmmov %vm10733_vm9 }
 0x5f5   : > { %v5151_v12 = vpop.permute.xlu1 %5150  ;;  %v5803_v20 = vrot.slane %v5154_v58, %v9514_v24  ;;  %v5794_v37 = vsel %vm10731_vm7, %v5793_v33, %v5789_v1  ;;  %v5735_v24 = vsel %vm5250_vm10, %v5734_v19, %v5730_v28 }
 0x5f6   : > { %v5798_v25 = vrot.slane %v5151_v12, %v9485_v49 }
 0x5f8   : > { %v5115_v5 = vpop.permute.xlu0 %5114  ;;  %v5799_v49 = vsel %vm10732_vm1, %v5798_v25, %v5794_v37 }
 0x5f9   : > { %v5157_v18 = vpop.permute.xlu1 %5156  ;;  %v5739_v38 = vrot.slane %v5115_v5, %v9525_v21  ;;  %v5804_v56 = vsel %vm10734_vm13, %v5803_v20, %v5799_v49 }
 0x5fa   : > { %v5808_v53 = vrot.slane %v5157_v18, %v9504_v30 }
 0x5fb   : > { %v5740_v30 = vsel %vm5257_vm12, %v5739_v38, %v5735_v24 }
 0x5fc   : > { %v5118_v47 = vpop.permute.xlu0 %5117  ;;  %v5809_v36 = vsel %vm10735_vm5, %v5808_v53, %v5804_v56 }
 0x5fd   : > { %v5160_v48 = vpop.permute.xlu1 %5159  ;;  %v5744_v62 = vrot.slane %v5118_v47, %v9547_v42 }
 0x5fe   : > { %v5813_v16 = vrot.slane %v5160_v48, %v9530_v50 }
 0x5ff   : > { %v5745_v58 = vsel %vm5264_vm15, %v5744_v62, %v5740_v30 }
 0x600   : > { %v5121_v60 = vpop.permute.xlu0 %5120  ;;  %v5814_v12 = vsel %vm5250_vm10, %v5813_v16, %v5809_v36  ;;  %vm10737_vm10 = vmmov %vm10736_vm2 }
 0x601   : > { %v5163_v61 = vpop.permute.xlu1 %5162  ;;  %v5749_v40 = vrot.slane %v5121_v60, %v9541_v45 }
 0x602   : > { %v5818_v0 = vrot.slane %v5163_v61, %v9525_v21 }
 0x603   : > { %v5750_v26 = vsel %vm10736_vm2, %v5749_v40, %v5745_v58 }
 0x604   : > { %v5124_v39 = vpop.permute.xlu0 %5123  ;;  %v5819_v7 = vsel %vm5257_vm12, %v5818_v0, %v5814_v12  ;;  %vm5852_vm12 = vcmask 1047559  }
 0x605   : > { %v5166_v35 = vpop.permute.xlu1 %5165  ;;  %v5754_v2 = vrot.slane %v5124_v39, %v9579_v51 }
 0x606   : > { %v5823_v4 = vrot.slane %v5166_v35, %v9547_v42 }
 0x607   : > { %v5755_v52 = vsel %vm5278_vm3, %v5754_v2, %v5750_v26 }
 0x608   : > { %v5127_v14 = vpop.permute.xlu0 %5126  ;;  %v5824_v46 = vsel %vm5264_vm15, %v5823_v4, %v5819_v7 }
 0x609   : > { %v5169_v32 = vpop.permute.xlu1 %5168  ;;  %v5759_v50 = vrot.slane %v5127_v14, %v9557_v3 }
 0x60a   : > { %v5828_v21 = vrot.slane %v5169_v32, %v9541_v45 }
 0x60b   : > { %v5760_v54 = vsel %vm5285_vm0, %v5759_v50, %v5755_v52 }
 0x60c   : > { %v5175_v22 = vpop.permute.xlu0 %5174  ;;  %v5829_v18 = vsel %vm10737_vm10, %v5828_v21, %v5824_v46  ;;  %v5851_v15 = vsel %vm5850_vm6, %v5760_v54, %v10001_v43 }
 0x60d   : > { %v5172_v42 = vpop.permute.xlu1 %5171  ;;  %v5838_v5 = vrot.slane %v5175_v22, %v9557_v3 }
 0x60e   : > { %v5833_v45 = vrot.slane %v5172_v42, %v9579_v51 }
 0x610   : > { %v5834_v17 = vsel %vm5278_vm3, %v5833_v45, %v5829_v18 }
 0x611   : > { %v5839_v9 = vsel %vm5285_vm0, %v5838_v5, %v5834_v17 }
 0x612   : > { %v5853_v3 = vsel %vm5852_vm12, %v5839_v9, %v5851_v15 }
 0x613   : > { %5855 = vst [vmem:[%s287_s21] sm:$0xff] %v5853_v3 }
 0x614   : > { %6246 = shalt.err (!%p6243_p5)
}
 0x615   : > { %s6247_s10 = scalar_lea.hbm %s10076_s20, 128  ;;  %s6251_s15 = scalar_lea.hbm %s10131_s7, 256 }
 0x616   : > { %p6248_p6 = scmp.ne.s32.totalorder %s10076_s20, %s6247_s10  ;;  %p6252_p10 = scmp.lt.u32.totalorder %s10076_s20, %s10131_s7 }
 0x617   : > { %p6253_p11 = scmp.lt.u32.totalorder %s6251_s15, %s6247_s10  ;;  %p6255_p13 = scmp.lt.u32.totalorder %s6247_s10, %s10076_s20 }
 0x618   : > { %p6249_p7 = pnand %p6248_p6, %p6526_p4 }
 0x619   : > { %p6254_p12 = por %p6253_p11, %p6252_p10 }
 0x61a   : > { %p6250_p9 = pneg %p6249_p7 }
 0x61b   : > { %p6256_p0 = por %p6255_p13, %p6254_p12 }
 0x61d   : > { %p6257_p1 = pnand %p6256_p0, %p6250_p9 }
 0x61f   : > { %6260 = shalt.err (!%p6257_p1)
}
 0x620   : > { %5964 = dma.vmem_to_hbm [thread:$0]  (%p6526_p4), %s10078_s22, 128, %s10076_s20, %s5857_s3  }
 0x621 PF: > { %p5970_p2 = scmp.ge.s32.totalorder %s6311_s28, 2  ;;  %s5883_s21 = sand.u32 1, %s6291_s24  }
 0x622   : > { %s5884_s16 = scalar_lea.sflag [#allocation5], %s5883_s21 }
 0x623   : > { %p5967_p3 = pnand %p5970_p2, %p6533_p8 }
 0x625   : > { %6286 = dma.done.wait (!%p5967_p3), %s5884_s16, 128  }
 0x626   : > { %6288 = vsyncadd (!%p5967_p3), %s5884_s16, 4294967168  ;;  %s24_s28 = sadd.s32 1, %s6311_s28   ;;  %s10738_s24 = smov %s6295_s25 }
 0x627   : > { %p21_p5 = scmp.ge.s32.totalorder %s24_s28, 4   ;;  %s10739_s25 = smov %s6299_s26 }
 0x628   : > { %s10740_s26 = smov %s6539_s12  ;;  %s10741_s3 = smov %s6307_s27 }
 0x629   : > { %s10742_s27 = smov %s10744_s30  ;;  %23 = sbr.rel (!%p21_p5) target bundleno = 4 (0x4), region = 84 }
 0x630   :  { %5889 = vsyncpa [#allocation5], 1 }
 0x631   :  { %5891 = vsyncpa [#allocation5 + $0x1], 1 }

</bundles_post_ra>
